<compile_context>
chip_gen: v6e
topology: v6e:2x2x1
jax: 0.10.0
libtpu: 0.0.40
codegen_flags: <defaults>
</compile_context>

<pallas_src>
import jax
import jax.numpy as jnp
from jax import lax
from jax.experimental import pallas as pl
from jax.experimental.pallas import tpu as pltpu

EPS = 1e-5
LANE = 128


def _round_up(x, m):
    return (x + m - 1) // m * m


def _derive_vmem_budgets():
    cap = 64 * 1024 * 1024
    try:
        info = pltpu.get_tpu_info()
        cap = int(getattr(info, "vmem_capacity_bytes", cap))
    except Exception:
        pass
    limit = max(32 * 1024 * 1024, min(int(cap * 0.8), cap - 20 * 1024 * 1024))
    return limit, int(limit * 0.8)


_VMEM_LIMIT, _TILE_BUDGET = _derive_vmem_budgets()


def _cparams(sem):
    return pltpu.CompilerParams(dimension_semantics=sem,
                                vmem_limit_bytes=_VMEM_LIMIT)


def _bytes_of(shape, dtype):
    n = 1
    for d in shape:
        n *= int(d)
    return n * jnp.dtype(dtype).itemsize


# ----------------------------------------------------------------------------
# Kernels
# ----------------------------------------------------------------------------
def _make_conv3x3_kernel(wp, cin_p, proj):
    """3x3 stride-1 conv on a spatially padded, row-flattened image.

    xp_ref holds one image as ((H+2)*(W+2)+pad, Cin) bf16 rows; output row
    r = y*(W+2)+x needs input rows r + dy*(W+2) + dx, so the 9 taps are plain
    row-shifted sub-views fed straight to the MXU (no im2col, no reshapes).
    Per-image BN partial sums are masked so the width-padding columns of the
    flattened output layout contribute nothing.
    """
    def kernel(*refs):
        if proj:
            (xp_ref, w_ref, m_ref, xs_ref, wsc_ref,
             y_ref, ps_ref, pq_ref, ysc_ref, pssc_ref, pqsc_ref) = refs
        else:
            xp_ref, w_ref, m_ref, y_ref, ps_ref, pq_ref = refs

        L, cout = y_ref.shape
        acc = jnp.zeros((L, cout), jnp.float32)
        for dy in range(3):
            for dx in range(3):
                off = dy * wp + dx
                tap = 3 * dy + dx
                lhs = xp_ref[pl.ds(off, L), :]                       # (L, cin)
                rhs = w_ref[pl.ds(tap * cin_p, cin_p), :]            # (cin, cout)
                acc = acc + jnp.dot(lhs, rhs,
                                    preferred_element_type=jnp.float32)

        mask = m_ref[...]                                            # (L, 1) f32
        accm = acc * mask
        y_ref[...] = acc.astype(y_ref.dtype)
        ps_ref[...] = jnp.broadcast_to(
            jnp.sum(accm, axis=0, keepdims=True), ps_ref.shape)
        pq_ref[...] = jnp.broadcast_to(
            jnp.sum(accm * acc, axis=0, keepdims=True), pq_ref.shape)

        if proj:
            sc = jnp.dot(xs_ref[...], wsc_ref[...],
                         preferred_element_type=jnp.float32)
            scm = sc * mask
            ysc_ref[...] = sc.astype(ysc_ref.dtype)
            pssc_ref[...] = jnp.broadcast_to(
                jnp.sum(scm, axis=0, keepdims=True), pssc_ref.shape)
            pqsc_ref[...] = jnp.broadcast_to(
                jnp.sum(scm * sc, axis=0, keepdims=True), pqsc_ref.shape)
    return kernel


def _matmul_bn_stats_kernel(p_ref, w_ref, y_ref, ps_ref, pq_ref, acc_ref):
    """Row/K-tiled im2col matmul (bf16 x bf16 -> f32 scratch -> bf16 y) that
    also emits per-row-tile partial BN sums.  Row axis is 'parallel'
    (partial-stat outputs, no cross-grid accumulator), K axis 'arbitrary'."""
    k = pl.program_id(1)

    @pl.when(k == 0)
    def _init():
        acc_ref[...] = jnp.zeros_like(acc_ref)

    acc_ref[...] += jnp.dot(p_ref[...], w_ref[...],
                            preferred_element_type=jnp.float32)

    @pl.when(k == pl.num_programs(1) - 1)
    def _epilogue():
        acc = acc_ref[...]
        y_ref[...] = acc.astype(y_ref.dtype)
        ps_ref[...] = jnp.broadcast_to(
            jnp.sum(acc, axis=0, keepdims=True), ps_ref.shape)
        pq_ref[...] = jnp.broadcast_to(
            jnp.sum(acc * acc, axis=0, keepdims=True), pq_ref.shape)


def _bn_relu_kernel(y_ref, s_ref, t_ref, o_ref):
    y = y_ref[...].astype(jnp.float32)
    o_ref[...] = jnp.maximum(y * s_ref[...] + t_ref[...], 0.0).astype(o_ref.dtype)


def _bn_add_relu_id_kernel(y_ref, xs_ref, s_ref, t_ref, o_ref):
    y = y_ref[...].astype(jnp.float32)
    xs = xs_ref[...].astype(jnp.float32)
    o_ref[...] = jnp.maximum(y * s_ref[...] + t_ref[...] + xs,
                             0.0).astype(o_ref.dtype)


def _bn_add_relu_proj_kernel(y_ref, ysc_ref, s_ref, t_ref, ssc_ref, tsc_ref,
                             o_ref):
    main = y_ref[...].astype(jnp.float32) * s_ref[...] + t_ref[...]
    sc = ysc_ref[...].astype(jnp.float32) * ssc_ref[...] + tsc_ref[...]
    o_ref[...] = jnp.maximum(main + sc, 0.0).astype(o_ref.dtype)


# ----------------------------------------------------------------------------
# Layout glue (plain JAX)
# ----------------------------------------------------------------------------
def _im2col(x_nhwc, ksize, stride, pad):
    """(N,H,W,C) -> (N*Ho*Wo, ksize*ksize*C), tap-major, channel innermost."""
    n, h, w, c = x_nhwc.shape
    xp = jnp.pad(x_nhwc, ((0, 0), (pad, pad), (pad, pad), (0, 0)))
    ho = (h + 2 * pad - ksize) // stride + 1
    wo = (w + 2 * pad - ksize) // stride + 1
    cols = []
    for ky in range(ksize):
        for kx in range(ksize):
            cols.append(xp[:, ky:ky + stride * (ho - 1) + 1:stride,
                           kx:kx + stride * (wo - 1) + 1:stride, :])
    patches = jnp.concatenate(cols, axis=-1)
    return patches.reshape(n * ho * wo, ksize * ksize * c), ho, wo


def _flatten_weight(w_oihw):
    """(O, I, kh, kw) -> (kh*kw*I, O) matching _im2col feature ordering."""
    o, i, kh, kw = w_oihw.shape
    return jnp.transpose(w_oihw, (2, 3, 1, 0)).reshape(kh * kw * i, o)


def _halo_weight(w_oihw, cin_p, cout_p):
    """(O, I, 3, 3) -> (9*cin_p, cout_p) bf16, tap-major rows, for the halo kernel."""
    o, i, kh, kw = w_oihw.shape
    w = jnp.transpose(w_oihw, (2, 3, 1, 0))                    # (kh, kw, I, O)
    w = jnp.pad(w, ((0, 0), (0, 0), (0, cin_p - i), (0, cout_p - o)))
    return w.reshape(kh * kw * cin_p, cout_p).astype(jnp.bfloat16)


def _pad2d(a, rows, cols):
    r, c = a.shape
    if r == rows and c == cols:
        return a
    return jnp.pad(a, ((0, rows - r), (0, cols - c)))


def _to_halo_input(act_nhwc, cin_p):
    """Valid (N,Ho,Wo,C) activation -> (N, round8((Ho+2)*(Wo+2)+2), cin_p) bf16
    row-flattened, spatially zero-padded halo layout."""
    n, ho, wo, c = act_nhwc.shape
    xp = jnp.pad(act_nhwc, ((0, 0), (1, 1), (1, 1), (0, cin_p - c)))
    hp, wp = ho + 2, wo + 2
    r_in = _round_up(hp * wp + 2, 8)
    xp = xp.reshape(n, hp * wp, cin_p)
    xp = jnp.pad(xp, ((0, 0), (0, r_in - hp * wp), (0, 0)))
    return xp.astype(jnp.bfloat16)


def _pick_tiles(rows, k, cp, want_r=512):
    """Tile sizes for the im2col matmul path: keep the full K resident when it
    fits (weight DMA'd once), shrink K before shrinking rows, rows floor 128."""
    kp = _round_up(k, LANE)
    rows8 = _round_up(rows, 8)
    tile_r = min(_round_up(want_r, 128), rows8)

    def ws(tr, tk):
        nk = max(kp // max(tk, 1), 1)
        return (2 * tr * tk * 2                        # bf16 patches, double buf
                + (2 if nk > 1 else 1) * tk * cp * 2   # bf16 weight
                + 2 * tr * cp * 2                      # bf16 y out, double buf
                + tr * cp * 4                          # f32 accumulator scratch
                + 4 * 8 * cp * 4 + (1 << 16))          # stats + slack

    tile_k = kp
    for cand in (4096, 2048, 1024, 512):
        if ws(tile_r, tile_k) <= _TILE_BUDGET or tile_k <= cand:
            break
        tile_k = cand
    kp = _round_up(k, tile_k)
    while ws(tile_r, tile_k) > _TILE_BUDGET and tile_r > 128:
        tile_r = max(128, tile_r // 2 // 8 * 8)
    rows_pad = _round_up(rows, tile_r)
    return tile_r, tile_k, kp, rows_pad


def _row_tile_for(rows, per_row_bytes, want=2048):
    """Row tile for the elementwise passes (decoupled from the matmul tile)."""
    if rows % 8 != 0:
        return rows                      # full-array block (full-dim exemption)
    cap = max(8, (_TILE_BUDGET // max(per_row_bytes, 1)) // 8 * 8)
    tile = max(8, min(rows, _round_up(want, 8), cap) // 8 * 8)
    while rows % tile != 0:
        tile -= 8
    return tile


# ----------------------------------------------------------------------------
# pallas_call wrappers
# ----------------------------------------------------------------------------
def _conv3x3_bn_stats(xp, w_flat, mask, ho, wp, cout_p, xs=None, wsc=None):
    """Halo 3x3 conv (+ optional fused 1x1 projection shortcut) with fused
    per-image BN partial statistics.  grid=(N,), 'parallel'."""
    n, r_in, cin_p = xp.shape
    proj = xs is not None
    L = ho * wp

    in_specs = [pl.BlockSpec((None, r_in, cin_p), lambda b: (b, 0, 0)),
                pl.BlockSpec(w_flat.shape, lambda b: (0, 0)),
                pl.BlockSpec((None, L, 1), lambda b: (0, 0, 0))]
    args = [xp, w_flat, mask]
    out_shape = [jax.ShapeDtypeStruct((n, L, cout_p), jnp.bfloat16),
                 jax.ShapeDtypeStruct((n, 8, cout_p), jnp.float32),
                 jax.ShapeDtypeStruct((n, 8, cout_p), jnp.float32)]
    out_specs = [pl.BlockSpec((None, L, cout_p), lambda b: (b, 0, 0)),
                 pl.BlockSpec((None, 8, cout_p), lambda b: (b, 0, 0)),
                 pl.BlockSpec((None, 8, cout_p), lambda b: (b, 0, 0))]
    flops = 2 * 9 * n * L * cin_p * cout_p
    if proj:
        cin_sc = xs.shape[-1]
        in_specs += [pl.BlockSpec((None, L, cin_sc), lambda b: (b, 0, 0)),
                     pl.BlockSpec(wsc.shape, lambda b: (0, 0))]
        args += [xs, wsc]
        out_shape += [jax.ShapeDtypeStruct((n, L, cout_p), jnp.bfloat16),
                      jax.ShapeDtypeStruct((n, 8, cout_p), jnp.float32),
                      jax.ShapeDtypeStruct((n, 8, cout_p), jnp.float32)]
        out_specs += [pl.BlockSpec((None, L, cout_p), lambda b: (b, 0, 0)),
                      pl.BlockSpec((None, 8, cout_p), lambda b: (b, 0, 0)),
                      pl.BlockSpec((None, 8, cout_p), lambda b: (b, 0, 0))]
        flops += 2 * n * L * cin_sc * cout_p

    bytes_accessed = (sum(int(a.size) * a.dtype.itemsize for a in args)
                      + sum(_bytes_of(s.shape, s.dtype) for s in out_shape))
    return pl.pallas_call(
        _make_conv3x3_kernel(wp, cin_p, proj),
        out_shape=tuple(out_shape),
        grid=(n,),
        in_specs=in_specs,
        out_specs=tuple(out_specs),
        compiler_params=_cparams(("parallel",)),
        cost_estimate=pl.CostEstimate(flops=int(flops), transcendentals=0,
                                      bytes_accessed=int(bytes_accessed)),
    )(*args)


def _matmul_bn_stats(patches, weights, tile_r, tile_k):
    """y = patches @ weights (bf16 out, f32 scratch acc) + per-row-tile BN sums."""
    rows_pad, kp = patches.shape
    cp = weights.shape[1]
    nr, nk = rows_pad // tile_r, kp // tile_k
    flops = 2 * rows_pad * kp * cp + 4 * rows_pad * cp
    bytes_accessed = (int(patches.size) * 2 + int(weights.size) * 2
                      + rows_pad * cp * 2 + 2 * nr * 8 * cp * 4)
    return pl.pallas_call(
        _matmul_bn_stats_kernel,
        out_shape=(jax.ShapeDtypeStruct((rows_pad, cp), jnp.bfloat16),
                   jax.ShapeDtypeStruct((nr, 8, cp), jnp.float32),
                   jax.ShapeDtypeStruct((nr, 8, cp), jnp.float32)),
        grid=(nr, nk),
        in_specs=[pl.BlockSpec((tile_r, tile_k), lambda r, k: (r, k)),
                  pl.BlockSpec((tile_k, cp), lambda r, k: (k, 0))],
        out_specs=(pl.BlockSpec((tile_r, cp), lambda r, k: (r, 0)),
                   pl.BlockSpec((None, 8, cp), lambda r, k: (r, 0, 0)),
                   pl.BlockSpec((None, 8, cp), lambda r, k: (r, 0, 0))),
        scratch_shapes=[pltpu.VMEM((tile_r, cp), jnp.float32)],
        compiler_params=_cparams(("parallel", "arbitrary")),
        cost_estimate=pl.CostEstimate(flops=int(flops), transcendentals=0,
                                      bytes_accessed=int(bytes_accessed)),
    )(patches, weights)


def _rowwise_call(kernel, row_arrays, chan_arrays, out_dtype):
    """Row-tiled elementwise pass; picks its own (large) row tile."""
    rows, cp = row_arrays[0].shape
    per_row = 2 * cp * (sum(a.dtype.itemsize for a in row_arrays)
                        + jnp.dtype(out_dtype).itemsize)
    tile_r = _row_tile_for(rows, per_row)
    nr = rows // tile_r
    row_spec = pl.BlockSpec((tile_r, cp), lambda r: (r, 0))
    chan_spec = pl.BlockSpec((1, cp), lambda r: (0, 0))
    arrays = list(row_arrays) + list(chan_arrays)
    bytes_accessed = (sum(int(a.size) * a.dtype.itemsize for a in arrays)
                      + rows * cp * jnp.dtype(out_dtype).itemsize)
    return pl.pallas_call(
        kernel,
        out_shape=jax.ShapeDtypeStruct((rows, cp), out_dtype),
        grid=(nr,),
        in_specs=[row_spec] * len(row_arrays) + [chan_spec] * len(chan_arrays),
        out_specs=row_spec,
        compiler_params=_cparams(("parallel",)),
        cost_estimate=pl.CostEstimate(
            flops=int(4 * rows * cp * len(row_arrays)), transcendentals=0,
            bytes_accessed=int(bytes_accessed)),
    )(*arrays)


def _bn_scale_shift(ps, pq, gamma, beta, count, cp):
    """Per-channel scale/shift from partial-sum outputs (shape (G, 8, cp))."""
    s = jnp.sum(ps[:, 0, :], axis=0, keepdims=True)
    q = jnp.sum(pq[:, 0, :], axis=0, keepdims=True)
    mean = s / count
    var = jnp.maximum(q / count - mean * mean, 0.0)
    g = _pad2d(gamma.reshape(1, -1).astype(jnp.float32), 1, cp)
    b = _pad2d(beta.reshape(1, -1).astype(jnp.float32), 1, cp)
    scale = g * lax.rsqrt(var + EPS)
    shift = b - mean * scale
    return scale, shift


# ----------------------------------------------------------------------------
# BasicBlock forward
# ----------------------------------------------------------------------------
def basic_block_forward(x_nchw, params, stride):
    x = jnp.transpose(x_nchw, (0, 2, 3, 1)).astype(jnp.float32)   # NHWC
    n, h, w, c_in = x.shape
    planes = params["conv1"].shape[0]
    has_proj = (stride != 1) or (c_in != planes)
    cp = _round_up(planes, LANE)
    cin_p = _round_up(c_in, LANE)
    ho = (h - 1) // stride + 1
    wo = (w - 1) // stride + 1
    wp = wo + 2
    rows = n * ho * wo
    L = ho * wp

    # Mask of valid columns in the width-padded flattened layout (BN stats).
    mask = ((jnp.arange(L, dtype=jnp.int32) % wp) < wo
            ).astype(jnp.float32).reshape(1, L, 1)

    # ---- conv1 + BN1 statistics ---------------------------------------------
    if stride == 1:
        xp1 = _to_halo_input(x, cin_p)
        w1 = _halo_weight(params["conv1"], cin_p, cp)
        y1, ps1, pq1 = _conv3x3_bn_stats(xp1, w1, mask, ho, wp, cp)
        y1 = y1.reshape(n * L, cp)
    else:
        # TODO(synk): strided conv1 still uses a JAX im2col; an in-kernel
        # strided halo load would remove this last patch materialization.
        p1, _, _ = _im2col(x, 3, stride, 1)
        tr1, tk1, kp1, rows_pad1 = _pick_tiles(rows, p1.shape[1], cp)
        p1 = _pad2d(p1, rows_pad1, kp1).astype(jnp.bfloat16)
        w1 = _pad2d(_flatten_weight(params["conv1"]), kp1, cp).astype(jnp.bfloat16)
        y1, ps1, pq1 = _matmul_bn_stats(p1, w1, tr1, tk1)
    scale1, shift1 = _bn_scale_shift(ps1, pq1, params["bn1_gamma"],
                                     params["bn1_beta"], rows, cp)

    # ---- BN1 normalize + ReLU (bf16 feeds conv2) -----------------------------
    out1 = _rowwise_call(_bn_relu_kernel, [y1], [scale1, shift1], jnp.bfloat16)
    if stride == 1:
        out1_v = out1.reshape(n, ho, wp, cp)[:, :, :wo, :]
    else:
        out1_v = out1[:rows].reshape(n, ho, wo, cp)
    # TODO(synk): the BN1-apply pass could write conv2's halo layout directly
    # and skip this JAX pad/relayout copy.
    xp2 = _to_halo_input(out1_v, cp)
    w2 = _halo_weight(params["conv2"], cp, cp)

    # ---- conv2 (+ fused projection shortcut) + BN2 statistics ----------------
    if has_proj:
        xs = x[:, ::stride, ::stride, :]                        # (n, ho, wo, c_in)
        xs = jnp.pad(xs, ((0, 0), (0, 0), (0, 2), (0, cin_p - c_in)))
        xs = xs.reshape(n, L, cin_p).astype(jnp.bfloat16)
        wsc = _pad2d(_flatten_weight(params["conv_sc"]), cin_p, cp
                     ).astype(jnp.bfloat16)
        (y2, ps2, pq2, ysc, pssc, pqsc) = _conv3x3_bn_stats(
            xp2, w2, mask, ho, wp, cp, xs=xs, wsc=wsc)
        scale2, shift2 = _bn_scale_shift(ps2, pq2, params["bn2_gamma"],
                                         params["bn2_beta"], rows, cp)
        scale_sc, shift_sc = _bn_scale_shift(pssc, pqsc, params["bnsc_gamma"],
                                             params["bnsc_beta"], rows, cp)
        out = _rowwise_call(_bn_add_relu_proj_kernel,
                            [y2.reshape(n * L, cp), ysc.reshape(n * L, cp)],
                            [scale2, shift2, scale_sc, shift_sc], jnp.float32)
    else:
        y2, ps2, pq2 = _conv3x3_bn_stats(xp2, w2, mask, ho, wp, cp)
        scale2, shift2 = _bn_scale_shift(ps2, pq2, params["bn2_gamma"],
                                         params["bn2_beta"], rows, cp)
        xs = jnp.pad(x, ((0, 0), (0, 0), (0, 2), (0, cp - c_in)))   # identity
        xs = xs.reshape(n, L, cp).astype(jnp.bfloat16)
        out = _rowwise_call(_bn_add_relu_id_kernel,
                            [y2.reshape(n * L, cp), xs.reshape(n * L, cp)],
                            [scale2, shift2], jnp.float32)

    out = out.reshape(n, ho, wp, cp)[:, :, :wo, :planes]
    return jnp.transpose(out, (0, 3, 1, 2))                       # back to NCHW


# ----------------------------------------------------------------------------
# Pure-JAX reference (mirrors the PyTorch module in training mode)
# ----------------------------------------------------------------------------
def basic_block_reference(x, params, stride):
    def conv(xx, ww, s, pad):
        return lax.conv_general_dilated(
            xx, ww, (s, s), ((pad, pad), (pad, pad)),
            dimension_numbers=("NCHW", "OIHW", "NCHW"),
            precision=lax.Precision.HIGHEST)

    def bn(xx, g, b):
        mu = jnp.mean(xx, axis=(0, 2, 3), keepdims=True)
        var = jnp.mean((xx - mu) ** 2, axis=(0, 2, 3), keepdims=True)
        return ((xx - mu) * lax.rsqrt(var + EPS) * g.reshape(1, -1, 1, 1)
                + b.reshape(1, -1, 1, 1))

    c_in = x.shape[1]
    planes = params["conv1"].shape[0]
    out = jax.nn.relu(bn(conv(x, params["conv1"], stride, 1),
                         params["bn1_gamma"], params["bn1_beta"]))
    out = bn(conv(out, params["conv2"], 1, 1),
             params["bn2_gamma"], params["bn2_beta"])
    if stride != 1 or c_in != planes:
        sc = bn(conv(x, params["conv_sc"], stride, 0),
                params["bnsc_gamma"], params["bnsc_beta"])
    else:
        sc = x
    return jax.nn.relu(out + sc)


# ----------------------------------------------------------------------------
# Deterministic parameter construction + smoke test
# ----------------------------------------------------------------------------
def make_params(key, in_planes, planes):
    ks = jax.random.split(key, 8)
    return {
        "conv1": 0.1 * jax.random.normal(ks[0], (planes, in_planes, 3, 3), jnp.float32),
        "bn1_gamma": 1.0 + 0.1 * jax.random.normal(ks[1], (planes,), jnp.float32),
        "bn1_beta": 0.1 * jax.random.normal(ks[2], (planes,), jnp.float32),
        "conv2": 0.1 * jax.random.normal(ks[3], (planes, planes, 3, 3), jnp.float32),
        "bn2_gamma": 1.0 + 0.1 * jax.random.normal(ks[4], (planes,), jnp.float32),
        "bn2_beta": 0.1 * jax.random.normal(ks[5], (planes,), jnp.float32),
        # projection shortcut params (used when stride != 1 or in_planes != planes)
        "conv_sc": 0.1 * jax.random.normal(ks[6], (planes, in_planes, 1, 1), jnp.float32),
        "bnsc_gamma": 1.0 + 0.05 * jax.random.normal(ks[7], (planes,), jnp.float32),
        "bnsc_beta": jnp.zeros((planes,), jnp.float32),
    }


if __name__ == "__main__":
    key = jax.random.PRNGKey(0)
    kx1, kpar1, kx2, kpar2 = jax.random.split(key, 4)

    fwd = jax.jit(basic_block_forward, static_argnums=(2,))

    # Case 1: stride=2 + channel change -> projection-shortcut branch
    # (conv1 im2col path + halo conv2 with fused 1x1 projection).
    N, C_IN, H, W, PLANES, STRIDE = 2, 4, 16, 16, 8, 2
    x1 = jax.random.normal(kx1, (N, C_IN, H, W), jnp.float32)
    params1 = make_params(kpar1, C_IN, PLANES)
    out_a = jax.block_until_ready(fwd(x1, params1, STRIDE))
    ref_a = jax.block_until_ready(basic_block_reference(x1, params1, STRIDE))
    assert out_a.shape == ref_a.shape, (out_a.shape, ref_a.shape)
    err_a = float(jnp.max(jnp.abs(out_a - ref_a)))
    tol_a = 3e-2 * max(1.0, float(jnp.max(jnp.abs(ref_a))))   # bf16 MXU operands
    assert err_a < tol_a, (err_a, tol_a)

    # Case 2: stride=1, same channels -> identity-shortcut branch
    # (both convs through the halo kernel).
    x2 = jax.random.normal(kx2, (N, PLANES, H, W), jnp.float32)
    params2 = make_params(kpar2, PLANES, PLANES)
    out_b = jax.block_until_ready(fwd(x2, params2, 1))
    ref_b = jax.block_until_ready(basic_block_reference(x2, params2, 1))
    assert out_b.shape == ref_b.shape, (out_b.shape, ref_b.shape)
    err_b = float(jnp.max(jnp.abs(out_b - ref_b)))
    tol_b = 3e-2 * max(1.0, float(jnp.max(jnp.abs(ref_b))))
    assert err_b < tol_b, (err_b, tol_b)

    print("KERNEL_OK")
</pallas_src>

<mosaic_0001>
module attributes {stable_mosaic.version = 11 : i64} {
  func.func @_bn_relu_kernel(%arg0: i32, %arg1: memref<128x128xbf16, #tpu.memory_space<vmem>>, %arg2: memref<1x128xf32, #tpu.memory_space<vmem>>, %arg3: memref<1x128xf32, #tpu.memory_space<vmem>>, %arg4: memref<128x128xbf16, #tpu.memory_space<vmem>>) attributes {dimension_semantics = [#tpu.dimension_semantics<parallel>], iteration_bounds = array<i64: 1>, scalar_prefetch = 0 : i64, scratch_operands = 0 : i64, tpu.core_type = #tpu.core_type<tc>, window_params = [{transform_indices = @transform_0, window_bounds = array<i64: 128, 128>}, {pipeline_mode = #tpu.pipeline_mode<synchronous>, transform_indices = @transform_1, window_bounds = array<i64: 1, 128>}, {pipeline_mode = #tpu.pipeline_mode<synchronous>, transform_indices = @transform_2, window_bounds = array<i64: 1, 128>}, {transform_indices = @transform_3, window_bounds = array<i64: 128, 128>}]} {
    %c0 = arith.constant 0 : index
    %c0_0 = arith.constant 0 : index
    %0 = vector.load %arg1[%c0, %c0_0] : memref<128x128xbf16, #tpu.memory_space<vmem>>, vector<128x128xbf16>
    %1 = arith.extf %0 : vector<128x128xbf16> to vector<128x128xf32>
    %c0_1 = arith.constant 0 : index
    %c0_2 = arith.constant 0 : index
    %2 = vector.load %arg2[%c0_1, %c0_2] : memref<1x128xf32, #tpu.memory_space<vmem>>, vector<1x128xf32>
    %3 = vector.broadcast %2 : vector<1x128xf32> to vector<128x128xf32>
    %4 = arith.mulf %1, %3 : vector<128x128xf32>
    %c0_3 = arith.constant 0 : index
    %c0_4 = arith.constant 0 : index
    %5 = vector.load %arg3[%c0_3, %c0_4] : memref<1x128xf32, #tpu.memory_space<vmem>>, vector<1x128xf32>
    %6 = vector.broadcast %5 : vector<1x128xf32> to vector<128x128xf32>
    %7 = arith.addf %4, %6 : vector<128x128xf32>
    %cst = arith.constant 0.000000e+00 : f32
    %8 = vector.broadcast %cst : f32 to vector<128x128xf32>
    %9 = arith.maximumf %7, %8 : vector<128x128xf32>
    %10 = arith.truncf %9 : vector<128x128xf32> to vector<128x128xbf16>
    %c0_5 = arith.constant 0 : index
    %c0_6 = arith.constant 0 : index
    %11 = vector.load %arg4[%c0_5, %c0_6] : memref<128x128xbf16, #tpu.memory_space<vmem>>, vector<128x128xbf16>
    tpu.vector_store %arg4[%c0_5, %c0_6], %10 {strides = array<i32>} : memref<128x128xbf16, #tpu.memory_space<vmem>>, vector<128x128xbf16>,
    return
  }
  func.func @transform_0(%arg0: i32) -> (i32, i32) {
    %c0_i32 = arith.constant 0 : i32
    %c0_i32_0 = arith.constant 0 : i32
    return %arg0, %c0_i32 : i32, i32
  }
  func.func @transform_1(%arg0: i32) -> (i32, i32) {
    %c0_i32 = arith.constant 0 : i32
    %c0_i32_0 = arith.constant 0 : i32
    %c0_i32_1 = arith.constant 0 : i32
    return %c0_i32, %c0_i32_0 : i32, i32
  }
  func.func @transform_2(%arg0: i32) -> (i32, i32) {
    %c0_i32 = arith.constant 0 : i32
    %c0_i32_0 = arith.constant 0 : i32
    %c0_i32_1 = arith.constant 0 : i32
    return %c0_i32, %c0_i32_0 : i32, i32
  }
  func.func @transform_3(%arg0: i32) -> (i32, i32) {
    %c0_i32 = arith.constant 0 : i32
    %c0_i32_0 = arith.constant 0 : i32
    return %arg0, %c0_i32 : i32, i32
  }
}

module attributes {stable_mosaic.version = 11 : i64} {
  func.func @_matmul_bn_stats_kernel(%arg0: i32, %arg1: i32, %arg2: memref<128x128xbf16, #tpu.memory_space<vmem>>, %arg3: memref<128x128xbf16, #tpu.memory_space<vmem>>, %arg4: memref<128x128xbf16, #tpu.memory_space<vmem>>, %arg5: memref<1x8x128xf32, #tpu.memory_space<vmem>>, %arg6: memref<1x8x128xf32, #tpu.memory_space<vmem>>, %arg7: memref<128x128xf32, #tpu.memory_space<vmem>>) attributes {dimension_semantics = [#tpu.dimension_semantics<parallel>, #tpu.dimension_semantics<arbitrary>], iteration_bounds = array<i64: 1, 1>, scalar_prefetch = 0 : i64, scratch_operands = 1 : i64, tpu.core_type = #tpu.core_type<tc>, window_params = [{transform_indices = @transform_0, window_bounds = array<i64: 128, 128>}, {transform_indices = @transform_1, window_bounds = array<i64: 128, 128>}, {transform_indices = @transform_2, window_bounds = array<i64: 128, 128>}, {transform_indices = @transform_3, window_bounds = array<i64: 1, 8, 128>}, {transform_indices = @transform_4, window_bounds = array<i64: 1, 8, 128>}]} {
    %c0_i32 = arith.constant 0 : i32
    %0 = arith.cmpi eq, %arg1, %c0_i32 : i32
    %1 = arith.extui %0 : i1 to i32
    %c0_i32_0 = arith.constant 0 : i32
    %2 = arith.cmpi ne, %1, %c0_i32_0 : i32
    scf.if %2 {
      %cst_10 = arith.constant 0.000000e+00 : f32
      %12 = vector.broadcast %cst_10 : f32 to vector<128x128xf32>
      %c0_11 = arith.constant 0 : index
      %c0_12 = arith.constant 0 : index
      %13 = vector.load %arg7[%c0_11, %c0_12] : memref<128x128xf32, #tpu.memory_space<vmem>>, vector<128x128xf32>
      tpu.vector_store %arg7[%c0_11, %c0_12], %12 {strides = array<i32>} : memref<128x128xf32, #tpu.memory_space<vmem>>, vector<128x128xf32>,
    } else {
    }
    %c0 = arith.constant 0 : index
    %c0_1 = arith.constant 0 : index
    %3 = vector.load %arg7[%c0, %c0_1] : memref<128x128xf32, #tpu.memory_space<vmem>>, vector<128x128xf32>
    %c0_2 = arith.constant 0 : index
    %c0_3 = arith.constant 0 : index
    %4 = vector.load %arg2[%c0_2, %c0_3] : memref<128x128xbf16, #tpu.memory_space<vmem>>, vector<128x128xbf16>
    %c0_4 = arith.constant 0 : index
    %c0_5 = arith.constant 0 : index
    %5 = vector.load %arg3[%c0_4, %c0_5] : memref<128x128xbf16, #tpu.memory_space<vmem>>, vector<128x128xbf16>
    %cst = arith.constant dense<0.000000e+00> : vector<128x128xf32>
    %6 = tpu.matmul %4, %5, %cst {dimension_numbers = #tpu.dot_dimension_numbers<[1], [0], [0], [1], [0, 0, 1, 1], [], []>} : vector<128x128xbf16>, vector<128x128xbf16>, vector<128x128xf32> -> vector<128x128xf32>
    %7 = arith.addf %3, %6 : vector<128x128xf32>
    %c0_6 = arith.constant 0 : index
    %c0_7 = arith.constant 0 : index
    %8 = vector.load %arg7[%c0_6, %c0_7] : memref<128x128xf32, #tpu.memory_space<vmem>>, vector<128x128xf32>
    tpu.vector_store %arg7[%c0_6, %c0_7], %7 {strides = array<i32>} : memref<128x128xf32, #tpu.memory_space<vmem>>, vector<128x128xf32>,
    %c0_i32_8 = arith.constant 0 : i32
    %9 = arith.cmpi eq, %arg1, %c0_i32_8 : i32
    %10 = arith.extui %9 : i1 to i32
    %c0_i32_9 = arith.constant 0 : i32
    %11 = arith.cmpi ne, %10, %c0_i32_9 : i32
    scf.if %11 {
      %c0_10 = arith.constant 0 : index
      %c0_11 = arith.constant 0 : index
      %12 = vector.load %arg7[%c0_10, %c0_11] : memref<128x128xf32, #tpu.memory_space<vmem>>, vector<128x128xf32>
      %13 = arith.truncf %12 : vector<128x128xf32> to vector<128x128xbf16>
      %c0_12 = arith.constant 0 : index
      %c0_13 = arith.constant 0 : index
      %14 = vector.load %arg4[%c0_12, %c0_13] : memref<128x128xbf16, #tpu.memory_space<vmem>>, vector<128x128xbf16>
      tpu.vector_store %arg4[%c0_12, %c0_13], %13 {strides = array<i32>} : memref<128x128xbf16, #tpu.memory_space<vmem>>, vector<128x128xbf16>,
      %cst_14 = arith.constant dense<0.000000e+00> : vector<128xf32>
      %15 = vector.multi_reduction <add>, %12, %cst_14 [0] : vector<128x128xf32> to vector<128xf32>
      %16 = vector.shape_cast %15 : vector<128xf32> to vector<1x128xf32>
      %17 = vector.shape_cast %16 : vector<1x128xf32> to vector<1x128xf32>
      %18 = vector.broadcast %17 : vector<1x128xf32> to vector<8x128xf32>
      %c0_15 = arith.constant 0 : index
      %c0_16 = arith.constant 0 : index
      %c0_17 = arith.constant 0 : index
      %19 = vector.load %arg5[%c0_15, %c0_16, %c0_17] : memref<1x8x128xf32, #tpu.memory_space<vmem>>, vector<1x8x128xf32>
      %20 = vector.shape_cast %19 : vector<1x8x128xf32> to vector<8x128xf32>
      %21 = vector.shape_cast %18 : vector<8x128xf32> to vector<1x8x128xf32>
      tpu.vector_store %arg5[%c0_15, %c0_16, %c0_17], %21 {strides = array<i32>} : memref<1x8x128xf32, #tpu.memory_space<vmem>>, vector<1x8x128xf32>,
      %22 = arith.mulf %12, %12 : vector<128x128xf32>
      %cst_18 = arith.constant dense<0.000000e+00> : vector<128xf32>
      %23 = vector.multi_reduction <add>, %22, %cst_18 [0] : vector<128x128xf32> to vector<128xf32>
      %24 = vector.shape_cast %23 : vector<128xf32> to vector<1x128xf32>
      %25 = vector.shape_cast %24 : vector<1x128xf32> to vector<1x128xf32>
      %26 = vector.broadcast %25 : vector<1x128xf32> to vector<8x128xf32>
      %c0_19 = arith.constant 0 : index
      %c0_20 = arith.constant 0 : index
      %c0_21 = arith.constant 0 : index
      %27 = vector.load %arg6[%c0_19, %c0_20, %c0_21] : memref<1x8x128xf32, #tpu.memory_space<vmem>>, vector<1x8x128xf32>
      %28 = vector.shape_cast %27 : vector<1x8x128xf32> to vector<8x128xf32>
      %29 = vector.shape_cast %26 : vector<8x128xf32> to vector<1x8x128xf32>
      tpu.vector_store %arg6[%c0_19, %c0_20, %c0_21], %29 {strides = array<i32>} : memref<1x8x128xf32, #tpu.memory_space<vmem>>, vector<1x8x128xf32>,
    } else {
    }
    return
  }
  func.func @transform_0(%arg0: i32, %arg1: i32) -> (i32, i32) {
    %c0_i32 = arith.constant 0 : i32
    return %arg0, %arg1 : i32, i32
  }
  func.func @transform_1(%arg0: i32, %arg1: i32) -> (i32, i32) {
    %c0_i32 = arith.constant 0 : i32
    %c0_i32_0 = arith.constant 0 : i32
    return %arg1, %c0_i32 : i32, i32
  }
  func.func @transform_2(%arg0: i32, %arg1: i32) -> (i32, i32) {
    %c0_i32 = arith.constant 0 : i32
    %c0_i32_0 = arith.constant 0 : i32
    return %arg0, %c0_i32 : i32, i32
  }
  func.func @transform_3(%arg0: i32, %arg1: i32) -> (i32, i32, i32) {
    %c0_i32 = arith.constant 0 : i32
    %c0_i32_0 = arith.constant 0 : i32
    %c0_i32_1 = arith.constant 0 : i32
    return %arg0, %c0_i32, %c0_i32_0 : i32, i32, i32
  }
  func.func @transform_4(%arg0: i32, %arg1: i32) -> (i32, i32, i32) {
    %c0_i32 = arith.constant 0 : i32
    %c0_i32_0 = arith.constant 0 : i32
    %c0_i32_1 = arith.constant 0 : i32
    return %arg0, %c0_i32, %c0_i32_0 : i32, i32, i32
  }
}

module attributes {stable_mosaic.version = 11 : i64} {
  func.func @kernel(%arg0: i32, %arg1: memref<1x104x128xbf16, #tpu.memory_space<vmem>>, %arg2: memref<1152x128xbf16, #tpu.memory_space<vmem>>, %arg3: memref<1x80x1xf32, #tpu.memory_space<vmem>>, %arg4: memref<1x80x128xbf16, #tpu.memory_space<vmem>>, %arg5: memref<128x128xbf16, #tpu.memory_space<vmem>>, %arg6: memref<1x80x128xbf16, #tpu.memory_space<vmem>>, %arg7: memref<1x8x128xf32, #tpu.memory_space<vmem>>, %arg8: memref<1x8x128xf32, #tpu.memory_space<vmem>>, %arg9: memref<1x80x128xbf16, #tpu.memory_space<vmem>>, %arg10: memref<1x8x128xf32, #tpu.memory_space<vmem>>, %arg11: memref<1x8x128xf32, #tpu.memory_space<vmem>>) attributes {dimension_semantics = [#tpu.dimension_semantics<parallel>], iteration_bounds = array<i64: 2>, scalar_prefetch = 0 : i64, scratch_operands = 0 : i64, tpu.core_type = #tpu.core_type<tc>, window_params = [{transform_indices = @transform_0, window_bounds = array<i64: 1, 104, 128>}, {pipeline_mode = #tpu.pipeline_mode<synchronous>, transform_indices = @transform_1, window_bounds = array<i64: 1152, 128>}, {pipeline_mode = #tpu.pipeline_mode<synchronous>, transform_indices = @transform_2, window_bounds = array<i64: 1, 80, 1>}, {transform_indices = @transform_3, window_bounds = array<i64: 1, 80, 128>}, {pipeline_mode = #tpu.pipeline_mode<synchronous>, transform_indices = @transform_4, window_bounds = array<i64: 128, 128>}, {transform_indices = @transform_5, window_bounds = array<i64: 1, 80, 128>}, {transform_indices = @transform_6, window_bounds = array<i64: 1, 8, 128>}, {transform_indices = @transform_7, window_bounds = array<i64: 1, 8, 128>}, {transform_indices = @transform_8, window_bounds = array<i64: 1, 80, 128>}, {transform_indices = @transform_9, window_bounds = array<i64: 1, 8, 128>}, {transform_indices = @transform_10, window_bounds = array<i64: 1, 8, 128>}]} {
    %cst = arith.constant 0.000000e+00 : f32
    %0 = vector.broadcast %cst : f32 to vector<80x128xf32>
    %c0 = arith.constant 0 : index
    %c0_0 = arith.constant 0 : index
    %c0_1 = arith.constant 0 : index
    %1 = vector.load %arg1[%c0, %c0_0, %c0_1] : memref<1x104x128xbf16, #tpu.memory_space<vmem>>, vector<1x80x128xbf16>
    %2 = vector.shape_cast %1 : vector<1x80x128xbf16> to vector<80x128xbf16>
    %c0_2 = arith.constant 0 : index
    %c0_3 = arith.constant 0 : index
    %3 = vector.load %arg2[%c0_2, %c0_3] : memref<1152x128xbf16, #tpu.memory_space<vmem>>, vector<128x128xbf16>
    %cst_4 = arith.constant dense<0.000000e+00> : vector<80x128xf32>
    %4 = tpu.matmul %2, %3, %cst_4 {dimension_numbers = #tpu.dot_dimension_numbers<[1], [0], [0], [1], [0, 0, 1, 1], [], []>} : vector<80x128xbf16>, vector<128x128xbf16>, vector<80x128xf32> -> vector<80x128xf32>
    %5 = arith.addf %0, %4 : vector<80x128xf32>
    %c0_5 = arith.constant 0 : index
    %c1 = arith.constant 1 : index
    %c0_6 = arith.constant 0 : index
    %6 = vector.load %arg1[%c0_5, %c1, %c0_6] : memref<1x104x128xbf16, #tpu.memory_space<vmem>>, vector<1x80x128xbf16>
    %7 = vector.shape_cast %6 : vector<1x80x128xbf16> to vector<80x128xbf16>
    %c128 = arith.constant 128 : index
    %c0_7 = arith.constant 0 : index
    %8 = vector.load %arg2[%c128, %c0_7] : memref<1152x128xbf16, #tpu.memory_space<vmem>>, vector<128x128xbf16>
    %cst_8 = arith.constant dense<0.000000e+00> : vector<80x128xf32>
    %9 = tpu.matmul %7, %8, %cst_8 {dimension_numbers = #tpu.dot_dimension_numbers<[1], [0], [0], [1], [0, 0, 1, 1], [], []>} : vector<80x128xbf16>, vector<128x128xbf16>, vector<80x128xf32> -> vector<80x128xf32>
    %10 = arith.addf %5, %9 : vector<80x128xf32>
    %c0_9 = arith.constant 0 : index
    %c2 = arith.constant 2 : index
    %c0_10 = arith.constant 0 : index
    %11 = vector.load %arg1[%c0_9, %c2, %c0_10] : memref<1x104x128xbf16, #tpu.memory_space<vmem>>, vector<1x80x128xbf16>
    %12 = vector.shape_cast %11 : vector<1x80x128xbf16> to vector<80x128xbf16>
    %c256 = arith.constant 256 : index
    %c0_11 = arith.constant 0 : index
    %13 = vector.load %arg2[%c256, %c0_11] : memref<1152x128xbf16, #tpu.memory_space<vmem>>, vector<128x128xbf16>
    %cst_12 = arith.constant dense<0.000000e+00> : vector<80x128xf32>
    %14 = tpu.matmul %12, %13, %cst_12 {dimension_numbers = #tpu.dot_dimension_numbers<[1], [0], [0], [1], [0, 0, 1, 1], [], []>} : vector<80x128xbf16>, vector<128x128xbf16>, vector<80x128xf32> -> vector<80x128xf32>
    %15 = arith.addf %10, %14 : vector<80x128xf32>
    %c0_13 = arith.constant 0 : index
    %c10 = arith.constant 10 : index
    %c0_14 = arith.constant 0 : index
    %16 = vector.load %arg1[%c0_13, %c10, %c0_14] : memref<1x104x128xbf16, #tpu.memory_space<vmem>>, vector<1x80x128xbf16>
    %17 = vector.shape_cast %16 : vector<1x80x128xbf16> to vector<80x128xbf16>
    %c384 = arith.constant 384 : index
    %c0_15 = arith.constant 0 : index
    %18 = vector.load %arg2[%c384, %c0_15] : memref<1152x128xbf16, #tpu.memory_space<vmem>>, vector<128x128xbf16>
    %cst_16 = arith.constant dense<0.000000e+00> : vector<80x128xf32>
    %19 = tpu.matmul %17, %18, %cst_16 {dimension_numbers = #tpu.dot_dimension_numbers<[1], [0], [0], [1], [0, 0, 1, 1], [], []>} : vector<80x128xbf16>, vector<128x128xbf16>, vector<80x128xf32> -> vector<80x128xf32>
    %20 = arith.addf %15, %19 : vector<80x128xf32>
    %c0_17 = arith.constant 0 : index
    %c11 = arith.constant 11 : index
    %c0_18 = arith.constant 0 : index
    %21 = vector.load %arg1[%c0_17, %c11, %c0_18] : memref<1x104x128xbf16, #tpu.memory_space<vmem>>, vector<1x80x128xbf16>
    %22 = vector.shape_cast %21 : vector<1x80x128xbf16> to vector<80x128xbf16>
    %c512 = arith.constant 512 : index
    %c0_19 = arith.constant 0 : index
    %23 = vector.load %arg2[%c512, %c0_19] : memref<1152x128xbf16, #tpu.memory_space<vmem>>, vector<128x128xbf16>
    %cst_20 = arith.constant dense<0.000000e+00> : vector<80x128xf32>
    %24 = tpu.matmul %22, %23, %cst_20 {dimension_numbers = #tpu.dot_dimension_numbers<[1], [0], [0], [1], [0, 0, 1, 1], [], []>} : vector<80x128xbf16>, vector<128x128xbf16>, vector<80x128xf32> -> vector<80x128xf32>
    %25 = arith.addf %20, %24 : vector<80x128xf32>
    %c0_21 = arith.constant 0 : index
    %c12 = arith.constant 12 : index
    %c0_22 = arith.constant 0 : index
    %26 = vector.load %arg1[%c0_21, %c12, %c0_22] : memref<1x104x128xbf16, #tpu.memory_space<vmem>>, vector<1x80x128xbf16>
    %27 = vector.shape_cast %26 : vector<1x80x128xbf16> to vector<80x128xbf16>
    %c640 = arith.constant 640 : index
    %c0_23 = arith.constant 0 : index
    %28 = vector.load %arg2[%c640, %c0_23] : memref<1152x128xbf16, #tpu.memory_space<vmem>>, vector<128x128xbf16>
    %cst_24 = arith.constant dense<0.000000e+00> : vector<80x128xf32>
    %29 = tpu.matmul %27, %28, %cst_24 {dimension_numbers = #tpu.dot_dimension_numbers<[1], [0], [0], [1], [0, 0, 1, 1], [], []>} : vector<80x128xbf16>, vector<128x128xbf16>, vector<80x128xf32> -> vector<80x128xf32>
    %30 = arith.addf %25, %29 : vector<80x128xf32>
    %c0_25 = arith.constant 0 : index
    %c20 = arith.constant 20 : index
    %c0_26 = arith.constant 0 : index
    %31 = vector.load %arg1[%c0_25, %c20, %c0_26] : memref<1x104x128xbf16, #tpu.memory_space<vmem>>, vector<1x80x128xbf16>
    %32 = vector.shape_cast %31 : vector<1x80x128xbf16> to vector<80x128xbf16>
    %c768 = arith.constant 768 : index
    %c0_27 = arith.constant 0 : index
    %33 = vector.load %arg2[%c768, %c0_27] : memref<1152x128xbf16, #tpu.memory_space<vmem>>, vector<128x128xbf16>
    %cst_28 = arith.constant dense<0.000000e+00> : vector<80x128xf32>
    %34 = tpu.matmul %32, %33, %cst_28 {dimension_numbers = #tpu.dot_dimension_numbers<[1], [0], [0], [1], [0, 0, 1, 1], [], []>} : vector<80x128xbf16>, vector<128x128xbf16>, vector<80x128xf32> -> vector<80x128xf32>
    %35 = arith.addf %30, %34 : vector<80x128xf32>
    %c0_29 = arith.constant 0 : index
    %c21 = arith.constant 21 : index
    %c0_30 = arith.constant 0 : index
    %36 = vector.load %arg1[%c0_29, %c21, %c0_30] : memref<1x104x128xbf16, #tpu.memory_space<vmem>>, vector<1x80x128xbf16>
    %37 = vector.shape_cast %36 : vector<1x80x128xbf16> to vector<80x128xbf16>
    %c896 = arith.constant 896 : index
    %c0_31 = arith.constant 0 : index
    %38 = vector.load %arg2[%c896, %c0_31] : memref<1152x128xbf16, #tpu.memory_space<vmem>>, vector<128x128xbf16>
    %cst_32 = arith.constant dense<0.000000e+00> : vector<80x128xf32>
    %39 = tpu.matmul %37, %38, %cst_32 {dimension_numbers = #tpu.dot_dimension_numbers<[1], [0], [0], [1], [0, 0, 1, 1], [], []>} : vector<80x128xbf16>, vector<128x128xbf16>, vector<80x128xf32> -> vector<80x128xf32>
    %40 = arith.addf %35, %39 : vector<80x128xf32>
    %c0_33 = arith.constant 0 : index
    %c22 = arith.constant 22 : index
    %c0_34 = arith.constant 0 : index
    %41 = vector.load %arg1[%c0_33, %c22, %c0_34] : memref<1x104x128xbf16, #tpu.memory_space<vmem>>, vector<1x80x128xbf16>
    %42 = vector.shape_cast %41 : vector<1x80x128xbf16> to vector<80x128xbf16>
    %c1024 = arith.constant 1024 : index
    %c0_35 = arith.constant 0 : index
    %43 = vector.load %arg2[%c1024, %c0_35] : memref<1152x128xbf16, #tpu.memory_space<vmem>>, vector<128x128xbf16>
    %cst_36 = arith.constant dense<0.000000e+00> : vector<80x128xf32>
    %44 = tpu.matmul %42, %43, %cst_36 {dimension_numbers = #tpu.dot_dimension_numbers<[1], [0], [0], [1], [0, 0, 1, 1], [], []>} : vector<80x128xbf16>, vector<128x128xbf16>, vector<80x128xf32> -> vector<80x128xf32>
    %45 = arith.addf %40, %44 : vector<80x128xf32>
    %c0_37 = arith.constant 0 : index
    %c0_38 = arith.constant 0 : index
    %c0_39 = arith.constant 0 : index
    %46 = vector.load %arg3[%c0_37, %c0_38, %c0_39] : memref<1x80x1xf32, #tpu.memory_space<vmem>>, vector<1x80x1xf32>
    %47 = vector.shape_cast %46 : vector<1x80x1xf32> to vector<80x1xf32>
    %48 = vector.broadcast %47 : vector<80x1xf32> to vector<80x128xf32>
    %49 = arith.mulf %45, %48 : vector<80x128xf32>
    %50 = arith.truncf %45 : vector<80x128xf32> to vector<80x128xbf16>
    %c0_40 = arith.constant 0 : index
    %c0_41 = arith.constant 0 : index
    %c0_42 = arith.constant 0 : index
    %51 = vector.load %arg6[%c0_40, %c0_41, %c0_42] : memref<1x80x128xbf16, #tpu.memory_space<vmem>>, vector<1x80x128xbf16>
    %52 = vector.shape_cast %51 : vector<1x80x128xbf16> to vector<80x128xbf16>
    %53 = vector.shape_cast %50 : vector<80x128xbf16> to vector<1x80x128xbf16>
    tpu.vector_store %arg6[%c0_40, %c0_41, %c0_42], %53 {strides = array<i32>} : memref<1x80x128xbf16, #tpu.memory_space<vmem>>, vector<1x80x128xbf16>,
    %cst_43 = arith.constant dense<0.000000e+00> : vector<128xf32>
    %54 = vector.multi_reduction <add>, %49, %cst_43 [0] : vector<80x128xf32> to vector<128xf32>
    %55 = vector.shape_cast %54 : vector<128xf32> to vector<1x128xf32>
    %56 = vector.shape_cast %55 : vector<1x128xf32> to vector<1x128xf32>
    %57 = vector.broadcast %56 : vector<1x128xf32> to vector<8x128xf32>
    %c0_44 = arith.constant 0 : index
    %c0_45 = arith.constant 0 : index
    %c0_46 = arith.constant 0 : index
    %58 = vector.load %arg7[%c0_44, %c0_45, %c0_46] : memref<1x8x128xf32, #tpu.memory_space<vmem>>, vector<1x8x128xf32>
    %59 = vector.shape_cast %58 : vector<1x8x128xf32> to vector<8x128xf32>
    %60 = vector.shape_cast %57 : vector<8x128xf32> to vector<1x8x128xf32>
    tpu.vector_store %arg7[%c0_44, %c0_45, %c0_46], %60 {strides = array<i32>} : memref<1x8x128xf32, #tpu.memory_space<vmem>>, vector<1x8x128xf32>,
    %61 = arith.mulf %49, %45 : vector<80x128xf32>
    %cst_47 = arith.constant dense<0.000000e+00> : vector<128xf32>
    %62 = vector.multi_reduction <add>, %61, %cst_47 [0] : vector<80x128xf32> to vector<128xf32>
    %63 = vector.shape_cast %62 : vector<128xf32> to vector<1x128xf32>
    %64 = vector.shape_cast %63 : vector<1x128xf32> to vector<1x128xf32>
    %65 = vector.broadcast %64 : vector<1x128xf32> to vector<8x128xf32>
    %c0_48 = arith.constant 0 : index
    %c0_49 = arith.constant 0 : index
    %c0_50 = arith.constant 0 : index
    %66 = vector.load %arg8[%c0_48, %c0_49, %c0_50] : memref<1x8x128xf32, #tpu.memory_space<vmem>>, vector<1x8x128xf32>
    %67 = vector.shape_cast %66 : vector<1x8x128xf32> to vector<8x128xf32>
    %68 = vector.shape_cast %65 : vector<8x128xf32> to vector<1x8x128xf32>
    tpu.vector_store %arg8[%c0_48, %c0_49, %c0_50], %68 {strides = array<i32>} : memref<1x8x128xf32, #tpu.memory_space<vmem>>, vector<1x8x128xf32>,
    %c0_51 = arith.constant 0 : index
    %c0_52 = arith.constant 0 : index
    %c0_53 = arith.constant 0 : index
    %69 = vector.load %arg4[%c0_51, %c0_52, %c0_53] : memref<1x80x128xbf16, #tpu.memory_space<vmem>>, vector<1x80x128xbf16>
    %70 = vector.shape_cast %69 : vector<1x80x128xbf16> to vector<80x128xbf16>
    %c0_54 = arith.constant 0 : index
    %c0_55 = arith.constant 0 : index
    %71 = vector.load %arg5[%c0_54, %c0_55] : memref<128x128xbf16, #tpu.memory_space<vmem>>, vector<128x128xbf16>
    %cst_56 = arith.constant dense<0.000000e+00> : vector<80x128xf32>
    %72 = tpu.matmul %70, %71, %cst_56 {dimension_numbers = #tpu.dot_dimension_numbers<[1], [0], [0], [1], [0, 0, 1, 1], [], []>} : vector<80x128xbf16>, vector<128x128xbf16>, vector<80x128xf32> -> vector<80x128xf32>
    %73 = vector.broadcast %47 : vector<80x1xf32> to vector<80x128xf32>
    %74 = arith.mulf %72, %73 : vector<80x128xf32>
    %75 = arith.truncf %72 : vector<80x128xf32> to vector<80x128xbf16>
    %c0_57 = arith.constant 0 : index
    %c0_58 = arith.constant 0 : index
    %c0_59 = arith.constant 0 : index
    %76 = vector.load %arg9[%c0_57, %c0_58, %c0_59] : memref<1x80x128xbf16, #tpu.memory_space<vmem>>, vector<1x80x128xbf16>
    %77 = vector.shape_cast %76 : vector<1x80x128xbf16> to vector<80x128xbf16>
    %78 = vector.shape_cast %75 : vector<80x128xbf16> to vector<1x80x128xbf16>
    tpu.vector_store %arg9[%c0_57, %c0_58, %c0_59], %78 {strides = array<i32>} : memref<1x80x128xbf16, #tpu.memory_space<vmem>>, vector<1x80x128xbf16>,
    %cst_60 = arith.constant dense<0.000000e+00> : vector<128xf32>
    %79 = vector.multi_reduction <add>, %74, %cst_60 [0] : vector<80x128xf32> to vector<128xf32>
    %80 = vector.shape_cast %79 : vector<128xf32> to vector<1x128xf32>
    %81 = vector.shape_cast %80 : vector<1x128xf32> to vector<1x128xf32>
    %82 = vector.broadcast %81 : vector<1x128xf32> to vector<8x128xf32>
    %c0_61 = arith.constant 0 : index
    %c0_62 = arith.constant 0 : index
    %c0_63 = arith.constant 0 : index
    %83 = vector.load %arg10[%c0_61, %c0_62, %c0_63] : memref<1x8x128xf32, #tpu.memory_space<vmem>>, vector<1x8x128xf32>
    %84 = vector.shape_cast %83 : vector<1x8x128xf32> to vector<8x128xf32>
    %85 = vector.shape_cast %82 : vector<8x128xf32> to vector<1x8x128xf32>
    tpu.vector_store %arg10[%c0_61, %c0_62, %c0_63], %85 {strides = array<i32>} : memref<1x8x128xf32, #tpu.memory_space<vmem>>, vector<1x8x128xf32>,
    %86 = arith.mulf %74, %72 : vector<80x128xf32>
    %cst_64 = arith.constant dense<0.000000e+00> : vector<128xf32>
    %87 = vector.multi_reduction <add>, %86, %cst_64 [0] : vector<80x128xf32> to vector<128xf32>
    %88 = vector.shape_cast %87 : vector<128xf32> to vector<1x128xf32>
    %89 = vector.shape_cast %88 : vector<1x128xf32> to vector<1x128xf32>
    %90 = vector.broadcast %89 : vector<1x128xf32> to vector<8x128xf32>
    %c0_65 = arith.constant 0 : index
    %c0_66 = arith.constant 0 : index
    %c0_67 = arith.constant 0 : index
    %91 = vector.load %arg11[%c0_65, %c0_66, %c0_67] : memref<1x8x128xf32, #tpu.memory_space<vmem>>, vector<1x8x128xf32>
    %92 = vector.shape_cast %91 : vector<1x8x128xf32> to vector<8x128xf32>
    %93 = vector.shape_cast %90 : vector<8x128xf32> to vector<1x8x128xf32>
    tpu.vector_store %arg11[%c0_65, %c0_66, %c0_67], %93 {strides = array<i32>} : memref<1x8x128xf32, #tpu.memory_space<vmem>>, vector<1x8x128xf32>,
    return
  }
  func.func @transform_0(%arg0: i32) -> (i32, i32, i32) {
    %c0_i32 = arith.constant 0 : i32
    %c0_i32_0 = arith.constant 0 : i32
    %c0_i32_1 = arith.constant 0 : i32
    return %arg0, %c0_i32, %c0_i32_0 : i32, i32, i32
  }
  func.func @transform_1(%arg0: i32) -> (i32, i32) {
    %c0_i32 = arith.constant 0 : i32
    %c0_i32_0 = arith.constant 0 : i32
    %c0_i32_1 = arith.constant 0 : i32
    return %c0_i32, %c0_i32_0 : i32, i32
  }
  func.func @transform_2(%arg0: i32) -> (i32, i32, i32) {
    %c0_i32 = arith.constant 0 : i32
    %c0_i32_0 = arith.constant 0 : i32
    %c0_i32_1 = arith.constant 0 : i32
    %c0_i32_2 = arith.constant 0 : i32
    return %c0_i32, %c0_i32_0, %c0_i32_1 : i32, i32, i32
  }
  func.func @transform_3(%arg0: i32) -> (i32, i32, i32) {
    %c0_i32 = arith.constant 0 : i32
    %c0_i32_0 = arith.constant 0 : i32
    %c0_i32_1 = arith.constant 0 : i32
    return %arg0, %c0_i32, %c0_i32_0 : i32, i32, i32
  }
  func.func @transform_4(%arg0: i32) -> (i32, i32) {
    %c0_i32 = arith.constant 0 : i32
    %c0_i32_0 = arith.constant 0 : i32
    %c0_i32_1 = arith.constant 0 : i32
    return %c0_i32, %c0_i32_0 : i32, i32
  }
  func.func @transform_5(%arg0: i32) -> (i32, i32, i32) {
    %c0_i32 = arith.constant 0 : i32
    %c0_i32_0 = arith.constant 0 : i32
    %c0_i32_1 = arith.constant 0 : i32
    return %arg0, %c0_i32, %c0_i32_0 : i32, i32, i32
  }
  func.func @transform_6(%arg0: i32) -> (i32, i32, i32) {
    %c0_i32 = arith.constant 0 : i32
    %c0_i32_0 = arith.constant 0 : i32
    %c0_i32_1 = arith.constant 0 : i32
    return %arg0, %c0_i32, %c0_i32_0 : i32, i32, i32
  }
  func.func @transform_7(%arg0: i32) -> (i32, i32, i32) {
    %c0_i32 = arith.constant 0 : i32
    %c0_i32_0 = arith.constant 0 : i32
    %c0_i32_1 = arith.constant 0 : i32
    return %arg0, %c0_i32, %c0_i32_0 : i32, i32, i32
  }
  func.func @transform_8(%arg0: i32) -> (i32, i32, i32) {
    %c0_i32 = arith.constant 0 : i32
    %c0_i32_0 = arith.constant 0 : i32
    %c0_i32_1 = arith.constant 0 : i32
    return %arg0, %c0_i32, %c0_i32_0 : i32, i32, i32
  }
  func.func @transform_9(%arg0: i32) -> (i32, i32, i32) {
    %c0_i32 = arith.constant 0 : i32
    %c0_i32_0 = arith.constant 0 : i32
    %c0_i32_1 = arith.constant 0 : i32
    return %arg0, %c0_i32, %c0_i32_0 : i32, i32, i32
  }
  func.func @transform_10(%arg0: i32) -> (i32, i32, i32) {
    %c0_i32 = arith.constant 0 : i32
    %c0_i32_0 = arith.constant 0 : i32
    %c0_i32_1 = arith.constant 0 : i32
    return %arg0, %c0_i32, %c0_i32_0 : i32, i32, i32
  }
}

module attributes {stable_mosaic.version = 11 : i64} {
  func.func @_bn_add_relu_proj_kernel(%arg0: i32, %arg1: memref<160x128xbf16, #tpu.memory_space<vmem>>, %arg2: memref<160x128xbf16, #tpu.memory_space<vmem>>, %arg3: memref<1x128xf32, #tpu.memory_space<vmem>>, %arg4: memref<1x128xf32, #tpu.memory_space<vmem>>, %arg5: memref<1x128xf32, #tpu.memory_space<vmem>>, %arg6: memref<1x128xf32, #tpu.memory_space<vmem>>, %arg7: memref<160x128xf32, #tpu.memory_space<vmem>>) attributes {dimension_semantics = [#tpu.dimension_semantics<parallel>], iteration_bounds = array<i64: 1>, scalar_prefetch = 0 : i64, scratch_operands = 0 : i64, tpu.core_type = #tpu.core_type<tc>, window_params = [{transform_indices = @transform_0, window_bounds = array<i64: 160, 128>}, {transform_indices = @transform_1, window_bounds = array<i64: 160, 128>}, {pipeline_mode = #tpu.pipeline_mode<synchronous>, transform_indices = @transform_2, window_bounds = array<i64: 1, 128>}, {pipeline_mode = #tpu.pipeline_mode<synchronous>, transform_indices = @transform_3, window_bounds = array<i64: 1, 128>}, {pipeline_mode = #tpu.pipeline_mode<synchronous>, transform_indices = @transform_4, window_bounds = array<i64: 1, 128>}, {pipeline_mode = #tpu.pipeline_mode<synchronous>, transform_indices = @transform_5, window_bounds = array<i64: 1, 128>}, {transform_indices = @transform_6, window_bounds = array<i64: 160, 128>}]} {
    %c0 = arith.constant 0 : index
    %c0_0 = arith.constant 0 : index
    %0 = vector.load %arg1[%c0, %c0_0] : memref<160x128xbf16, #tpu.memory_space<vmem>>, vector<160x128xbf16>
    %1 = arith.extf %0 : vector<160x128xbf16> to vector<160x128xf32>
    %c0_1 = arith.constant 0 : index
    %c0_2 = arith.constant 0 : index
    %2 = vector.load %arg3[%c0_1, %c0_2] : memref<1x128xf32, #tpu.memory_space<vmem>>, vector<1x128xf32>
    %3 = vector.broadcast %2 : vector<1x128xf32> to vector<160x128xf32>
    %4 = arith.mulf %1, %3 : vector<160x128xf32>
    %c0_3 = arith.constant 0 : index
    %c0_4 = arith.constant 0 : index
    %5 = vector.load %arg4[%c0_3, %c0_4] : memref<1x128xf32, #tpu.memory_space<vmem>>, vector<1x128xf32>
    %6 = vector.broadcast %5 : vector<1x128xf32> to vector<160x128xf32>
    %7 = arith.addf %4, %6 : vector<160x128xf32>
    %c0_5 = arith.constant 0 : index
    %c0_6 = arith.constant 0 : index
    %8 = vector.load %arg2[%c0_5, %c0_6] : memref<160x128xbf16, #tpu.memory_space<vmem>>, vector<160x128xbf16>
    %9 = arith.extf %8 : vector<160x128xbf16> to vector<160x128xf32>
    %c0_7 = arith.constant 0 : index
    %c0_8 = arith.constant 0 : index
    %10 = vector.load %arg5[%c0_7, %c0_8] : memref<1x128xf32, #tpu.memory_space<vmem>>, vector<1x128xf32>
    %11 = vector.broadcast %10 : vector<1x128xf32> to vector<160x128xf32>
    %12 = arith.mulf %9, %11 : vector<160x128xf32>
    %c0_9 = arith.constant 0 : index
    %c0_10 = arith.constant 0 : index
    %13 = vector.load %arg6[%c0_9, %c0_10] : memref<1x128xf32, #tpu.memory_space<vmem>>, vector<1x128xf32>
    %14 = vector.broadcast %13 : vector<1x128xf32> to vector<160x128xf32>
    %15 = arith.addf %12, %14 : vector<160x128xf32>
    %16 = arith.addf %7, %15 : vector<160x128xf32>
    %cst = arith.constant 0.000000e+00 : f32
    %17 = vector.broadcast %cst : f32 to vector<160x128xf32>
    %18 = arith.maximumf %16, %17 : vector<160x128xf32>
    %c0_11 = arith.constant 0 : index
    %c0_12 = arith.constant 0 : index
    %19 = vector.load %arg7[%c0_11, %c0_12] : memref<160x128xf32, #tpu.memory_space<vmem>>, vector<160x128xf32>
    tpu.vector_store %arg7[%c0_11, %c0_12], %18 {strides = array<i32>} : memref<160x128xf32, #tpu.memory_space<vmem>>, vector<160x128xf32>,
    return
  }
  func.func @transform_0(%arg0: i32) -> (i32, i32) {
    %c0_i32 = arith.constant 0 : i32
    %c0_i32_0 = arith.constant 0 : i32
    return %arg0, %c0_i32 : i32, i32
  }
  func.func @transform_1(%arg0: i32) -> (i32, i32) {
    %c0_i32 = arith.constant 0 : i32
    %c0_i32_0 = arith.constant 0 : i32
    return %arg0, %c0_i32 : i32, i32
  }
  func.func @transform_2(%arg0: i32) -> (i32, i32) {
    %c0_i32 = arith.constant 0 : i32
    %c0_i32_0 = arith.constant 0 : i32
    %c0_i32_1 = arith.constant 0 : i32
    return %c0_i32, %c0_i32_0 : i32, i32
  }
  func.func @transform_3(%arg0: i32) -> (i32, i32) {
    %c0_i32 = arith.constant 0 : i32
    %c0_i32_0 = arith.constant 0 : i32
    %c0_i32_1 = arith.constant 0 : i32
    return %c0_i32, %c0_i32_0 : i32, i32
  }
  func.func @transform_4(%arg0: i32) -> (i32, i32) {
    %c0_i32 = arith.constant 0 : i32
    %c0_i32_0 = arith.constant 0 : i32
    %c0_i32_1 = arith.constant 0 : i32
    return %c0_i32, %c0_i32_0 : i32, i32
  }
  func.func @transform_5(%arg0: i32) -> (i32, i32) {
    %c0_i32 = arith.constant 0 : i32
    %c0_i32_0 = arith.constant 0 : i32
    %c0_i32_1 = arith.constant 0 : i32
    return %c0_i32, %c0_i32_0 : i32, i32
  }
  func.func @transform_6(%arg0: i32) -> (i32, i32) {
    %c0_i32 = arith.constant 0 : i32
    %c0_i32_0 = arith.constant 0 : i32
    return %arg0, %c0_i32 : i32, i32
  }
}

</mosaic_0001>

<bundles_post_ra>
// kernel: basic_block_forward.5
= control target key start
LH: loop header
LB: loop body
LE: loop exit
PB: predicated region body
PF: predicated region fallthrough
CT: control target
= control target key end

     0   :  { %s422_s0 = inlined_call_operand.vmem [shape: bf16[128,128], index: 0, kind: input, shape index: {}]   ;;  %s423_s1 = inlined_call_operand.vmem [shape: f32[1,128], index: 1, kind: input, shape index: {}]   ;;  %s424_s2 = inlined_call_operand.vmem [shape: f32[1,128], index: 2, kind: input, shape index: {}]   ;;  %s425_s3 = inlined_call_operand.vmem [shape: bf16[128,128], index: 3, kind: output, shape index: {}]  }
   0x1   :  { %v227_v0 = vld [vmem:[%s422_s0] sm:$0xff]   ;;  %v298_v4 = vld [vmem:[%s422_s0 + $0x8] sm:$0xff]   ;;  %v299_v5 = vld [vmem:[%s422_s0 + $0x10] sm:$0xff]  }
   0x2   :  { %v338_v1 = vld [vmem:[%s423_s1] ss:$0 sm:$0xff]  ;;  %v228_v2 = vunpack.c.l.bf16 %v227_v0  ;;  %v229_v3 = vunpack.c.h.bf16 %v227_v0  ;;  %v300_v6 = vld [vmem:[%s422_s0 + $0x18] sm:$0xff]   ;;  %v232_v8 = vunpack.c.l.bf16 %v298_v4  ;;  %v233_v9 = vunpack.c.h.bf16 %v298_v4  ;;  %v302_v33 = vld [vmem:[%s422_s0 + $0x28] sm:$0xff]  }
   0x3   :  { %v352_v7 = vld [vmem:[%s424_s2] ss:$0 sm:$0xff]  ;;  %v236_v10 = vunpack.c.l.bf16 %v299_v5  ;;  %v237_v11 = vunpack.c.h.bf16 %v299_v5  ;;  %v240_v14 = vunpack.c.l.bf16 %v300_v6  ;;  %v241_v15 = vunpack.c.h.bf16 %v300_v6  ;;  %v303_v38 = vld [vmem:[%s422_s0 + $0x30] sm:$0xff]   ;;  %v304_v43 = vld [vmem:[%s422_s0 + $0x38] sm:$0xff]  }
   0x4   :  { %v53_v12 = vmul.f32 %v228_v2, %v338_v1  ;;  %v54_v13 = vmul.f32 %v229_v3, %v338_v1  ;;  %v55_v16 = vmul.f32 %v232_v8, %v338_v1  ;;  %v56_v17 = vmul.f32 %v233_v9, %v338_v1  ;;  %v301_v28 = vld [vmem:[%s422_s0 + $0x20] sm:$0xff]  }
   0x5   :  { %v57_v18 = vmul.f32 %v236_v10, %v338_v1  ;;  %v58_v19 = vmul.f32 %v237_v11, %v338_v1  ;;  %v59_v22 = vmul.f32 %v240_v14, %v338_v1  ;;  %v60_v23 = vmul.f32 %v241_v15, %v338_v1 }
   0x6   :  { %v76_v20 = vadd.f32 %v352_v7, %v53_v12  ;;  %v77_v21 = vadd.f32 %v352_v7, %v54_v13  ;;  %v78_v24 = vadd.f32 %v352_v7, %v55_v16  ;;  %v79_v25 = vadd.f32 %v352_v7, %v56_v17 }
   0x7   :  { %v80_v26 = vadd.f32 %v352_v7, %v57_v18  ;;  %v81_v27 = vadd.f32 %v352_v7, %v58_v19  ;;  %v82_v31 = vadd.f32 %v352_v7, %v59_v22  ;;  %v83_v32 = vadd.f32 %v352_v7, %v60_v23 }
   0x8   :  { %v92_v29 = vmax.f32 %v76_v20, 0.0  ;;  %v93_v30 = vmax.f32 %v77_v21, 0.0  ;;  %v94_v34 = vmax.f32 %v78_v24, 0.0  ;;  %v95_v35 = vmax.f32 %v79_v25, 0.0 }
   0x9   :  { %v96_v36 = vmax.f32 %v80_v26, 0.0  ;;  %v97_v37 = vmax.f32 %v81_v27, 0.0  ;;  %v98_v40 = vmax.f32 %v82_v31, 0.0  ;;  %v99_v41 = vmax.f32 %v83_v32, 0.0 }
   0xa   :  { %v261_v39 = vpack.c.bf16 %v93_v30, %v92_v29  ;;  %v244_v42 = vunpack.c.l.bf16 %v301_v28  ;;  %v266_v44 = vpack.c.bf16 %v95_v35, %v94_v34  ;;  %v245_v46 = vunpack.c.h.bf16 %v301_v28 }
   0xb   :  { %v271_v45 = vpack.c.bf16 %v97_v37, %v96_v36  ;;  %v248_v47 = vunpack.c.l.bf16 %v302_v33  ;;  %v276_v48 = vpack.c.bf16 %v99_v41, %v98_v40  ;;  %v249_v50 = vunpack.c.h.bf16 %v302_v33 }
   0xc   :  { %262 = vst [vmem:[%s425_s3] sm:$0xff] %v261_v39   ;;  %v61_v49 = vmul.f32 %v244_v42, %v338_v1  ;;  %v252_v51 = vunpack.c.l.bf16 %v303_v38  ;;  %305 = vst [vmem:[%s425_s3 + $0x8] sm:$0xff] %v266_v44   ;;  %v62_v52 = vmul.f32 %v245_v46, %v338_v1  ;;  %v253_v54 = vunpack.c.h.bf16 %v303_v38 }
   0xd   :  { %306 = vst [vmem:[%s425_s3 + $0x10] sm:$0xff] %v271_v45   ;;  %v63_v53 = vmul.f32 %v248_v47, %v338_v1  ;;  %v256_v55 = vunpack.c.l.bf16 %v304_v43  ;;  %307 = vst [vmem:[%s425_s3 + $0x18] sm:$0xff] %v276_v48   ;;  %v64_v57 = vmul.f32 %v249_v50, %v338_v1  ;;  %v257_v59 = vunpack.c.h.bf16 %v304_v43 }
   0xe   :  { %v84_v56 = vadd.f32 %v352_v7, %v61_v49  ;;  %v65_v58 = vmul.f32 %v252_v51, %v338_v1  ;;  %v85_v60 = vadd.f32 %v352_v7, %v62_v52  ;;  %v66_v62 = vmul.f32 %v253_v54, %v338_v1 }
   0xf   :  { %v86_v61 = vadd.f32 %v352_v7, %v63_v53  ;;  %v67_v63 = vmul.f32 %v256_v55, %v338_v1  ;;  %v87_v2 = vadd.f32 %v352_v7, %v64_v57  ;;  %v68_v4 = vmul.f32 %v257_v59, %v338_v1 }
  0x10   :  { %v100_v0 = vmax.f32 %v84_v56, 0.0  ;;  %v88_v3 = vadd.f32 %v352_v7, %v65_v58  ;;  %v101_v5 = vmax.f32 %v85_v60, 0.0  ;;  %v89_v8 = vadd.f32 %v352_v7, %v66_v62 }
  0x11   :  { %v102_v6 = vmax.f32 %v86_v61, 0.0  ;;  %v90_v9 = vadd.f32 %v352_v7, %v67_v63  ;;  %v103_v10 = vmax.f32 %v87_v2, 0.0  ;;  %v91_v12 = vadd.f32 %v352_v7, %v68_v4 }
  0x12   :  { %v104_v11 = vmax.f32 %v88_v3, 0.0  ;;  %v281_v13 = vpack.c.bf16 %v101_v5, %v100_v0  ;;  %v105_v14 = vmax.f32 %v89_v8, 0.0 }
  0x13   :  { %v106_v15 = vmax.f32 %v90_v9, 0.0  ;;  %v286_v16 = vpack.c.bf16 %v103_v10, %v102_v6  ;;  %v107_v17 = vmax.f32 %v91_v12, 0.0 }
  0x14   :  { %308 = vst [vmem:[%s425_s3 + $0x20] sm:$0xff] %v281_v13   ;;  %v291_v1 = vpack.c.bf16 %v105_v14, %v104_v11 }
  0x15   :  { %309 = vst [vmem:[%s425_s3 + $0x28] sm:$0xff] %v286_v16   ;;  %v296_v18 = vpack.c.bf16 %v107_v17, %v106_v15 }
  0x16   :  { %310 = vst [vmem:[%s425_s3 + $0x30] sm:$0xff] %v291_v1  }
  0x17   :  { %311 = vst [vmem:[%s425_s3 + $0x38] sm:$0xff] %v296_v18  }

// kernel: basic_block_forward.4
= control target key start
LH: loop header
LB: loop body
LE: loop exit
PB: predicated region body
PF: predicated region fallthrough
CT: control target
= control target key end

     0   :  { %s757_s1 = inlined_call_operand.vmem [shape: bf16[128,128], index: 1, kind: input, shape index: {}]   ;;  %s758_s0 = inlined_call_operand.vmem [shape: bf16[128,128], index: 0, kind: input, shape index: {}]   ;;  %s759_s2 = inlined_call_operand.vmem [shape: bf16[128,128], index: 2, kind: output, shape index: {0}]   ;;  %s760_s3 = inlined_call_operand.vmem [shape: f32[1,8,128], index: 3, kind: output, shape index: {1}]   ;;  %s761_s4 = inlined_call_operand.vmem [shape: f32[1,8,128], index: 4, kind: output, shape index: {2}]  }
   0x1   :  { %v638_v0 = vld [vmem:[%s757_s1 + $0x38] sm:$0xff]   ;;  %v639_v1 = vld [vmem:[%s757_s1 + $0x30] sm:$0xff]   ;;  %v640_v2 = vld [vmem:[%s757_s1 + $0x28] sm:$0xff]  }
   0x2   :  { %590 = vmatprep.subr.bf16.mxu0 %v638_v0  ;;  %622 = vmatprep.subr.bf16.mxu1 %v638_v0  ;;  %v641_v3 = vld [vmem:[%s757_s1 + $0x20] sm:$0xff]   ;;  %v642_v5 = vld [vmem:[%s757_s1 + $0x18] sm:$0xff]   ;;  %v643_v7 = vld [vmem:[%s757_s1 + $0x10] sm:$0xff]  }
   0x3   :  { %591 = vmatpush3.bf16.msra.mxu0 %v638_v0  ;;  %630 = vmatpush3.bf16.msra.mxu1 %v638_v0  ;;  %v646_v4 = vld [vmem:[%s758_s0] sm:$0xff]   ;;  %v644_v8 = vld [vmem:[%s757_s1 + $0x8] sm:$0xff]   ;;  %v648_v12 = vld [vmem:[%s758_s0 + $0x10] sm:$0xff]  }
   0x4   :  { %592 = vmatprep.subr.bf16.mxu0 %v639_v1  ;;  %623 = vmatprep.subr.bf16.mxu1 %v639_v1  ;;  %v650_v6 = vld [vmem:[%s758_s0 + $0x20] sm:$0xff]   ;;  %v647_v10 = vld [vmem:[%s758_s0 + $0x8] sm:$0xff]   ;;  %v652_v13 = vld [vmem:[%s758_s0 + $0x30] sm:$0xff]  }
   0x5   :  { %606 = vmatprep.mubr.bf16.mxu0 %v646_v4  ;;  %614 = vmatprep.mubr.bf16.mxu1 %v650_v6  ;;  %v645_v9 = vld [vmem:[%s757_s1] sm:$0xff]   ;;  %v651_v11 = vld [vmem:[%s758_s0 + $0x28] sm:$0xff]   ;;  %v649_v14 = vld [vmem:[%s758_s0 + $0x18] sm:$0xff]  }
   0x6   :  { %v653_v15 = vld [vmem:[%s758_s0 + $0x38] sm:$0xff]  }
   0x7   :  { %593 = vmatpush3.bf16.msra.mxu0 %v639_v1  ;;  %631 = vmatpush3.bf16.msra.mxu1 %v639_v1 }
   0x8   :  { %594 = vmatprep.subr.bf16.mxu0 %v640_v2  ;;  %624 = vmatprep.subr.bf16.mxu1 %v640_v2 }
   0xb   :  { %595 = vmatpush3.bf16.msra.mxu0 %v640_v2  ;;  %632 = vmatpush3.bf16.msra.mxu1 %v640_v2 }
   0xc   :  { %596 = vmatprep.subr.bf16.mxu0 %v641_v3  ;;  %625 = vmatprep.subr.bf16.mxu1 %v641_v3 }
   0xf   :  { %597 = vmatpush3.bf16.msra.mxu0 %v641_v3  ;;  %633 = vmatpush3.bf16.msra.mxu1 %v641_v3 }
  0x10   :  { %598 = vmatprep.subr.bf16.mxu0 %v642_v5  ;;  %626 = vmatprep.subr.bf16.mxu1 %v642_v5 }
  0x13   :  { %599 = vmatpush3.bf16.msra.mxu0 %v642_v5  ;;  %634 = vmatpush3.bf16.msra.mxu1 %v642_v5 }
  0x14   :  { %600 = vmatprep.subr.bf16.mxu0 %v643_v7  ;;  %627 = vmatprep.subr.bf16.mxu1 %v643_v7 }
  0x17   :  { %601 = vmatpush3.bf16.msra.mxu0 %v643_v7  ;;  %635 = vmatpush3.bf16.msra.mxu1 %v643_v7 }
  0x18   :  { %602 = vmatprep.subr.bf16.mxu0 %v644_v8  ;;  %628 = vmatprep.subr.bf16.mxu1 %v644_v8 }
  0x1b   :  { %603 = vmatpush3.bf16.msra.mxu0 %v644_v8  ;;  %636 = vmatpush3.bf16.msra.mxu1 %v644_v8 }
  0x1c   :  { %604 = vmatprep.subr.bf16.mxu0 %v645_v9  ;;  %629 = vmatprep.subr.bf16.mxu1 %v645_v9 }
  0x1f   :  { %605 = vmatpush3.bf16.msra.mxu0 %v645_v9  ;;  %637 = vmatpush3.bf16.msra.mxu1 %v645_v9 }
  0x22   :  { %607 = vmatmul.mubr.bf16.vlgmr.msra.gmra.mxu0 %v647_v10  ;;  %615 = vmatmul.mubr.bf16.vlgmr.msra.gmra.mxu1 %v651_v11 }
  0x23   :  { %610 = vmatprep.mubr.bf16.mxu0 %v648_v12  ;;  %618 = vmatprep.mubr.bf16.mxu1 %v652_v13 }
  0x2a   :  { %611 = vmatmul.mubr.bf16.gmra.mxu0 %v649_v14  ;;  %619 = vmatmul.mubr.bf16.gmra.mxu1 %v653_v15 }
  0xe2   :  { %v608_v16 = vpop.f32.mrf.mxu0  ;;  %v616_v17 = vpop.f32.mrf.mxu1 }
  0xe3   :  { %v431_v33 = vmul.f32 %v608_v16, %v608_v16  ;;  %v439_v3 = vmul.f32 %v616_v17, %v616_v17 }
  0xe4   :  { %v213_v18 = vpop.f32.mrf.mxu0  ;;  %v245_v19 = vpop.f32.mrf.mxu1 }
  0xe5   :  { %v429_v24 = vmul.f32 %v213_v18, %v213_v18  ;;  %v437_v61 = vmul.f32 %v245_v19, %v245_v19 }
  0xe6   :  { %v609_v20 = vpop.f32.mrf.mxu0  ;;  %v617_v21 = vpop.f32.mrf.mxu1 }
  0xe7   :  { %v535_v22 = vpack.c.bf16 %v609_v20, %v608_v16  ;;  %v555_v23 = vpack.c.bf16 %v617_v21, %v616_v17  ;;  %v432_v38 = vmul.f32 %v609_v20, %v609_v20  ;;  %v440_v6 = vmul.f32 %v617_v21, %v617_v21 }
  0xe8   :  { %v216_v25 = vpop.f32.mrf.mxu0  ;;  %v248_v26 = vpop.f32.mrf.mxu1 }
  0xe9   :  { %567 = vst [vmem:[%s759_s2 + $0x8] sm:$0xff] %v535_v22   ;;  %v530_v27 = vpack.c.bf16 %v216_v25, %v213_v18  ;;  %v407_v28 = vadd.f32 %v216_v25, %v213_v18  ;;  %v430_v29 = vmul.f32 %v216_v25, %v216_v25  ;;  %571 = vst [vmem:[%s759_s2 + $0x28] sm:$0xff] %v555_v23  }
  0xea   :  { %v550_v30 = vpack.c.bf16 %v248_v26, %v245_v19  ;;  %v612_v31 = vpop.f32.mrf.mxu0  ;;  %v620_v32 = vpop.f32.mrf.mxu1  ;;  %v438_v1 = vmul.f32 %v248_v26, %v248_v26 }
  0xeb   :  { %531 = vst [vmem:[%s759_s2] sm:$0xff] %v530_v27   ;;  %v408_v34 = vadd.f32 %v608_v16, %v407_v28  ;;  %v445_v35 = vadd.f32 %v430_v29, %v429_v24  ;;  %v435_v55 = vmul.f32 %v612_v31, %v612_v31  ;;  %v443_v15 = vmul.f32 %v620_v32, %v620_v32 }
  0xec   :  { %570 = vst [vmem:[%s759_s2 + $0x20] sm:$0xff] %v550_v30   ;;  %v229_v36 = vpop.f32.mrf.mxu0  ;;  %v261_v37 = vpop.f32.mrf.mxu1 }
  0xed   :  { %v446_v39 = vadd.f32 %v445_v35, %v431_v33  ;;  %v409_v40 = vadd.f32 %v609_v20, %v408_v34  ;;  %v433_v44 = vmul.f32 %v229_v36, %v229_v36  ;;  %v441_v10 = vmul.f32 %v261_v37, %v261_v37 }
  0xee   :  { %v613_v41 = vpop.f32.mrf.mxu0  ;;  %v621_v42 = vpop.f32.mrf.mxu1 }
  0xef   :  { %v410_v43 = vadd.f32 %v409_v40, %v229_v36  ;;  %v447_v45 = vadd.f32 %v446_v39, %v432_v38  ;;  %v545_v46 = vpack.c.bf16 %v613_v41, %v612_v31  ;;  %v565_v48 = vpack.c.bf16 %v621_v42, %v620_v32 }
  0xf0   :  { %v232_v47 = vpop.f32.mrf.mxu0  ;;  %v264_v49 = vpop.f32.mrf.mxu1  ;;  %v436_v58 = vmul.f32 %v613_v41, %v613_v41  ;;  %v444_v20 = vmul.f32 %v621_v42, %v621_v42 }
  0xf1   :  { %v448_v50 = vadd.f32 %v447_v45, %v433_v44  ;;  %569 = vst [vmem:[%s759_s2 + $0x18] sm:$0xff] %v545_v46   ;;  %v540_v51 = vpack.c.bf16 %v232_v47, %v229_v36  ;;  %v411_v52 = vadd.f32 %v410_v43, %v232_v47  ;;  %v434_v53 = vmul.f32 %v232_v47, %v232_v47 }
  0xf2   :  { %573 = vst [vmem:[%s759_s2 + $0x38] sm:$0xff] %v565_v48   ;;  %v560_v54 = vpack.c.bf16 %v264_v49, %v261_v37  ;;  %v442_v14 = vmul.f32 %v264_v49, %v264_v49 }
  0xf3   :  { %568 = vst [vmem:[%s759_s2 + $0x10] sm:$0xff] %v540_v51   ;;  %v412_v56 = vadd.f32 %v612_v31, %v411_v52  ;;  %v449_v57 = vadd.f32 %v448_v50, %v434_v53 }
  0xf4   :  { %572 = vst [vmem:[%s759_s2 + $0x30] sm:$0xff] %v560_v54  }
  0xf5   :  { %v413_v59 = vadd.f32 %v613_v41, %v412_v56  ;;  %v450_v60 = vadd.f32 %v449_v57, %v435_v55 }
  0xf7   :  { %v451_v62 = vadd.f32 %v450_v60, %v436_v58  ;;  %v414_v63 = vadd.f32 %v413_v59, %v245_v19 }
  0xf9   :  { %v415_v0 = vadd.f32 %v414_v63, %v248_v26  ;;  %v452_v2 = vadd.f32 %v451_v62, %v437_v61 }
  0xfb   :  { %v416_v4 = vadd.f32 %v616_v17, %v415_v0  ;;  %v453_v5 = vadd.f32 %v452_v2, %v438_v1 }
  0xfd   :  { %v454_v7 = vadd.f32 %v453_v5, %v439_v3  ;;  %v417_v8 = vadd.f32 %v617_v21, %v416_v4 }
  0xff   :  { %v418_v9 = vadd.f32 %v417_v8, %v261_v37  ;;  %v455_v11 = vadd.f32 %v454_v7, %v440_v6 }
 0x101   :  { %v456_v12 = vadd.f32 %v455_v11, %v441_v10  ;;  %v419_v13 = vadd.f32 %v418_v9, %v264_v49 }
 0x103   :  { %v420_v16 = vadd.f32 %v620_v32, %v419_v13  ;;  %v457_v18 = vadd.f32 %v456_v12, %v442_v14 }
 0x105   :  { %v421_v19 = vadd.f32 %v621_v42, %v420_v16  ;;  %v458_v22 = vadd.f32 %v457_v18, %v443_v15 }
 0x107   :  { %v422_v23 = vrot.slane %v421_v19, 4  ;;  %v459_v24 = vadd.f32 %v458_v22, %v444_v20 }
 0x109   :  { %v423_v25 = vadd.f32 %v422_v23, %v421_v19  ;;  %v460_v17 = vrot.slane %v459_v24, 4 }
 0x10b   :  { %v424_v26 = vrot.slane %v423_v25, 2  ;;  %v461_v27 = vadd.f32 %v460_v17, %v459_v24 }
 0x10d   :  { %v425_v28 = vadd.f32 %v424_v26, %v423_v25  ;;  %v462_v21 = vrot.slane %v461_v27, 2 }
 0x10f   :  { %v426_v29 = vrot.slane %v425_v28, 1  ;;  %v463_v30 = vadd.f32 %v462_v21, %v461_v27 }
 0x111   :  { %v427_v31 = vadd.f32 %v426_v29, %v425_v28  ;;  %v464_v33 = vrot.slane %v463_v30, 1 }
 0x113   :  { %428 = vst [vmem:[%s760_s3] sm:$0xff] %v427_v31  ;;  %v465_v32 = vadd.f32 %v464_v33, %v463_v30 }
 0x115   :  { %466 = vst [vmem:[%s761_s4] sm:$0xff] %v465_v32 }

// kernel: basic_block_forward.7
= control target key start
LH: loop header
LB: loop body
LE: loop exit
PB: predicated region body
PF: predicated region fallthrough
CT: control target
= control target key end

     0   :  { %s632_s0 = inlined_call_operand.vmem [shape: bf16[160,128], index: 0, kind: input, shape index: {}]   ;;  %s633_s1 = inlined_call_operand.vmem [shape: bf16[160,128], index: 1, kind: input, shape index: {}]   ;;  %s634_s2 = inlined_call_operand.vmem [shape: f32[1,128], index: 2, kind: input, shape index: {}]   ;;  %s635_s3 = inlined_call_operand.vmem [shape: f32[1,128], index: 3, kind: input, shape index: {}]   ;;  %s636_s4 = inlined_call_operand.vmem [shape: f32[1,128], index: 4, kind: input, shape index: {}]   ;;  %s637_s5 = inlined_call_operand.vmem [shape: f32[1,128], index: 5, kind: input, shape index: {}]   ;;  %s638_s6 = inlined_call_operand.vmem [shape: f32[160,128], index: 6, kind: output, shape index: {}]  }
   0x1   :  { %v280_v0 = vld [vmem:[%s632_s0] sm:$0xff]   ;;  %v359_v9 = vld [vmem:[%s632_s0 + $0x8] sm:$0xff]   ;;  %v360_v20 = vld [vmem:[%s632_s0 + $0x10] sm:$0xff]  }
   0x2   :  { %v418_v1 = vld [vmem:[%s634_s2] ss:$0 sm:$0xff]  ;;  %v281_v2 = vunpack.c.l.bf16 %v280_v0  ;;  %v282_v5 = vunpack.c.h.bf16 %v280_v0  ;;  %v368_v10 = vld [vmem:[%s633_s1 + $0x8] sm:$0xff]   ;;  %v285_v14 = vunpack.c.l.bf16 %v359_v9  ;;  %v286_v18 = vunpack.c.h.bf16 %v359_v9  ;;  %v369_v21 = vld [vmem:[%s633_s1 + $0x10] sm:$0xff]  }
   0x3   :  { %v320_v3 = vld [vmem:[%s633_s1] sm:$0xff]   ;;  %v325_v15 = vunpack.c.l.bf16 %v368_v10  ;;  %v326_v19 = vunpack.c.h.bf16 %v368_v10  ;;  %v289_v32 = vunpack.c.l.bf16 %v360_v20  ;;  %v329_v33 = vunpack.c.l.bf16 %v369_v21  ;;  %v361_v42 = vld [vmem:[%s632_s0 + $0x18] sm:$0xff]  }
   0x4   :  { %v426_v4 = vld [vmem:[%s636_s4] ss:$0 sm:$0xff]  ;;  %v321_v7 = vunpack.c.l.bf16 %v320_v3  ;;  %v322_v8 = vunpack.c.h.bf16 %v320_v3  ;;  %v70_v11 = vmul.f32 %v281_v2, %v418_v1  ;;  %v71_v13 = vmul.f32 %v282_v5, %v418_v1  ;;  %v370_v43 = vld [vmem:[%s633_s1 + $0x18] sm:$0xff]  }
   0x5   :  { %v431_v6 = vld [vmem:[%s635_s3] ss:$0 sm:$0xff]  ;;  %v72_v24 = vmul.f32 %v285_v14, %v418_v1  ;;  %v166_v25 = vmul.f32 %v325_v15, %v426_v4  ;;  %v73_v28 = vmul.f32 %v286_v18, %v418_v1  ;;  %v167_v29 = vmul.f32 %v326_v19, %v426_v4  ;;  %v363_v14 = vld [vmem:[%s632_s0 + $0x28] sm:$0xff]  }
   0x6   :  { %v443_v12 = vld [vmem:[%s637_s5] ss:$0 sm:$0xff]  ;;  %v164_v16 = vmul.f32 %v321_v7, %v426_v4  ;;  %v165_v17 = vmul.f32 %v322_v8, %v426_v4  ;;  %v97_v22 = vadd.f32 %v431_v6, %v70_v11  ;;  %v98_v23 = vadd.f32 %v431_v6, %v71_v13  ;;  %v372_v19 = vld [vmem:[%s633_s1 + $0x28] sm:$0xff]  }
   0x7   :  { %v99_v30 = vadd.f32 %v431_v6, %v72_v24  ;;  %v193_v31 = vadd.f32 %v443_v12, %v166_v25  ;;  %v100_v36 = vadd.f32 %v431_v6, %v73_v28  ;;  %v194_v37 = vadd.f32 %v443_v12, %v167_v29  ;;  %v362_v52 = vld [vmem:[%s632_s0 + $0x20] sm:$0xff]  }
   0x8   :  { %v191_v26 = vadd.f32 %v443_v12, %v164_v16  ;;  %v192_v27 = vadd.f32 %v443_v12, %v165_v17  ;;  %v74_v39 = vmul.f32 %v289_v32, %v418_v1  ;;  %v168_v40 = vmul.f32 %v329_v33, %v426_v4  ;;  %v371_v57 = vld [vmem:[%s633_s1 + $0x20] sm:$0xff]   ;;  %v364_v32 = vld [vmem:[%s632_s0 + $0x30] sm:$0xff]  }
   0x9   :  { %v213_v38 = vadd.f32 %v193_v31, %v99_v30  ;;  %v290_v41 = vunpack.c.h.bf16 %v360_v20  ;;  %v214_v46 = vadd.f32 %v194_v37, %v100_v36  ;;  %v330_v47 = vunpack.c.h.bf16 %v369_v21  ;;  %v373_v33 = vld [vmem:[%s633_s1 + $0x30] sm:$0xff]  }
   0xa   :  { %v211_v34 = vadd.f32 %v191_v26, %v97_v22  ;;  %v212_v35 = vadd.f32 %v192_v27, %v98_v23  ;;  %v101_v49 = vadd.f32 %v431_v6, %v74_v39  ;;  %v195_v50 = vadd.f32 %v443_v12, %v168_v40 }
   0xb   :  { %v233_v48 = vmax.f32 %v213_v38, 0.0  ;;  %v75_v51 = vmul.f32 %v290_v41, %v418_v1  ;;  %v234_v53 = vmax.f32 %v214_v46, 0.0  ;;  %v169_v54 = vmul.f32 %v330_v47, %v426_v4  ;;  %v365_v46 = vld [vmem:[%s632_s0 + $0x38] sm:$0xff]  }
   0xc   :  { %v231_v44 = vmax.f32 %v211_v34, 0.0  ;;  %v232_v45 = vmax.f32 %v212_v35, 0.0  ;;  %v293_v55 = vunpack.c.l.bf16 %v361_v42  ;;  %v333_v56 = vunpack.c.l.bf16 %v370_v43 }
   0xd   :  { %253 = vst [vmem:[%s638_s6 + $0x10] sm:$0xff] %v233_v48  ;;  %v215_v58 = vadd.f32 %v195_v50, %v101_v49  ;;  %v102_v59 = vadd.f32 %v431_v6, %v75_v51  ;;  %v294_v60 = vunpack.c.h.bf16 %v361_v42  ;;  %v334_v61 = vunpack.c.h.bf16 %v370_v43  ;;  %254 = vst [vmem:[%s638_s6 + $0x18] sm:$0xff] %v234_v53 }
   0xe   :  { %251 = vst [vmem:[%s638_s6] sm:$0xff] %v231_v44  ;;  %252 = vst [vmem:[%s638_s6 + $0x8] sm:$0xff] %v232_v45  ;;  %v196_v62 = vadd.f32 %v443_v12, %v169_v54  ;;  %v76_v63 = vmul.f32 %v293_v55, %v418_v1  ;;  %v170_v0 = vmul.f32 %v333_v56, %v426_v4  ;;  %v297_v2 = vunpack.c.l.bf16 %v362_v52  ;;  %v374_v55 = vld [vmem:[%s633_s1 + $0x38] sm:$0xff]  }
   0xf   :  { %v235_v3 = vmax.f32 %v215_v58, 0.0  ;;  %v77_v5 = vmul.f32 %v294_v60, %v418_v1  ;;  %v171_v7 = vmul.f32 %v334_v61, %v426_v4  ;;  %v337_v8 = vunpack.c.l.bf16 %v371_v57 }
  0x10   :  { %v216_v9 = vadd.f32 %v196_v62, %v102_v59  ;;  %v103_v10 = vadd.f32 %v431_v6, %v76_v63  ;;  %v197_v11 = vadd.f32 %v443_v12, %v170_v0  ;;  %v78_v13 = vmul.f32 %v297_v2, %v418_v1 }
  0x11   :  { %255 = vst [vmem:[%s638_s6 + $0x20] sm:$0xff] %v235_v3  ;;  %v104_v15 = vadd.f32 %v431_v6, %v77_v5  ;;  %v198_v16 = vadd.f32 %v443_v12, %v171_v7  ;;  %v172_v17 = vmul.f32 %v337_v8, %v426_v4  ;;  %v298_v18 = vunpack.c.h.bf16 %v362_v52  ;;  %v366_v7 = vld [vmem:[%s632_s0 + $0x40] sm:$0xff]  }
  0x12   :  { %v236_v20 = vmax.f32 %v216_v9, 0.0  ;;  %v217_v21 = vadd.f32 %v197_v11, %v103_v10  ;;  %v105_v22 = vadd.f32 %v431_v6, %v78_v13  ;;  %v338_v23 = vunpack.c.h.bf16 %v371_v57  ;;  %v375_v13 = vld [vmem:[%s633_s1 + $0x40] sm:$0xff]  }
  0x13   :  { %v218_v24 = vadd.f32 %v198_v16, %v104_v15  ;;  %v199_v25 = vadd.f32 %v443_v12, %v172_v17  ;;  %v79_v26 = vmul.f32 %v298_v18, %v418_v1  ;;  %v301_v27 = vunpack.c.l.bf16 %v363_v14 }
  0x14   :  { %256 = vst [vmem:[%s638_s6 + $0x28] sm:$0xff] %v236_v20  ;;  %v237_v28 = vmax.f32 %v217_v21, 0.0  ;;  %v173_v29 = vmul.f32 %v338_v23, %v426_v4  ;;  %v341_v30 = vunpack.c.l.bf16 %v372_v19  ;;  %v302_v31 = vunpack.c.h.bf16 %v363_v14 }
  0x15   :  { %v238_v34 = vmax.f32 %v218_v24, 0.0  ;;  %v219_v35 = vadd.f32 %v199_v25, %v105_v22  ;;  %v106_v36 = vadd.f32 %v431_v6, %v79_v26  ;;  %v80_v37 = vmul.f32 %v301_v27, %v418_v1  ;;  %v367_v26 = vld [vmem:[%s632_s0 + $0x48] sm:$0xff]  }
  0x16   :  { %257 = vst [vmem:[%s638_s6 + $0x30] sm:$0xff] %v237_v28  ;;  %v200_v38 = vadd.f32 %v443_v12, %v173_v29  ;;  %v174_v39 = vmul.f32 %v341_v30, %v426_v4  ;;  %v81_v40 = vmul.f32 %v302_v31, %v418_v1  ;;  %v342_v41 = vunpack.c.h.bf16 %v372_v19  ;;  %v376_v27 = vld [vmem:[%s633_s1 + $0x48] sm:$0xff]  }
  0x17   :  { %258 = vst [vmem:[%s638_s6 + $0x38] sm:$0xff] %v238_v34  ;;  %v239_v42 = vmax.f32 %v219_v35, 0.0  ;;  %v107_v43 = vadd.f32 %v431_v6, %v80_v37  ;;  %v305_v44 = vunpack.c.l.bf16 %v364_v32  ;;  %v345_v45 = vunpack.c.l.bf16 %v373_v33 }
  0x18   :  { %v220_v47 = vadd.f32 %v200_v38, %v106_v36  ;;  %v201_v48 = vadd.f32 %v443_v12, %v174_v39  ;;  %v108_v49 = vadd.f32 %v431_v6, %v81_v40  ;;  %v175_v50 = vmul.f32 %v342_v41, %v426_v4 }
  0x19   :  { %259 = vst [vmem:[%s638_s6 + $0x40] sm:$0xff] %v239_v42  ;;  %v82_v51 = vmul.f32 %v305_v44, %v418_v1  ;;  %v176_v52 = vmul.f32 %v345_v45, %v426_v4  ;;  %v306_v53 = vunpack.c.h.bf16 %v364_v32  ;;  %v346_v54 = vunpack.c.h.bf16 %v373_v33 }
  0x1a   :  { %v240_v56 = vmax.f32 %v220_v47, 0.0  ;;  %v221_v57 = vadd.f32 %v201_v48, %v107_v43  ;;  %v202_v58 = vadd.f32 %v443_v12, %v175_v50  ;;  %v309_v59 = vunpack.c.l.bf16 %v365_v46 }
  0x1b   :  { %v109_v60 = vadd.f32 %v431_v6, %v82_v51  ;;  %v203_v61 = vadd.f32 %v443_v12, %v176_v52  ;;  %v83_v62 = vmul.f32 %v306_v53, %v418_v1  ;;  %v177_v63 = vmul.f32 %v346_v54, %v426_v4 }
  0x1c   :  { %260 = vst [vmem:[%s638_s6 + $0x48] sm:$0xff] %v240_v56  ;;  %v241_v0 = vmax.f32 %v221_v57, 0.0  ;;  %v222_v2 = vadd.f32 %v202_v58, %v108_v49  ;;  %v84_v3 = vmul.f32 %v309_v59, %v418_v1  ;;  %v349_v5 = vunpack.c.l.bf16 %v374_v55 }
  0x1d   :  { %v223_v8 = vadd.f32 %v203_v61, %v109_v60  ;;  %v110_v9 = vadd.f32 %v431_v6, %v83_v62  ;;  %v204_v10 = vadd.f32 %v443_v12, %v177_v63  ;;  %v310_v11 = vunpack.c.h.bf16 %v365_v46 }
  0x1e   :  { %261 = vst [vmem:[%s638_s6 + $0x50] sm:$0xff] %v241_v0  ;;  %v242_v14 = vmax.f32 %v222_v2, 0.0  ;;  %v111_v15 = vadd.f32 %v431_v6, %v84_v3  ;;  %v178_v16 = vmul.f32 %v349_v5, %v426_v4  ;;  %v350_v17 = vunpack.c.h.bf16 %v374_v55 }
  0x1f   :  { %v243_v18 = vmax.f32 %v223_v8, 0.0  ;;  %v224_v19 = vadd.f32 %v204_v10, %v110_v9  ;;  %v85_v20 = vmul.f32 %v310_v11, %v418_v1  ;;  %v313_v21 = vunpack.c.l.bf16 %v366_v7 }
  0x20   :  { %262 = vst [vmem:[%s638_s6 + $0x58] sm:$0xff] %v242_v14  ;;  %v205_v22 = vadd.f32 %v443_v12, %v178_v16  ;;  %v179_v23 = vmul.f32 %v350_v17, %v426_v4  ;;  %v353_v24 = vunpack.c.l.bf16 %v375_v13  ;;  %v314_v25 = vunpack.c.h.bf16 %v366_v7 }
  0x21   :  { %263 = vst [vmem:[%s638_s6 + $0x60] sm:$0xff] %v243_v18  ;;  %v244_v28 = vmax.f32 %v224_v19, 0.0  ;;  %v112_v29 = vadd.f32 %v431_v6, %v85_v20  ;;  %v86_v30 = vmul.f32 %v313_v21, %v418_v1  ;;  %v354_v31 = vunpack.c.h.bf16 %v375_v13 }
  0x22   :  { %v225_v32 = vadd.f32 %v205_v22, %v111_v15  ;;  %v206_v33 = vadd.f32 %v443_v12, %v179_v23  ;;  %v180_v34 = vmul.f32 %v353_v24, %v426_v4  ;;  %v87_v35 = vmul.f32 %v314_v25, %v418_v1 }
  0x23   :  { %264 = vst [vmem:[%s638_s6 + $0x68] sm:$0xff] %v244_v28  ;;  %v113_v36 = vadd.f32 %v431_v6, %v86_v30  ;;  %v181_v37 = vmul.f32 %v354_v31, %v426_v4  ;;  %v317_v38 = vunpack.c.l.bf16 %v367_v26  ;;  %v357_v39 = vunpack.c.l.bf16 %v376_v27 }
  0x24   :  { %v245_v40 = vmax.f32 %v225_v32, 0.0  ;;  %v226_v41 = vadd.f32 %v206_v33, %v112_v29  ;;  %v207_v42 = vadd.f32 %v443_v12, %v180_v34  ;;  %v114_v43 = vadd.f32 %v431_v6, %v87_v35 }
  0x25   :  { %v208_v44 = vadd.f32 %v443_v12, %v181_v37  ;;  %v88_v45 = vmul.f32 %v317_v38, %v418_v1  ;;  %v182_v46 = vmul.f32 %v357_v39, %v426_v4  ;;  %v318_v47 = vunpack.c.h.bf16 %v367_v26 }
  0x26   :  { %265 = vst [vmem:[%s638_s6 + $0x70] sm:$0xff] %v245_v40  ;;  %v246_v48 = vmax.f32 %v226_v41, 0.0  ;;  %v227_v49 = vadd.f32 %v207_v42, %v113_v36  ;;  %v358_v50 = vunpack.c.h.bf16 %v376_v27 }
  0x27   :  { %v228_v51 = vadd.f32 %v208_v44, %v114_v43  ;;  %v115_v52 = vadd.f32 %v431_v6, %v88_v45  ;;  %v209_v53 = vadd.f32 %v443_v12, %v182_v46  ;;  %v89_v54 = vmul.f32 %v318_v47, %v418_v1 }
  0x28   :  { %266 = vst [vmem:[%s638_s6 + $0x78] sm:$0xff] %v246_v48  ;;  %v247_v55 = vmax.f32 %v227_v49, 0.0  ;;  %v183_v56 = vmul.f32 %v358_v50, %v426_v4 }
  0x29   :  { %v248_v57 = vmax.f32 %v228_v51, 0.0  ;;  %v229_v58 = vadd.f32 %v209_v53, %v115_v52  ;;  %v116_v59 = vadd.f32 %v431_v6, %v89_v54 }
  0x2a   :  { %267 = vst [vmem:[%s638_s6 + $0x80] sm:$0xff] %v247_v55  ;;  %v210_v60 = vadd.f32 %v443_v12, %v183_v56 }
  0x2b   :  { %268 = vst [vmem:[%s638_s6 + $0x88] sm:$0xff] %v248_v57  ;;  %v249_v1 = vmax.f32 %v229_v58, 0.0 }
  0x2c   :  { %v230_v61 = vadd.f32 %v210_v60, %v116_v59 }
  0x2d   :  { %269 = vst [vmem:[%s638_s6 + $0x90] sm:$0xff] %v249_v1 }
  0x2e   :  { %v250_v4 = vmax.f32 %v230_v61, 0.0 }
  0x30   :  { %270 = vst [vmem:[%s638_s6 + $0x98] sm:$0xff] %v250_v4 }

// kernel: basic_block_forward.6
= control target key start
LH: loop header
LB: loop body
LE: loop exit
PB: predicated region body
PF: predicated region fallthrough
CT: control target
= control target key end

     0   :  { %s3695_s13 = smov 0   ;;  %s4448_s0 = inlined_call_operand.vmem [shape: bf16[2,104,128], index: 0, kind: input, shape index: {}]   ;;  %s4449_s1 = inlined_call_operand.vmem [shape: bf16[1152,128], index: 1, kind: input, shape index: {}]   ;;  %s4450_s2 = inlined_call_operand.vmem [shape: f32[1,80,1], index: 2, kind: input, shape index: {}]   ;;  %s4451_s3 = inlined_call_operand.vmem [shape: bf16[2,80,128], index: 3, kind: input, shape index: {}]   ;;  %s4452_s4 = inlined_call_operand.vmem [shape: bf16[128,128], index: 4, kind: input, shape index: {}]   ;;  %s4453_s5 = inlined_call_operand.vmem [shape: bf16[2,80,128], index: 5, kind: output, shape index: {0}]   ;;  %s4454_s6 = inlined_call_operand.vmem [shape: f32[2,8,128], index: 6, kind: output, shape index: {1}]   ;;  %s4455_s7 = inlined_call_operand.vmem [shape: f32[2,8,128], index: 7, kind: output, shape index: {2}]   ;;  %s4456_s8 = inlined_call_operand.vmem [shape: bf16[2,80,128], index: 8, kind: output, shape index: {3}]   ;;  %s4457_s9 = inlined_call_operand.vmem [shape: f32[2,8,128], index: 9, kind: output, shape index: {4}]   ;;  %s4458_s10 = inlined_call_operand.vmem [shape: f32[2,8,128], index: 10, kind: output, shape index: {5}]  }
   0x1 LB: > { %s2795_s14 = sadd.s32 4294967295, %s3635_s13   ;;  %p2799_p0 = scmp.ge.s32.totalorder %s3635_s13, 1  ;;  %s3635_s13 = sphi %s3695_s13, %s21_s13  }
   0x2   : > { %p333_p1 = scmp.lt.s32.totalorder %s3635_s13, 3 }
   0x4   : > { %p334_p2 = pnand %p2799_p0, %p333_p1 }
   0x5   : > { %p397_p3 = scmp.lt.s32.totalorder (!%p334_p2), %s2795_s14, 1 }
   0x6   : > { %337 = sbr.rel (%p334_p2) target bundleno = 454 (0x1c6), region = 40 }
   0xb   : > { %v3521_v0 = vld [vmem:[%s4449_s1 + $0x78] sm:$0xff]   ;;  %v3637_v1 = vmov 0.0   ;;  %v3523_v3 = vld [vmem:[%s4449_s1 + $0x70] sm:$0xff]   ;;  %vm3638_vm0 = vmmov 0   ;;  %s4460_s14 = smov (!%p397_p3, %s2795_s14), 1  ;;  %v3525_v5 = vld [vmem:[%s4449_s1 + $0x68] sm:$0xff]  }
   0xc   : > { %3146 = vmatprep.subr.bf16.mxu0 %v3637_v1  ;;  %3182 = vmatprep.subr.bf16.mxu1 %v3637_v1  ;;  %v3522_v2 = vld [vmem:[%s4449_s1 + $0x38] sm:$0xff]   ;;  %v3524_v4 = vld [vmem:[%s4449_s1 + $0x30] sm:$0xff]   ;;  %v3526_v6 = vld [vmem:[%s4449_s1 + $0x28] sm:$0xff]   ;;  %s3506_s27 = smul.u32 52, %s4460_s14  ;;  %vm505_vm1 = vsmask.f32 7424 }
   0xd   : > { %3147 = vmatpush3.bf16.msra.mxu0 %v3521_v0  ;;  %3162 = vmatprep.mubr.msk.bf16.mxu0 %vm3638_vm0, %v3637_v1  ;;  %v3527_v7 = vld [vmem:[%s4449_s1 + $0x60] sm:$0xff]   ;;  %v3529_v9 = vld [vmem:[%s4449_s1 + $0x58] sm:$0xff]   ;;  %v3531_v13 = vld [vmem:[%s4449_s1 + $0x50] sm:$0xff]   ;;  %vm822_vm2 = vcmask 1046528   ;;  %vm1192_vm3 = vsmask.f32 6400 }
   0xe   : > { %3183 = vmatpush3.bf16.msra.mxu1 %v3522_v2  ;;  %3148 = vmatprep.subr.bf16.mxu0 %v3637_v1  ;;  %v3528_v8 = vld [vmem:[%s4449_s1 + $0x20] sm:$0xff]   ;;  %s3745_s16 = scalar_lea.vmem %s4448_s0, %s3506_s27  ;;  %v3530_v10 = vld [vmem:[%s4449_s1 + $0x18] sm:$0xff]   ;;  %v3532_v16 = vld [vmem:[%s4449_s1 + $0x10] sm:$0xff]   ;;  %s4021_s27 = smul.u32 40, %s4460_s14  ;;  %vm1402_vm4 = vcmask 1045504   ;;  %vm1982_vm6 = vcmask 1044480  }
   0xf   : > { %3184 = vmatprep.subr.bf16.mxu1 %v3637_v1  ;;  %3198 = vmatprep.mubr.msk.bf16.mxu1 %vm3638_vm0, %v3637_v1  ;;  %v434_v11 = vld [vmem:[%s3745_s16] sm:$0xf]  ;;  %v3757_v12 = vld [vmem:[%s3745_s16 + $0x4] sm:$0xf]  ;;  %v3764_v15 = vld [vmem:[%s3745_s16 + $0x8] sm:$0xff]  }
  0x10   : > { %v2808_v14 = vcombine.low %v434_v11, %v3757_v12  ;;  %v3533_v18 = vld [vmem:[%s4449_s1 + $0x48] sm:$0xff]   ;;  %v514_v21 = vshll.u32 %v3764_v15, 16  ;;  %v3535_v23 = vld [vmem:[%s4449_s1 + $0x40] sm:$0xff]   ;;  %v3787_v27 = vld [vmem:[%s3745_s16 + $0x10] sm:$0xff]   ;;  %v518_v30 = vshrl.u32 %v3764_v15, 16  ;;  %s4036_s12 = scalar_lea.vmem %s4451_s3, %s4021_s27  ;;  %s4392_s25 = scalar_lea.vmem %s4456_s8, %s4021_s27 }
  0x11   : > { %3149 = vmatpush3.bf16.msra.mxu0 %v3523_v3  ;;  %v3534_v22 = vld [vmem:[%s4449_s1 + $0x8] sm:$0xff]   ;;  %v3536_v24 = vld [vmem:[%s4449_s1] sm:$0xff]   ;;  %v3539_v28 = vld [vmem:[%s4449_s1 + $0xb8] sm:$0xff]   ;;  %v522_v31 = vshll.u32 %v3787_v27, 16  ;;  %v526_v40 = vshrl.u32 %v3787_v27, 16  ;;  %s4398_s29 = scalar_lea.vmem %s4453_s5, %s4021_s27  ;;  %s2803_s27 = sshll.u32 %s4460_s14, 3 }
  0x12   : > { %3185 = vmatpush3.bf16.msra.mxu1 %v3524_v4  ;;  %3150 = vmatprep.subr.bf16.mxu0 %v3637_v1  ;;  %v509_v17 = vshll.u32 %v2808_v14, 16  ;;  %v507_v19 = vshrl.u32 %v2808_v14, 16  ;;  %v516_v26 = vrot.slane %v514_v21, 1  ;;  %v3540_v32 = vld [vmem:[%s4449_s1 + $0xf8] sm:$0xff]   ;;  %v3541_v33 = vld [vmem:[%s4449_s1 + $0xb0] sm:$0xff]   ;;  %v3544_v39 = vld [vmem:[%s4449_s1 + $0xa8] sm:$0xff]   ;;  %s428_s15 = scalar_lea.vmem %s4457_s9, %s2803_s27  ;;  %s415_s19 = scalar_lea.vmem %s4454_s6, %s2803_s27 }
  0x13   : > { %3186 = vmatprep.subr.bf16.mxu1 %v3637_v1  ;;  %v524_v35 = vrot.slane %v522_v31, 1  ;;  %v3806_v36 = vld [vmem:[%s3745_s16 + $0x18] sm:$0xff]   ;;  %v3543_v37 = vld [vmem:[%s4449_s1 + $0xf0] sm:$0xff]   ;;  %v3545_v42 = vld [vmem:[%s4449_s1 + $0xe8] sm:$0xff]   ;;  %v826_v21 = vrot.slane %v3787_v27, 1  ;;  %s432_s21 = scalar_lea.vmem %s4458_s10, %s2803_s27  ;;  %s419_s24 = scalar_lea.vmem %s4455_s7, %s2803_s27 }
  0x14   : > { %v511_v20 = vrot.slane %v509_v17, 1  ;;  %v520_v34 = vor.u32 %v518_v30, %v516_v26  ;;  %v530_v41 = vshll.u32 %v3806_v36, 16  ;;  %v3547_v43 = vld [vmem:[%s4449_s1 + $0xa0] sm:$0xff]   ;;  %v3549_v48 = vld [vmem:[%s4449_s1 + $0x98] sm:$0xff]   ;;  %v534_v50 = vshrl.u32 %v3806_v36, 16  ;;  %v3552_v56 = vld [vmem:[%s4449_s1 + $0x90] sm:$0xff]  }
  0x15   : > { %3151 = vmatpush3.bf16.msra.mxu0 %v3525_v5  ;;  %v528_v44 = vor.u32 %v526_v40, %v524_v35  ;;  %v3548_v46 = vld [vmem:[%s4449_s1 + $0xe0] sm:$0xff]   ;;  %v3550_v52 = vld [vmem:[%s4449_s1 + $0xd8] sm:$0xff]   ;;  %v3856_v53 = vld [vmem:[%s3745_s16 + $0x28] ss:$0 sps:$4 sm:$0x11]  }
  0x16   : > { %3187 = vmatpush3.bf16.msra.mxu1 %v3526_v6  ;;  %3152 = vmatprep.subr.bf16.mxu0 %v3637_v1  ;;  %v512_v25 = vor.u32 %v511_v20, %v507_v19  ;;  %v525_v38 = vsel %vm505_vm1, %v520_v34, %v524_v35  ;;  %v532_v45 = vrot.slane %v530_v41, 1  ;;  %v3836_v47 = vld [vmem:[%s3745_s16 + $0x20] sm:$0xff]   ;;  %v3553_v57 = vld [vmem:[%s4449_s1 + $0xd0] sm:$0xff]   ;;  %v546_v60 = vshll.u32 %v3856_v53, 16  ;;  %v3554_v61 = vld [vmem:[%s4449_s1 + $0x88] sm:$0xff]  }
  0x17   : > { %3188 = vmatprep.subr.bf16.mxu1 %v3637_v1  ;;  %v538_v51 = vshll.u32 %v3836_v47, 16  ;;  %v542_v59 = vshrl.u32 %v3836_v47, 16  ;;  %v3556_v62 = vld [vmem:[%s4449_s1 + $0xc8] sm:$0xff]   ;;  %v3557_v63 = vld [vmem:[%s4449_s1 + $0x80] sm:$0xff]   ;;  %v3562_v17 = vld [vmem:[%s4449_s1 + $0x138] sm:$0xff]  }
  0x18   : > { %v517_v29 = vsel %vm505_vm1, %v512_v25, %v516_v26  ;;  %v533_v49 = vsel %vm505_vm1, %v528_v44, %v532_v45  ;;  %v536_v54 = vor.u32 %v534_v50, %v532_v45  ;;  %v548_v2 = vrot.slane %v546_v60, 1  ;;  %v3558_v3 = vld [vmem:[%s4449_s1 + $0xc0] sm:$0xff]   ;;  %v3897_v6 = vld [vmem:[%s3745_s16 + $0x8] sm:$0xf]  ;;  %v3564_v20 = vld [vmem:[%s4449_s1 + $0x130] sm:$0xff]  }
  0x19   : > { %3153 = vmatpush3.bf16.msra.mxu0 %v3527_v7  ;;  %v540_v55 = vrot.slane %v538_v51, 1  ;;  %v802_v4 = vld [vmem:[%s3745_s16] sm:$0xe]  ;;  %v970_v5 = vld [vmem:[%s3745_s16 + $0x4] sm:$0xe]  ;;  %v3567_v25 = vld [vmem:[%s4449_s1 + $0x128] sm:$0xff]  }
  0x1a   : > { %3189 = vmatpush3.bf16.msra.mxu1 %v3528_v8  ;;  %3154 = vmatprep.subr.bf16.mxu0 %v3637_v1  ;;  %v2830_v8 = vcombine.low %v802_v4, %v3757_v12  ;;  %v824_v12 = vrot.slane %v3764_v15, 1  ;;  %v3568_v26 = vld [vmem:[%s4449_s1 + $0x168] sm:$0xff]   ;;  %v3570_v30 = vld [vmem:[%s4449_s1 + $0x120] sm:$0xff]   ;;  %v3572_v34 = vld [vmem:[%s4449_s1 + $0x118] sm:$0xff]   ;;  %vm1772_vm5 = vsmask.f32 5376 }
  0x1b   : > { %3190 = vmatprep.subr.bf16.mxu1 %v3637_v1  ;;  %v541_v58 = vsel %vm505_vm1, %v536_v54, %v540_v55  ;;  %v544_v0 = vor.u32 %v542_v59, %v540_v55  ;;  %v3576_v41 = vld [vmem:[%s4449_s1 + $0x150] sm:$0xff]   ;;  %v3577_v45 = vld [vmem:[%s4449_s1 + $0x108] sm:$0xff]   ;;  %v3581_v54 = vld [vmem:[%s4449_s1 + $0x140] sm:$0xff]  }
  0x1c   : > { %v823_v11 = vrot.slane %v2830_v8, 1  ;;  %v1382_v55 = vld [vmem:[%s3745_s16 + $0x4] sm:$0xc] }
  0x1d   : > { %3155 = vmatpush3.bf16.msra.mxu0 %v3529_v9  ;;  %v549_v7 = vsel %vm505_vm1, %v544_v0, %v548_v2  ;;  %v3903_v9 = vcombine.low %v970_v5, %v3897_v6 }
  0x1e   : > { %3191 = vmatpush3.bf16.msra.mxu1 %v3530_v10  ;;  %3156 = vmatprep.subr.bf16.mxu0 %v3637_v1  ;;  %v3906_v10 = vld [vmem:[%s3745_s16 + $0xc] sm:$0xff]  }
  0x1f   : > { %3192 = vmatprep.subr.bf16.mxu1 %v3637_v1  ;;  %v1202_v50 = vshrl.u32 %v3906_v10, 16  ;;  %v1205_v51 = vshll.u32 %v3906_v10, 16  ;;  %v1404_v5 = vrot.slane %v3906_v10, 2 }
  0x21   : > { %3157 = vmatpush3.bf16.msra.mxu0 %v3531_v13  ;;  %v1025_v13 = vrot.slane %v3903_v9, 1  ;;  %v1204_v59 = vrot.slane %v1202_v50, 1  ;;  %v1207_v60 = vrot.slane %v1205_v51, 2  ;;  %v3595_v51 = vld [vmem:[%s4449_s1 + $0x188] sm:$0xff]  }
  0x22   : > { %3193 = vmatpush3.bf16.msra.mxu1 %v3532_v16  ;;  %3158 = vmatprep.subr.bf16.mxu0 %v3637_v1  ;;  %v825_v16 = vsel %vm822_vm2, %v823_v11, %v824_v12 }
  0x23   : > { %3194 = vmatprep.subr.bf16.mxu1 %v3637_v1  ;;  %v1208_v0 = vor.u32 %v1207_v60, %v1204_v59 }
  0x25   : > { %3159 = vmatpush3.bf16.msra.mxu0 %v3533_v18  ;;  %v3563_v18 = vld [vmem:[%s4449_s1 + $0x178] sm:$0xff]  }
  0x26   : > { %3195 = vmatpush3.bf16.msra.mxu1 %v3534_v22  ;;  %3160 = vmatprep.subr.bf16.mxu0 %v3637_v1 }
  0x27   : > { %3196 = vmatprep.subr.bf16.mxu1 %v3637_v1 }
  0x29   : > { %3161 = vmatpush3.bf16.msra.mxu0 %v3535_v23  ;;  %v3566_v23 = vld [vmem:[%s4449_s1 + $0x170] sm:$0xff]  }
  0x2a   : > { %3197 = vmatpush3.bf16.msra.mxu1 %v3536_v24  ;;  %3218 = vmatprep.subr.bf16.mxu0 %v3637_v1  ;;  %v827_v24 = vsel %vm822_vm2, %v824_v12, %v826_v21  ;;  %v3584_v12 = vld [vmem:[%s4449_s1 + $0x1f8] sm:$0xff]  }
  0x2b   : > { %3254 = vmatprep.subr.bf16.mxu1 %v3637_v1 }
  0x2c   : > { %3163 = vmatmul.mubr.bf16.vlgmr.msra.gmra.mxu0 %v517_v29  ;;  %v828_v29 = vrot.slane %v3806_v36, 1 }
  0x2d   : > { %3199 = vmatmul.mubr.bf16.vlgmr.msra.gmra.mxu1 %v2808_v14  ;;  %3219 = vmatpush3.bf16.msra.mxu0 %v3539_v28  ;;  %v1026_v14 = vrot.slane %v3906_v10, 1  ;;  %v3953_v28 = vld [vmem:[%s3745_s16 + $0x1c] sm:$0xff]   ;;  %v3585_v10 = vld [vmem:[%s4449_s1 + $0x1b0] sm:$0xff]  }
  0x2e   : > { %3255 = vmatpush3.bf16.msra.mxu1 %v3540_v32  ;;  %3220 = vmatprep.subr.bf16.mxu0 %v3637_v1  ;;  %v1030_v31 = vrot.slane %v3953_v28, 1  ;;  %v3571_v32 = vld [vmem:[%s4449_s1 + $0x160] sm:$0xff]  }
  0x2f   : > { %3166 = vmatprep.mubr.msk.bf16.mxu0 %vm3638_vm0, %v3637_v1  ;;  %3202 = vmatprep.mubr.msk.bf16.mxu1 %vm3638_vm0, %v3637_v1  ;;  %v1027_v19 = vsel %vm822_vm2, %v1025_v13, %v1026_v14 }
  0x30   : > { %3256 = vmatprep.subr.bf16.mxu1 %v3637_v1 }
  0x31   : > { %3221 = vmatpush3.bf16.msra.mxu0 %v3541_v33  ;;  %v829_v33 = vsel %vm822_vm2, %v826_v21, %v828_v29 }
  0x32   : > { %3257 = vmatpush3.bf16.msra.mxu1 %v3543_v37  ;;  %3222 = vmatprep.subr.bf16.mxu0 %v3637_v1  ;;  %v3573_v37 = vld [vmem:[%s4449_s1 + $0x158] sm:$0xff]  }
  0x33   : > { %3258 = vmatprep.subr.bf16.mxu1 %v3637_v1 }
  0x34   : > { %3167 = vmatmul.mubr.bf16.gmra.mxu0 %v525_v38  ;;  %v830_v38 = vrot.slane %v3836_v47, 1 }
  0x35   : > { %3203 = vmatmul.mubr.bf16.gmra.mxu1 %v3764_v15  ;;  %3223 = vmatpush3.bf16.msra.mxu0 %v3544_v39  ;;  %v3927_v15 = vld [vmem:[%s3745_s16 + $0x14] sm:$0xff]  }
  0x36   : > { %3259 = vmatpush3.bf16.msra.mxu1 %v3545_v42  ;;  %3170 = vmatprep.mubr.msk.bf16.mxu0 %vm3638_vm0, %v3637_v1  ;;  %v1028_v22 = vrot.slane %v3927_v15, 1  ;;  %v3575_v39 = vld [vmem:[%s4449_s1 + $0x110] sm:$0xff]   ;;  %v3578_v42 = vld [vmem:[%s3745_s16 + $0x2c] ss:$0 sps:$4 sm:$0x11]   ;;  %v1211_v2 = vshrl.u32 %v3927_v15, 16 }
  0x37   : > { %3206 = vmatprep.mubr.msk.bf16.mxu1 %vm3638_vm0, %v3637_v1  ;;  %3224 = vmatprep.subr.bf16.mxu0 %v3637_v1 }
  0x38   : > { %3260 = vmatprep.subr.bf16.mxu1 %v3637_v1  ;;  %v1031_v35 = vsel %vm822_vm2, %v1028_v22, %v1030_v31  ;;  %v1213_v8 = vrot.slane %v1211_v2, 1 }
  0x39   : > { %3225 = vmatpush3.bf16.msra.mxu0 %v3547_v43  ;;  %v831_v43 = vsel %vm822_vm2, %v828_v29, %v830_v38  ;;  %v1408_v29 = vrot.slane %v3953_v28, 2 }
  0x3a   : > { %3261 = vmatpush3.bf16.msra.mxu1 %v3548_v46  ;;  %3226 = vmatprep.subr.bf16.mxu0 %v3637_v1  ;;  %v3579_v46 = vld [vmem:[%s4449_s1 + $0x148] sm:$0xff]  }
  0x3b   : > { %3262 = vmatprep.subr.bf16.mxu1 %v3637_v1 }
  0x3c   : > { %3171 = vmatmul.mubr.bf16.gmra.mxu0 %v533_v49  ;;  %v1197_v49 = vshll.u32 %v3903_v9, 16 }
  0x3d   : > { %3207 = vmatmul.mubr.bf16.gmra.mxu1 %v3787_v27  ;;  %3227 = vmatpush3.bf16.msra.mxu0 %v3549_v48  ;;  %v1029_v27 = vsel %vm822_vm2, %v1026_v14, %v1028_v22  ;;  %v1194_v48 = vshrl.u32 %v3903_v9, 16  ;;  %v1220_v14 = vshrl.u32 %v3953_v28, 16 }
  0x3e   : > { %3174 = vmatprep.mubr.msk.bf16.mxu0 %vm3638_vm0, %v3637_v1  ;;  %3210 = vmatprep.mubr.msk.bf16.mxu1 %vm3638_vm0, %v3637_v1 }
  0x3f   : > { %3263 = vmatpush3.bf16.msra.mxu1 %v3550_v52  ;;  %3228 = vmatprep.subr.bf16.mxu0 %v3637_v1  ;;  %v1034_v52 = vrot.slane %v3578_v42, 1 }
  0x40   : > { %3264 = vmatprep.subr.bf16.mxu1 %v3637_v1 }
  0x41   : > { %3229 = vmatpush3.bf16.msra.mxu0 %v3552_v56  ;;  %v1196_v56 = vrot.slane %v1194_v48, 1 }
  0x42   : > { %3230 = vmatprep.subr.bf16.mxu0 %v3637_v1 }
  0x43   : > { %3265 = vmatpush3.bf16.msra.mxu1 %v3553_v57  ;;  %v1199_v57 = vrot.slane %v1197_v49, 2  ;;  %v2130_v49 = vld [vmem:[%s4450_s2] sm:$0xff] }
  0x44   : > { %3175 = vmatmul.mubr.bf16.gmra.mxu0 %v541_v58  ;;  %3266 = vmatprep.subr.bf16.mxu1 %v3637_v1 }
  0x45   : > { %3211 = vmatmul.mubr.bf16.gmra.mxu1 %v3806_v36  ;;  %3178 = vmatprep.mubr.msk.bf16.mxu0 %vm3638_vm0, %v3637_v1  ;;  %v3977_v36 = vld [vmem:[%s3745_s16 + $0x24] sm:$0xff]  }
  0x46   : > { %3214 = vmatprep.mubr.msk.bf16.mxu1 %vm3638_vm0, %v3637_v1  ;;  %3231 = vmatpush3.bf16.msra.mxu0 %v3554_v61  ;;  %v1032_v40 = vrot.slane %v3977_v36, 1  ;;  %v1410_v42 = vrot.slane %v3977_v36, 2 }
  0x47   : > { %3267 = vmatpush3.bf16.msra.mxu1 %v3556_v62  ;;  %3232 = vmatprep.subr.bf16.mxu0 %v3637_v1  ;;  %v2862_v62 = vcombine.low %v1382_v55, %v3897_v6 }
  0x48   : > { %3268 = vmatprep.subr.bf16.mxu1 %v3637_v1  ;;  %v1033_v44 = vsel %vm822_vm2, %v1030_v31, %v1032_v40  ;;  %v1035_v61 = vsel %vm822_vm2, %v1032_v40, %v1034_v52  ;;  %v1411_v50 = vsel %vm1402_vm4, %v1408_v29, %v1410_v42 }
  0x49   : > { %v1403_v4 = vrot.slane %v2862_v62, 2 }
  0x4a   : > { %3233 = vmatpush3.bf16.msra.mxu0 %v3557_v63  ;;  %v1200_v63 = vor.u32 %v1199_v57, %v1196_v56  ;;  %v2131_v57 = vld [vmem:[%s4450_s2 + $0x8] sm:$0xff] }
  0x4b   : > { %3269 = vmatpush3.bf16.msra.mxu1 %v3558_v3  ;;  %3290 = vmatprep.subr.bf16.mxu0 %v3637_v1  ;;  %v1214_v3 = vshll.u32 %v3927_v15, 16  ;;  %v1405_v11 = vsel %vm1402_vm4, %v1403_v4, %v1404_v5 }
  0x4c   : > { %3179 = vmatmul.mubr.bf16.gmra.mxu0 %v549_v7  ;;  %3326 = vmatprep.subr.bf16.mxu1 %v3637_v1  ;;  %v1209_v6 = vsel %vm1192_vm3, %v1200_v63, %v1208_v0  ;;  %v3583_v7 = vld [vmem:[%s4449_s1 + $0x1b8] sm:$0xff]   ;;  %v3599_v63 = vld [vmem:[%s4449_s1 + $0x1c0] sm:$0xff]  }
  0x4d   : > { %3215 = vmatmul.mubr.bf16.gmra.mxu1 %v3836_v47  ;;  %3234 = vmatprep.mubr.msk.bf16.mxu0 %vm3638_vm0, %v3637_v1  ;;  %v832_v47 = vrot.slane %v3856_v53, 1  ;;  %v3580_v53 = vld [vmem:[%s4449_s1 + $0x100] sm:$0xff]   ;;  %v1216_v9 = vrot.slane %v1214_v3, 2 }
  0x4e   : > { %3270 = vmatprep.mubr.msk.bf16.mxu1 %vm3638_vm0, %v3637_v1 }
  0x4f   : > { %v833_v58 = vsel %vm822_vm2, %v830_v38, %v832_v47  ;;  %v1217_v13 = vor.u32 %v1216_v9, %v1213_v8  ;;  %v4163_v8 = vld [vmem:[%s3745_s16 + $0x18] sm:$0xff]  }
  0x50   : > { %v2133_v9 = vld [vmem:[%s4450_s2 + $0x18] sm:$0xff] }
  0x54   : > { %3235 = vmatmul.mubr.bf16.vlgmr.msra.gmra.mxu0 %v825_v16  ;;  %v1223_v16 = vshll.u32 %v3953_v28, 16 }
  0x55   : > { %3271 = vmatmul.mubr.bf16.vlgmr.msra.gmra.mxu1 %v1027_v19  ;;  %3291 = vmatpush3.bf16.msra.mxu0 %v3562_v17  ;;  %v1406_v17 = vrot.slane %v3927_v15, 2  ;;  %v1218_v19 = vsel %vm1192_vm3, %v1208_v0, %v1217_v13  ;;  %v1222_v15 = vrot.slane %v1220_v14, 1  ;;  %v2132_v0 = vld [vmem:[%s4450_s2 + $0x10] sm:$0xff] }
  0x56   : > { %3327 = vmatpush3.bf16.msra.mxu1 %v3563_v18  ;;  %3292 = vmatprep.subr.bf16.mxu0 %v3637_v1  ;;  %v3586_v18 = vld [vmem:[%s4449_s1 + $0x1f0] sm:$0xff]   ;;  %v1225_v21 = vrot.slane %v1223_v16, 2  ;;  %v1791_v16 = vshrl.u32 %v4163_v8, 16 }
  0x57   : > { %3238 = vmatprep.mubr.msk.bf16.mxu0 %vm3638_vm0, %v3637_v1  ;;  %3274 = vmatprep.mubr.msk.bf16.mxu1 %vm3638_vm0, %v3637_v1  ;;  %v1407_v22 = vsel %vm1402_vm4, %v1404_v5, %v1406_v17 }
  0x58   : > { %3328 = vmatprep.subr.bf16.mxu1 %v3637_v1 }
  0x59   : > { %3293 = vmatpush3.bf16.msra.mxu0 %v3564_v20  ;;  %v3587_v20 = vld [vmem:[%s4449_s1 + $0x1a8] sm:$0xff]  }
  0x5a   : > { %3329 = vmatpush3.bf16.msra.mxu1 %v3566_v23  ;;  %3294 = vmatprep.subr.bf16.mxu0 %v3637_v1  ;;  %v3588_v23 = vld [vmem:[%s4449_s1 + $0x1e8] sm:$0xff]  }
  0x5b   : > { %3330 = vmatprep.subr.bf16.mxu1 %v3637_v1 }
  0x5c   : > { %3239 = vmatmul.mubr.bf16.gmra.mxu0 %v827_v24  ;;  %v1226_v24 = vor.u32 %v1225_v21, %v1222_v15  ;;  %v3602_v15 = vld [vmem:[%s4449_s1 + $0x238] sm:$0xff]  }
  0x5d   : > { %3275 = vmatmul.mubr.bf16.gmra.mxu1 %v1029_v27  ;;  %3295 = vmatpush3.bf16.msra.mxu0 %v3567_v25  ;;  %v3589_v25 = vld [vmem:[%s4449_s1 + $0x1a0] sm:$0xff]   ;;  %v1232_v27 = vshll.u32 %v3977_v36, 16 }
  0x5e   : > { %3331 = vmatpush3.bf16.msra.mxu1 %v3568_v26  ;;  %3242 = vmatprep.mubr.msk.bf16.mxu0 %vm3638_vm0, %v3637_v1  ;;  %v1229_v26 = vshrl.u32 %v3977_v36, 16  ;;  %v1227_v31 = vsel %vm1192_vm3, %v1217_v13, %v1226_v24 }
  0x5f   : > { %3278 = vmatprep.mubr.msk.bf16.mxu1 %vm3638_vm0, %v3637_v1  ;;  %3296 = vmatprep.subr.bf16.mxu0 %v3637_v1  ;;  %v1234_v28 = vrot.slane %v1232_v27, 2  ;;  %v1608_v27 = vrot.slane %v4163_v8, 2 }
  0x60   : > { %3332 = vmatprep.subr.bf16.mxu1 %v3637_v1 }
  0x61   : > { %3297 = vmatpush3.bf16.msra.mxu0 %v3570_v30  ;;  %v3590_v30 = vld [vmem:[%s4449_s1 + $0x1e0] sm:$0xff]  }
  0x62   : > { %3333 = vmatpush3.bf16.msra.mxu1 %v3571_v32  ;;  %3298 = vmatprep.subr.bf16.mxu0 %v3637_v1  ;;  %v3591_v32 = vld [vmem:[%s4449_s1 + $0x198] sm:$0xff]  }
  0x63   : > { %3334 = vmatprep.subr.bf16.mxu1 %v3637_v1 }
  0x64   : > { %3243 = vmatmul.mubr.bf16.gmra.mxu0 %v829_v33  ;;  %v1231_v33 = vrot.slane %v1229_v26, 1  ;;  %v3604_v26 = vld [vmem:[%s4449_s1 + $0x230] sm:$0xff]  }
  0x65   : > { %3279 = vmatmul.mubr.bf16.gmra.mxu1 %v1031_v35  ;;  %3299 = vmatpush3.bf16.msra.mxu0 %v3572_v34  ;;  %v3596_v34 = vld [vmem:[%s3745_s16 + $0x2c] ss:$0 sps:$4 sm:$0x33]   ;;  %v1409_v35 = vsel %vm1402_vm4, %v1406_v17, %v1408_v29  ;;  %v1794_v17 = vshll.u32 %v4163_v8, 16  ;;  %v2137_v29 = vld [vmem:[%s4450_s2 + $0x38] sm:$0xff] }
  0x66   : > { %3246 = vmatprep.mubr.msk.bf16.mxu0 %vm3638_vm0, %v3637_v1  ;;  %3282 = vmatprep.mubr.msk.bf16.mxu1 %vm3638_vm0, %v3637_v1  ;;  %v1235_v38 = vor.u32 %v1234_v28, %v1231_v33  ;;  %v1238_v40 = vshrl.u32 %v3596_v34, 16  ;;  %v1412_v56 = vrot.slane %v3596_v34, 2  ;;  %v2138_v28 = vld [vmem:[%s4450_s2 + $0x40] sm:$0xff] }
  0x67   : > { %3335 = vmatpush3.bf16.msra.mxu1 %v3573_v37  ;;  %3300 = vmatprep.subr.bf16.mxu0 %v3637_v1  ;;  %v3592_v37 = vld [vmem:[%s4449_s1 + $0x1d8] sm:$0xff]  }
  0x68   : > { %3336 = vmatprep.subr.bf16.mxu1 %v3637_v1  ;;  %v1236_v47 = vsel %vm1192_vm3, %v1226_v24, %v1235_v38  ;;  %v1240_v48 = vrot.slane %v1238_v40, 1  ;;  %v1413_v3 = vsel %vm1402_vm4, %v1410_v42, %v1412_v56  ;;  %v1796_v24 = vrot.slane %v1794_v17, 3  ;;  %v4231_v42 = vld [vmem:[%s3745_s16 + $0x28] sm:$0xff]   ;;  %v3613_v56 = vld [vmem:[%s4452_s4 + $0x18] sm:$0xff]  }
  0x69   : > { %3301 = vmatpush3.bf16.msra.mxu0 %v3575_v39  ;;  %v3593_v39 = vld [vmem:[%s4449_s1 + $0x190] sm:$0xff]  }
  0x6a   : > { %3302 = vmatprep.subr.bf16.mxu0 %v3637_v1 }
  0x6b   : > { %3337 = vmatpush3.bf16.msra.mxu1 %v3576_v41  ;;  %v1241_v41 = vshll.u32 %v3596_v34, 16 }
  0x6c   : > { %3247 = vmatmul.mubr.bf16.gmra.mxu0 %v831_v43  ;;  %3338 = vmatprep.subr.bf16.mxu1 %v3637_v1  ;;  %v3594_v43 = vld [vmem:[%s4449_s1 + $0x1d0] sm:$0xff]  }
  0x6d   : > { %3283 = vmatmul.mubr.bf16.gmra.mxu1 %v1033_v44  ;;  %3250 = vmatprep.mubr.msk.bf16.mxu0 %vm3638_vm0, %v3637_v1  ;;  %v1550_v44 = vld [vmem:[%s3745_s16 + $0x8] sm:$0xc]  ;;  %v1243_v36 = vrot.slane %v1241_v41, 2 }
  0x6e   : > { %3286 = vmatprep.mubr.msk.bf16.mxu1 %vm3638_vm0, %v3637_v1  ;;  %3303 = vmatpush3.bf16.msra.mxu0 %v3577_v45  ;;  %v4120_v45 = vld [vmem:[%s3745_s16 + $0xc] sm:$0xf] }
  0x6f   : > { %3339 = vmatpush3.bf16.msra.mxu1 %v3579_v46  ;;  %3304 = vmatprep.subr.bf16.mxu0 %v3637_v1  ;;  %v3639_v46 = vmov 0   ;;  %v2871_v52 = vcombine.low %v1550_v44, %v4120_v45  ;;  %v1244_v55 = vor.u32 %v1243_v36, %v1240_v48  ;;  %v3610_v44 = vld [vmem:[%s4449_s1 + $0x220] sm:$0xff]   ;;  %v1809_v48 = vshrl.u32 %v4231_v42, 16 }
  0x70   : > { %3340 = vmatprep.subr.bf16.mxu1 %v3637_v1  ;;  %3519 = vset.pattern.permute.xlu0 %v3639_v46  ;;  %v1812_v36 = vshll.u32 %v4231_v42, 16 }
  0x71   : > { %3520 = vset.pattern.permute.xlu1 %v3639_v46  ;;  %2142 = vperm.xlu0 %3519, %v2130_v49   ;;  %v1774_v59 = vshrl.u32 %v2871_v52, 16  ;;  %v1777_v60 = vshll.u32 %v2871_v52, 16  ;;  %v1245_v2 = vsel %vm1192_vm3, %v1235_v38, %v1244_v55  ;;  %v4256_v55 = vld [vmem:[%s3745_s16 + $0x30] ss:$0 sps:$4 sm:$0x77]  }
  0x72   : > { %3305 = vmatpush3.bf16.msra.mxu0 %v3580_v53  ;;  %v4134_v53 = vld [vmem:[%s3745_s16 + $0x10] sm:$0xff]   ;;  %2152 = vperm.xlu1 %3520, %v2132_v0  }
  0x73   : > { %3341 = vmatpush3.bf16.msra.mxu1 %v3581_v54  ;;  %3362 = vmatprep.subr.bf16.mxu0 %v3637_v1  ;;  %v3597_v54 = vld [vmem:[%s4449_s1 + $0x1c8] sm:$0xff]   ;;  %v1785_v62 = vshll.u32 %v4134_v53, 16  ;;  %v1776_v4 = vrot.slane %v1774_v59, 2  ;;  %v1779_v5 = vrot.slane %v1777_v60, 3  ;;  %v1818_v60 = vshrl.u32 %v4256_v55, 16 }
  0x74   : > { %3251 = vmatmul.mubr.bf16.gmra.mxu0 %v833_v58  ;;  %3398 = vmatprep.subr.bf16.mxu1 %v3637_v1  ;;  %v3598_v58 = vld [vmem:[%s4449_s1 + $0x180] sm:$0xff]   ;;  %v3618_v0 = vld [vmem:[%s3745_s16 + $0x30] ss:$0 sps:$4 sm:$0x33]  }
  0x75   : > { %3287 = vmatmul.mubr.bf16.gmra.mxu1 %v1035_v61  ;;  %3306 = vmatprep.mubr.msk.bf16.mxu0 %vm3638_vm0, %v3637_v1  ;;  %v1782_v61 = vshrl.u32 %v4134_v53, 16  ;;  %v1780_v13 = vor.u32 %v1779_v5, %v1776_v4  ;;  %v1820_v4 = vrot.slane %v1818_v60, 2 }
  0x76   : > { %3342 = vmatprep.mubr.msk.bf16.mxu1 %vm3638_vm0, %v3637_v1  ;;  %2147 = vperm.xlu0 %3519, %v2131_v57   ;;  %v1612_v57 = vrot.slane %v4231_v42, 2 }
  0x77   : > { %2157 = vperm.xlu1 %3520, %v2133_v9  }
  0x7c   : > { %3307 = vmatmul.mubr.bf16.vlgmr.msra.gmra.mxu0 %v1209_v6  ;;  %v1784_v6 = vrot.slane %v1782_v61, 2  ;;  %v1821_v61 = vshll.u32 %v4256_v55, 16 }
  0x7d   : > { %3343 = vmatmul.mubr.bf16.vlgmr.msra.gmra.mxu1 %v1405_v11  ;;  %3363 = vmatpush3.bf16.msra.mxu0 %v3583_v7  ;;  %v1787_v7 = vrot.slane %v1785_v62, 3  ;;  %v2134_v11 = vld [vmem:[%s4450_s2 + $0x20] sm:$0xff]  ;;  %v3616_v62 = vld [vmem:[%s4452_s4 + $0x10] sm:$0xff]  }
  0x7e   : > { %3399 = vmatpush3.bf16.msra.mxu1 %v3584_v12  ;;  %3364 = vmatprep.subr.bf16.mxu0 %v3637_v1  ;;  %v1605_v12 = vrot.slane %v2871_v52, 2  ;;  %v1811_v52 = vrot.slane %v1809_v48, 2  ;;  %v1823_v5 = vrot.slane %v1821_v61, 3 }
  0x7f   : > { %3310 = vmatprep.mubr.msk.bf16.mxu0 %vm3638_vm0, %v3637_v1  ;;  %3346 = vmatprep.mubr.msk.bf16.mxu1 %vm3638_vm0, %v3637_v1  ;;  %v1788_v14 = vor.u32 %v1787_v7, %v1784_v6  ;;  %v3620_v6 = vld [vmem:[%s4452_s4 + $0x8] sm:$0xff]   ;;  %v1614_v7 = vrot.slane %v3618_v0, 2 }
  0x80   : > { %3400 = vmatprep.subr.bf16.mxu1 %v3637_v1  ;;  %2162 = vperm.xlu0 %3519, %v2134_v11   ;;  %v1824_v9 = vor.u32 %v1823_v5, %v1820_v4  ;;  %v3621_v11 = vld [vmem:[%s4449_s1 + $0x200] sm:$0xff]  }
  0x81   : > { %3365 = vmatpush3.bf16.msra.mxu0 %v3585_v10  ;;  %v1606_v10 = vrot.slane %v4134_v53, 2  ;;  %v1789_v21 = vsel %vm1772_vm5, %v1780_v13, %v1788_v14  ;;  %v1615_v13 = vsel %vm1402_vm4, %v1612_v57, %v1614_v7 }
  0x82   : > { %3401 = vmatpush3.bf16.msra.mxu1 %v3586_v18  ;;  %3366 = vmatprep.subr.bf16.mxu0 %v3637_v1  ;;  %v2135_v18 = vld [vmem:[%s4450_s2 + $0x28] sm:$0xff] }
  0x83   : > { %3402 = vmatprep.subr.bf16.mxu1 %v3637_v1  ;;  %2167 = vperm.xlu1 %3520, %v2135_v18   ;;  %v1609_v34 = vsel %vm1402_vm4, %v1606_v10, %v1608_v27  ;;  %v1984_v18 = vrot.slane %v4134_v53, 3 }
  0x84   : > { %3311 = vmatmul.mubr.bf16.gmra.mxu0 %v1218_v19  ;;  %v2136_v19 = vld [vmem:[%s4450_s2 + $0x30] sm:$0xff] }
  0x85   : > { %3347 = vmatmul.mubr.bf16.gmra.mxu1 %v1407_v22  ;;  %3367 = vmatpush3.bf16.msra.mxu0 %v3587_v20  ;;  %v1607_v20 = vsel %vm1402_vm4, %v1605_v12, %v1606_v10  ;;  %v3603_v22 = vld [vmem:[%s4452_s4 + $0x38] sm:$0xff]   ;;  %v1962_v12 = vld [vmem:[%s3745_s16 + $0x8] sm:$0x8]  ;;  %v3622_v10 = vld [vmem:[%s4452_s4] sm:$0xff]  }
  0x86   : > { %3403 = vmatpush3.bf16.msra.mxu1 %v3588_v23  ;;  %3314 = vmatprep.mubr.msk.bf16.mxu0 %vm3638_vm0, %v3637_v1  ;;  %v1793_v23 = vrot.slane %v1791_v16, 2 }
  0x87   : > { %3350 = vmatprep.mubr.msk.bf16.mxu1 %vm3638_vm0, %v3637_v1  ;;  %3368 = vmatprep.subr.bf16.mxu0 %v3637_v1 }
  0x88   : > { %3404 = vmatprep.subr.bf16.mxu1 %v3637_v1  ;;  %2172 = vperm.xlu0 %3519, %v2136_v19   ;;  %v3624_v19 = vld [vmem:[%s4036_s12] sm:$0xff]  }
  0x89   : > { %3369 = vmatpush3.bf16.msra.mxu0 %v3589_v25  ;;  %v4195_v25 = vld [vmem:[%s3745_s16 + $0x20] sm:$0xff]   ;;  %2177 = vperm.xlu1 %3520, %v2137_v29  }
  0x8a   : > { %3405 = vmatpush3.bf16.msra.mxu1 %v3590_v30  ;;  %3370 = vmatprep.subr.bf16.mxu0 %v3637_v1  ;;  %v1797_v30 = vor.u32 %v1796_v24, %v1793_v23  ;;  %v1803_v33 = vshll.u32 %v4195_v25, 16  ;;  %v1990_v23 = vrot.slane %v4231_v42, 3  ;;  %v3628_v29 = vld [vmem:[%s4036_s12 + $0x20] sm:$0xff]  }
  0x8b   : > { %3406 = vmatprep.subr.bf16.mxu1 %v3637_v1 }
  0x8c   : > { %3315 = vmatmul.mubr.bf16.gmra.mxu0 %v1227_v31  ;;  %v3606_v31 = vld [vmem:[%s4452_s4 + $0x30] sm:$0xff]   ;;  %2182 = vperm.xlu0 %3519, %v2138_v28   ;;  %v1798_v38 = vsel %vm1772_vm5, %v1788_v14, %v1797_v30  ;;  %v1805_v41 = vrot.slane %v1803_v33, 3  ;;  %v2894_v14 = vcombine.low %v1962_v12, %v4120_v45 }
  0x8d   : > { %3351 = vmatmul.mubr.bf16.gmra.mxu1 %v1409_v35  ;;  %3371 = vmatpush3.bf16.msra.mxu0 %v3591_v32  ;;  %v1800_v32 = vshrl.u32 %v4195_v25, 16  ;;  %v3607_v35 = vld [vmem:[%s4449_s1 + $0x228] sm:$0xff]  }
  0x8e   : > { %3318 = vmatprep.mubr.msk.bf16.mxu0 %vm3638_vm0, %v3637_v1  ;;  %3354 = vmatprep.mubr.msk.bf16.mxu1 %vm3638_vm0, %v3637_v1  ;;  %v1983_v17 = vrot.slane %v2894_v14, 3 }
  0x8f   : > { %3407 = vmatpush3.bf16.msra.mxu1 %v3592_v37  ;;  %3372 = vmatprep.subr.bf16.mxu0 %v3637_v1  ;;  %v2139_v37 = vld [vmem:[%s4450_s2 + $0x48] sm:$0xff]  ;;  %v1802_v40 = vrot.slane %v1800_v32, 2 }
  0x90   : > { %3408 = vmatprep.subr.bf16.mxu1 %v3637_v1  ;;  %2187 = vperm.xlu1 %3520, %v2139_v37   ;;  %v1985_v45 = vsel %vm1982_vm6, %v1983_v17, %v1984_v18 }
  0x91   : > { %3373 = vmatpush3.bf16.msra.mxu0 %v3593_v39  ;;  %v3608_v39 = vld [vmem:[%s4452_s4 + $0x28] sm:$0xff]   ;;  %v1806_v46 = vor.u32 %v1805_v41, %v1802_v40 }
  0x92   : > { %3374 = vmatprep.subr.bf16.mxu0 %v3637_v1 }
  0x93   : > { %3409 = vmatpush3.bf16.msra.mxu1 %v3594_v43  ;;  %v1610_v43 = vrot.slane %v4195_v25, 2 }
  0x94   : > { %3319 = vmatmul.mubr.bf16.gmra.mxu0 %v1236_v47  ;;  %3410 = vmatprep.subr.bf16.mxu1 %v3637_v1  ;;  %v3611_v47 = vld [vmem:[%s4452_s4 + $0x20] sm:$0xff]  }
  0x95   : > { %3355 = vmatmul.mubr.bf16.gmra.mxu1 %v1411_v50  ;;  %3322 = vmatprep.mubr.msk.bf16.mxu0 %vm3638_vm0, %v3637_v1  ;;  %v1611_v49 = vsel %vm1402_vm4, %v1608_v27, %v1610_v43  ;;  %v3612_v50 = vld [vmem:[%s4449_s1 + $0x218] sm:$0xff]  }
  0x96   : > { %3358 = vmatprep.mubr.msk.bf16.mxu1 %vm3638_vm0, %v3637_v1  ;;  %3375 = vmatpush3.bf16.msra.mxu0 %v3595_v51  ;;  %v1807_v51 = vsel %vm1772_vm5, %v1797_v30, %v1806_v46 }
  0x97   : > { %3411 = vmatpush3.bf16.msra.mxu1 %v3597_v54  ;;  %3376 = vmatprep.subr.bf16.mxu0 %v3637_v1  ;;  %v1814_v54 = vrot.slane %v1812_v36, 3 }
  0x98   : > { %3412 = vmatprep.subr.bf16.mxu1 %v3637_v1 }
  0x99   : > { %v1815_v59 = vor.u32 %v1814_v54, %v1811_v52 }
  0x9a   : > { %3377 = vmatpush3.bf16.msra.mxu0 %v3598_v58  ;;  %v3615_v58 = vld [vmem:[%s4449_s1 + $0x210] sm:$0xff]  }
  0x9b   : > { %3413 = vmatpush3.bf16.msra.mxu1 %v3599_v63  ;;  %3434 = vmatprep.subr.bf16.mxu0 %v3637_v1  ;;  %v1613_v63 = vsel %vm1402_vm4, %v1610_v43, %v1612_v57  ;;  %v1825_v16 = vsel %vm1772_vm5, %v1815_v59, %v1824_v9 }
  0x9c   : > { %3323 = vmatmul.mubr.bf16.gmra.mxu0 %v1245_v2  ;;  %3470 = vmatprep.subr.bf16.mxu1 %v3637_v1  ;;  %v1816_v2 = vsel %vm1772_vm5, %v1806_v46, %v1815_v59 }
  0x9d   : > { %3359 = vmatmul.mubr.bf16.gmra.mxu1 %v1413_v3  ;;  %3378 = vmatprep.mubr.msk.bf16.mxu0 %vm3638_vm0, %v3637_v1  ;;  %v3617_v3 = vld [vmem:[%s4449_s1 + $0x208] sm:$0xff]  }
  0x9e   : > { %3414 = vmatprep.mubr.msk.bf16.mxu1 %vm3638_vm0, %v3637_v1 }
  0xa4   : > { %3379 = vmatmul.mubr.bf16.vlgmr.msra.gmra.mxu0 %v1607_v20  ;;  %v1986_v20 = vrot.slane %v4163_v8, 3 }
  0xa5   : > { %3415 = vmatmul.mubr.bf16.vlgmr.msra.gmra.mxu1 %v1789_v21  ;;  %3435 = vmatpush3.bf16.msra.mxu0 %v3602_v15  ;;  %v3625_v15 = vld [vmem:[%s4036_s12 + $0x8] sm:$0xff]   ;;  %v1988_v21 = vrot.slane %v4195_v25, 3  ;;  %v3627_v25 = vld [vmem:[%s4036_s12 + $0x18] sm:$0xff]  }
  0xa6   : > { %3471 = vmatpush3.bf16.msra.mxu1 %v3603_v22  ;;  %3436 = vmatprep.subr.bf16.mxu0 %v3637_v1  ;;  %v1987_v53 = vsel %vm1982_vm6, %v1984_v18, %v1986_v20  ;;  %v3626_v22 = vld [vmem:[%s4036_s12 + $0x10] sm:$0xff]  }
  0xa7   : > { %3382 = vmatprep.mubr.msk.bf16.mxu0 %vm3638_vm0, %v3637_v1  ;;  %3418 = vmatprep.mubr.msk.bf16.mxu1 %vm3638_vm0, %v3637_v1  ;;  %v1989_v8 = vsel %vm1982_vm6, %v1986_v20, %v1988_v21  ;;  %v1991_v24 = vsel %vm1982_vm6, %v1988_v21, %v1990_v23 }
  0xa8   : > { %3472 = vmatprep.subr.bf16.mxu1 %v3637_v1 }
  0xa9   : > { %3437 = vmatpush3.bf16.msra.mxu0 %v3604_v26  ;;  %v1992_v26 = vrot.slane %v4256_v55, 3 }
  0xaa   : > { %3473 = vmatpush3.bf16.msra.mxu1 %v3606_v31  ;;  %3438 = vmatprep.subr.bf16.mxu0 %v3637_v1 }
  0xab   : > { %3474 = vmatprep.subr.bf16.mxu1 %v3637_v1  ;;  %v1993_v27 = vsel %vm1982_vm6, %v1990_v23, %v1992_v26 }
  0xac   : > { %3383 = vmatmul.mubr.bf16.gmra.mxu0 %v1609_v34 }
  0xad   : > { %3419 = vmatmul.mubr.bf16.gmra.mxu1 %v1798_v38  ;;  %3439 = vmatpush3.bf16.msra.mxu0 %v3607_v35 }
  0xae   : > { %3475 = vmatpush3.bf16.msra.mxu1 %v3608_v39  ;;  %3386 = vmatprep.mubr.msk.bf16.mxu0 %vm3638_vm0, %v3637_v1 }
  0xaf   : > { %3422 = vmatprep.mubr.msk.bf16.mxu1 %vm3638_vm0, %v3637_v1  ;;  %3440 = vmatprep.subr.bf16.mxu0 %v3637_v1 }
  0xb0   : > { %3476 = vmatprep.subr.bf16.mxu1 %v3637_v1 }
  0xb1   : > { %3441 = vmatpush3.bf16.msra.mxu0 %v3610_v44 }
  0xb2   : > { %3477 = vmatpush3.bf16.msra.mxu1 %v3611_v47  ;;  %3442 = vmatprep.subr.bf16.mxu0 %v3637_v1 }
  0xb3   : > { %3478 = vmatprep.subr.bf16.mxu1 %v3637_v1 }
  0xb4   : > { %3387 = vmatmul.mubr.bf16.gmra.mxu0 %v1611_v49 }
  0xb5   : > { %3423 = vmatmul.mubr.bf16.gmra.mxu1 %v1807_v51  ;;  %3443 = vmatpush3.bf16.msra.mxu0 %v3612_v50 }
  0xb6   : > { %3390 = vmatprep.mubr.msk.bf16.mxu0 %vm3638_vm0, %v3637_v1  ;;  %3426 = vmatprep.mubr.msk.bf16.mxu1 %vm3638_vm0, %v3637_v1 }
  0xb7   : > { %3479 = vmatpush3.bf16.msra.mxu1 %v3613_v56  ;;  %3444 = vmatprep.subr.bf16.mxu0 %v3637_v1 }
  0xb8   : > { %3480 = vmatprep.subr.bf16.mxu1 %v3637_v1 }
  0xb9   : > { %3445 = vmatpush3.bf16.msra.mxu0 %v3615_v58 }
  0xba   : > { %3446 = vmatprep.subr.bf16.mxu0 %v3637_v1 }
  0xbb   : > { %3481 = vmatpush3.bf16.msra.mxu1 %v3616_v62 }
  0xbc   : > { %3391 = vmatmul.mubr.bf16.gmra.mxu0 %v1613_v63  ;;  %3482 = vmatprep.subr.bf16.mxu1 %v3637_v1 }
  0xbd   : > { %3427 = vmatmul.mubr.bf16.gmra.mxu1 %v1816_v2  ;;  %3394 = vmatprep.mubr.msk.bf16.mxu0 %vm3638_vm0, %v3637_v1 }
  0xbe   : > { %3430 = vmatprep.mubr.msk.bf16.mxu1 %vm3638_vm0, %v3637_v1  ;;  %3447 = vmatpush3.bf16.msra.mxu0 %v3617_v3 }
  0xbf   : > { %3483 = vmatpush3.bf16.msra.mxu1 %v3620_v6  ;;  %3448 = vmatprep.subr.bf16.mxu0 %v3637_v1 }
  0xc0   : > { %3484 = vmatprep.subr.bf16.mxu1 %v3637_v1 }
  0xc2   : > { %3449 = vmatpush3.bf16.msra.mxu0 %v3621_v11 }
  0xc3   : > { %3485 = vmatpush3.bf16.msra.mxu1 %v3622_v10 }
  0xc4   : > { %3395 = vmatmul.mubr.bf16.gmra.mxu0 %v1615_v13 }
  0xc5   : > { %3431 = vmatmul.mubr.bf16.gmra.mxu1 %v1825_v16  ;;  %3450 = vmatprep.mubr.msk.bf16.mxu0 %vm3638_vm0, %v3637_v1 }
  0xc6   : > { %3486 = vmatprep.mubr.msk.bf16.mxu1 %vm3638_vm0, %v3637_v1 }
  0xcc   : > { %3451 = vmatmul.mubr.bf16.vlgmr.msra.gmra.mxu0 %v1985_v45 }
  0xcd   : > { %3487 = vmatmul.mubr.bf16.vlgmr.msra.gmra.mxu1 %v3624_v19  ;;  %3454 = vmatprep.mubr.msk.bf16.mxu0 %vm3638_vm0, %v3637_v1 }
  0xce   : > { %3490 = vmatprep.mubr.msk.bf16.mxu1 %vm3638_vm0, %v3637_v1 }
  0xd4   : > { %3455 = vmatmul.mubr.bf16.gmra.mxu0 %v1987_v53 }
  0xd5   : > { %3491 = vmatmul.mubr.bf16.gmra.mxu1 %v3625_v15  ;;  %3458 = vmatprep.mubr.msk.bf16.mxu0 %vm3638_vm0, %v3637_v1 }
  0xd6   : > { %3494 = vmatprep.mubr.msk.bf16.mxu1 %vm3638_vm0, %v3637_v1 }
  0xdc   : > { %3459 = vmatmul.mubr.bf16.gmra.mxu0 %v1989_v8 }
  0xdd   : > { %3495 = vmatmul.mubr.bf16.gmra.mxu1 %v3626_v22  ;;  %3462 = vmatprep.mubr.msk.bf16.mxu0 %vm3638_vm0, %v3637_v1 }
  0xde   : > { %3498 = vmatprep.mubr.msk.bf16.mxu1 %vm3638_vm0, %v3637_v1 }
  0xe4   : > { %3463 = vmatmul.mubr.bf16.gmra.mxu0 %v1991_v24 }
  0xe5   : > { %3499 = vmatmul.mubr.bf16.gmra.mxu1 %v3627_v25  ;;  %3466 = vmatprep.mubr.msk.bf16.mxu0 %vm3638_vm0, %v3637_v1 }
  0xe6   : > { %3502 = vmatprep.mubr.msk.bf16.mxu1 %vm3638_vm0, %v3637_v1 }
  0xec   : > { %v637_v30 = vpop.f32.mrf.mxu0  ;;  %3467 = vmatmul.mubr.bf16.gmra.mxu0 %v1993_v27 }
  0xed   : > { %v763_v31 = vpop.f32.mrf.mxu1  ;;  %3503 = vmatmul.mubr.bf16.gmra.mxu1 %v3628_v29 }
  0xee   : > { %v764_v32 = vadd.f32 %v763_v31, %v637_v30  ;;  %v3164_v33 = vpop.f32.mrf.mxu0 }
  0xef   : > { %v3200_v28 = vpop.f32.mrf.mxu1 }
  0xf0   : > { %v640_v34 = vpop.f32.mrf.mxu0 }
  0xf1   : > { %v766_v35 = vpop.f32.mrf.mxu1 }
  0xf2   : > { %v767_v37 = vadd.f32 %v766_v35, %v640_v34  ;;  %v3165_v38 = vpop.f32.mrf.mxu0 }
  0xf3   : > { %v3201_v39 = vpop.f32.mrf.mxu1 }
  0xf4   : > { %v645_v40 = vpop.f32.mrf.mxu0 }
  0xf5   : > { %v771_v41 = vpop.f32.mrf.mxu1 }
  0xf6   : > { %v772_v42 = vadd.f32 %v771_v41, %v645_v40  ;;  %v3168_v43 = vpop.f32.mrf.mxu0 }
  0xf7   : > { %v3204_v1 = vpop.f32.mrf.mxu1 }
  0xf8   : > { %v648_v44 = vpop.f32.mrf.mxu0 }
  0xf9   : > { %v774_v46 = vpop.f32.mrf.mxu1 }
  0xfa   : > { %v775_v47 = vadd.f32 %v774_v46, %v648_v44  ;;  %v3169_v48 = vpop.f32.mrf.mxu0 }
  0xfb   : > { %v3205_v36 = vpop.f32.mrf.mxu1 }
  0xfc   : > { %v653_v49 = vpop.f32.mrf.mxu0 }
  0xfd   : > { %v779_v50 = vpop.f32.mrf.mxu1 }
  0xfe   : > { %v780_v51 = vadd.f32 %v779_v50, %v653_v49  ;;  %v3172_v52 = vpop.f32.mrf.mxu0 }
  0xff   : > { %v3208_v54 = vpop.f32.mrf.mxu1 }
 0x100   : > { %v656_v55 = vpop.f32.mrf.mxu0 }
 0x101   : > { %v782_v56 = vpop.f32.mrf.mxu1 }
 0x102   : > { %v783_v57 = vadd.f32 %v782_v56, %v656_v55  ;;  %v3173_v58 = vpop.f32.mrf.mxu0 }
 0x103   : > { %v3209_v59 = vpop.f32.mrf.mxu1 }
 0x104   : > { %v661_v60 = vpop.f32.mrf.mxu0 }
 0x105   : > { %v787_v61 = vpop.f32.mrf.mxu1 }
 0x106   : > { %v788_v62 = vadd.f32 %v787_v61, %v661_v60  ;;  %v3176_v63 = vpop.f32.mrf.mxu0 }
 0x107   : > { %v3212_v0 = vpop.f32.mrf.mxu1 }
 0x108   : > { %v664_v2 = vpop.f32.mrf.mxu0 }
 0x109   : > { %v790_v3 = vpop.f32.mrf.mxu1 }
 0x10a   : > { %v791_v4 = vadd.f32 %v790_v3, %v664_v2  ;;  %v3177_v5 = vpop.f32.mrf.mxu0 }
 0x10b   : > { %v3213_v6 = vpop.f32.mrf.mxu1 }
 0x10c   : > { %v669_v7 = vpop.f32.mrf.mxu0 }
 0x10d   : > { %v795_v9 = vpop.f32.mrf.mxu1 }
 0x10e   : > { %v796_v11 = vadd.f32 %v795_v9, %v669_v7  ;;  %v3180_v12 = vpop.f32.mrf.mxu0 }
 0x10f   : > { %v3216_v10 = vpop.f32.mrf.mxu1 }
 0x110   : > { %v672_v13 = vpop.f32.mrf.mxu0 }
 0x111   : > { %v798_v14 = vpop.f32.mrf.mxu1 }
 0x112   : > { %v799_v16 = vadd.f32 %v798_v14, %v672_v13  ;;  %v3181_v17 = vpop.f32.mrf.mxu0 }
 0x113   : > { %v3217_v18 = vpop.f32.mrf.mxu1 }
 0x114   : > { %v921_v45 = vpop.f32.mrf.mxu0 }
 0x115   : > { %v960_v19 = vadd.f32 %v921_v45, %v764_v32  ;;  %v1123_v20 = vpop.f32.mrf.mxu1 }
 0x116   : > { %v3236_v53 = vpop.f32.mrf.mxu0 }
 0x117   : > { %v1162_v15 = vadd.f32 %v1123_v20, %v960_v19  ;;  %v3272_v21 = vpop.f32.mrf.mxu1 }
 0x118   : > { %v924_v8 = vpop.f32.mrf.mxu0 }
 0x119   : > { %v961_v22 = vadd.f32 %v924_v8, %v767_v37  ;;  %v1126_v23 = vpop.f32.mrf.mxu1 }
 0x11a   : > { %v3237_v24 = vpop.f32.mrf.mxu0 }
 0x11b   : > { %v1163_v25 = vadd.f32 %v1126_v23, %v961_v22  ;;  %v3273_v26 = vpop.f32.mrf.mxu1 }
 0x11c   : > { %v929_v27 = vpop.f32.mrf.mxu0 }
 0x11d   : > { %v962_v29 = vadd.f32 %v929_v27, %v772_v42  ;;  %v1131_v30 = vpop.f32.mrf.mxu1 }
 0x11e   : > { %v3240_v31 = vpop.f32.mrf.mxu0 }
 0x11f   : > { %v1164_v33 = vadd.f32 %v1131_v30, %v962_v29  ;;  %v3276_v28 = vpop.f32.mrf.mxu1 }
 0x120   : > { %v932_v34 = vpop.f32.mrf.mxu0 }
 0x121   : > { %v963_v35 = vadd.f32 %v932_v34, %v775_v47  ;;  %v1134_v38 = vpop.f32.mrf.mxu1 }
 0x122   : > { %v3241_v32 = vpop.f32.mrf.mxu0 }
 0x123   : > { %v1165_v39 = vadd.f32 %v1134_v38, %v963_v35  ;;  %v3277_v40 = vpop.f32.mrf.mxu1 }
 0x124   : > { %v937_v41 = vpop.f32.mrf.mxu0 }
 0x125   : > { %v964_v43 = vadd.f32 %v937_v41, %v780_v51  ;;  %v1139_v1 = vpop.f32.mrf.mxu1 }
 0x126   : > { %v3244_v37 = vpop.f32.mrf.mxu0 }
 0x127   : > { %v1166_v44 = vadd.f32 %v1139_v1, %v964_v43  ;;  %v3280_v46 = vpop.f32.mrf.mxu1 }
 0x128   : > { %v940_v48 = vpop.f32.mrf.mxu0 }
 0x129   : > { %v965_v36 = vadd.f32 %v940_v48, %v783_v57  ;;  %v1142_v49 = vpop.f32.mrf.mxu1 }
 0x12a   : > { %v3245_v42 = vpop.f32.mrf.mxu0 }
 0x12b   : > { %v1167_v50 = vadd.f32 %v1142_v49, %v965_v36  ;;  %v3281_v52 = vpop.f32.mrf.mxu1 }
 0x12c   : > { %v945_v54 = vpop.f32.mrf.mxu0 }
 0x12d   : > { %v966_v55 = vadd.f32 %v945_v54, %v788_v62  ;;  %v1147_v56 = vpop.f32.mrf.mxu1 }
 0x12e   : > { %v3248_v47 = vpop.f32.mrf.mxu0 }
 0x12f   : > { %v1168_v58 = vadd.f32 %v1147_v56, %v966_v55  ;;  %v3284_v59 = vpop.f32.mrf.mxu1 }
 0x130   : > { %v948_v60 = vpop.f32.mrf.mxu0 }
 0x131   : > { %v967_v61 = vadd.f32 %v948_v60, %v791_v4  ;;  %v1150_v63 = vpop.f32.mrf.mxu1 }
 0x132   : > { %v3249_v51 = vpop.f32.mrf.mxu0 }
 0x133   : > { %v1169_v0 = vadd.f32 %v1150_v63, %v967_v61  ;;  %v3285_v2 = vpop.f32.mrf.mxu1 }
 0x134   : > { %v953_v3 = vpop.f32.mrf.mxu0 }
 0x135   : > { %v968_v5 = vadd.f32 %v953_v3, %v796_v11  ;;  %v1155_v6 = vpop.f32.mrf.mxu1 }
 0x136   : > { %v3252_v57 = vpop.f32.mrf.mxu0 }
 0x137   : > { %v1170_v7 = vadd.f32 %v1155_v6, %v968_v5  ;;  %v3288_v9 = vpop.f32.mrf.mxu1 }
 0x138   : > { %v956_v12 = vpop.f32.mrf.mxu0 }
 0x139   : > { %v969_v10 = vadd.f32 %v956_v12, %v799_v16  ;;  %v1158_v13 = vpop.f32.mrf.mxu1 }
 0x13a   : > { %v3253_v62 = vpop.f32.mrf.mxu0 }
 0x13b   : > { %v1171_v14 = vadd.f32 %v1158_v13, %v969_v10  ;;  %v3289_v17 = vpop.f32.mrf.mxu1 }
 0x13c   : > { %v1333_v18 = vpop.f32.mrf.mxu0 }
 0x13d   : > { %v1372_v45 = vadd.f32 %v1333_v18, %v1162_v15  ;;  %v1501_v19 = vpop.f32.mrf.mxu1 }
 0x13e   : > { %v3308_v4 = vpop.f32.mrf.mxu0 }
 0x13f   : > { %v4339_v20 = vadd.f32 %v1501_v19, %v1372_v45  ;;  %v3344_v53 = vpop.f32.mrf.mxu1 }
 0x140   : > { %v1336_v21 = vpop.f32.mrf.mxu0 }
 0x141   : > { %v1373_v8 = vadd.f32 %v1336_v21, %v1163_v25  ;;  %v1504_v11 = vpop.f32.mrf.mxu1 }
 0x142   : > { %v3309_v22 = vpop.f32.mrf.mxu0 }
 0x143   : > { %v4341_v23 = vadd.f32 %v1504_v11, %v1373_v8  ;;  %v3345_v24 = vpop.f32.mrf.mxu1 }
 0x144   : > { %v1341_v26 = vpop.f32.mrf.mxu0 }
 0x145   : > { %v1374_v16 = vadd.f32 %v1341_v26, %v1164_v33  ;;  %v1509_v27 = vpop.f32.mrf.mxu1 }
 0x146   : > { %v3312_v29 = vpop.f32.mrf.mxu0 }
 0x147   : > { %v4343_v30 = vadd.f32 %v1509_v27, %v1374_v16  ;;  %v3348_v31 = vpop.f32.mrf.mxu1 }
 0x148   : > { %v1344_v15 = vpop.f32.mrf.mxu0 }
 0x149   : > { %v1375_v28 = vadd.f32 %v1344_v15, %v1165_v39  ;;  %v1512_v34 = vpop.f32.mrf.mxu1 }
 0x14a   : > { %v3313_v35 = vpop.f32.mrf.mxu0 }
 0x14b   : > { %v4345_v38 = vadd.f32 %v1512_v34, %v1375_v28  ;;  %v3349_v32 = vpop.f32.mrf.mxu1 }
 0x14c   : > { %v1349_v25 = vpop.f32.mrf.mxu0 }
 0x14d   : > { %v1376_v40 = vadd.f32 %v1349_v25, %v1166_v44  ;;  %v1517_v41 = vpop.f32.mrf.mxu1 }
 0x14e   : > { %v3316_v43 = vpop.f32.mrf.mxu0 }
 0x14f   : > { %v4347_v1 = vadd.f32 %v1517_v41, %v1376_v40  ;;  %v3352_v37 = vpop.f32.mrf.mxu1 }
 0x150   : > { %v1352_v33 = vpop.f32.mrf.mxu0 }
 0x151   : > { %v1377_v46 = vadd.f32 %v1352_v33, %v1167_v50  ;;  %v1520_v48 = vpop.f32.mrf.mxu1 }
 0x152   : > { %v3317_v36 = vpop.f32.mrf.mxu0 }
 0x153   : > { %v4349_v49 = vadd.f32 %v1520_v48, %v1377_v46  ;;  %v3353_v42 = vpop.f32.mrf.mxu1 }
 0x154   : > { %v1357_v39 = vpop.f32.mrf.mxu0 }
 0x155   : > { %v1378_v52 = vadd.f32 %v1357_v39, %v1168_v58  ;;  %v1525_v54 = vpop.f32.mrf.mxu1 }
 0x156   : > { %v3320_v55 = vpop.f32.mrf.mxu0 }
 0x157   : > { %v4351_v56 = vadd.f32 %v1525_v54, %v1378_v52  ;;  %v3356_v47 = vpop.f32.mrf.mxu1 }
 0x158   : > { %v1360_v44 = vpop.f32.mrf.mxu0 }
 0x159   : > { %v1379_v59 = vadd.f32 %v1360_v44, %v1169_v0  ;;  %v1528_v60 = vpop.f32.mrf.mxu1 }
 0x15a   : > { %v3321_v61 = vpop.f32.mrf.mxu0 }
 0x15b   : > { %v4353_v63 = vadd.f32 %v1528_v60, %v1379_v59  ;;  %v3357_v51 = vpop.f32.mrf.mxu1 }
 0x15c   : > { %v1365_v50 = vpop.f32.mrf.mxu0  ;;  %v2143_v51 = vpop.permute.xlu0 %2142 }
 0x15d   : > { %v1380_v2 = vadd.f32 %v1365_v50, %v1170_v7  ;;  %v1533_v3 = vpop.f32.mrf.mxu1 }
 0x15e   : > { %v3324_v5 = vpop.f32.mrf.mxu0 }
 0x15f   : > { %v4355_v6 = vadd.f32 %v1533_v3, %v1380_v2  ;;  %v3360_v57 = vpop.f32.mrf.mxu1 }
 0x160   : > { %v1368_v58 = vpop.f32.mrf.mxu0 }
 0x161   : > { %v1381_v9 = vadd.f32 %v1368_v58, %v1171_v14  ;;  %v1536_v12 = vpop.f32.mrf.mxu1 }
 0x162   : > { %v3325_v10 = vpop.f32.mrf.mxu0 }
 0x163   : > { %v4357_v13 = vadd.f32 %v1536_v12, %v1381_v9  ;;  %v3361_v62 = vpop.f32.mrf.mxu1 }
 0x164   : > { %v1703_v0 = vpop.f32.mrf.mxu0  ;;  %v2148_v62 = vpop.permute.xlu0 %2147 }
 0x165   : > { %v1913_v17 = vpop.f32.mrf.mxu1  ;;  %v1742_v52 = vadd.f32 %v1703_v0, %v4339_v20 }
 0x166   : > { %v3380_v18 = vpop.f32.mrf.mxu0 }
 0x167   : > { %v3416_v45 = vpop.f32.mrf.mxu1  ;;  %v1952_v59 = vadd.f32 %v1913_v17, %v1742_v52 }
 0x168   : > { %v1706_v19 = vpop.f32.mrf.mxu0 }
 0x169   : > { %v1916_v4 = vpop.f32.mrf.mxu1  ;;  %v1743_v60 = vadd.f32 %v1706_v19, %v4341_v23 }
 0x16a   : > { %v3381_v53 = vpop.f32.mrf.mxu0 }
 0x16b   : > { %v3417_v7 = vpop.f32.mrf.mxu1  ;;  %v1953_v57 = vadd.f32 %v1916_v4, %v1743_v60  ;;  %v2153_v53 = vpop.permute.xlu1 %2152 }
 0x16c   : > { %v1711_v21 = vpop.f32.mrf.mxu0 }
 0x16d   : > { %v1921_v8 = vpop.f32.mrf.mxu1  ;;  %v1744_v20 = vadd.f32 %v1711_v21, %v4343_v30 }
 0x16e   : > { %v3384_v11 = vpop.f32.mrf.mxu0 }
 0x16f   : > { %v3420_v22 = vpop.f32.mrf.mxu1  ;;  %v1954_v17 = vadd.f32 %v1921_v8, %v1744_v20  ;;  %v2158_v52 = vpop.permute.xlu1 %2157 }
 0x170   : > { %v1714_v24 = vpop.f32.mrf.mxu0 }
 0x171   : > { %v4359_v26 = vpop.f32.mrf.mxu1  ;;  %v1745_v18 = vadd.f32 %v1714_v24, %v4345_v38 }
 0x172   : > { %v3385_v14 = vpop.f32.mrf.mxu0 }
 0x173   : > { %v3421_v16 = vpop.f32.mrf.mxu1 }
 0x174   : > { %v1719_v27 = vpop.f32.mrf.mxu0 }
 0x175   : > { %v4361_v29 = vpop.f32.mrf.mxu1 }
 0x176   : > { %v3388_v31 = vpop.f32.mrf.mxu0 }
 0x177   : > { %v3424_v15 = vpop.f32.mrf.mxu1  ;;  %v1746_v31 = vadd.f32 %v1719_v27, %v4347_v1 }
 0x178   : > { %v4363_v28 = vpop.f32.mrf.mxu0 }
 0x179   : > { %v4365_v34 = vpop.f32.mrf.mxu1  ;;  %v1747_v1 = vadd.f32 %v4363_v28, %v4349_v49 }
 0x17a   : > { %v3389_v35 = vpop.f32.mrf.mxu0 }
 0x17b   : > { %v3425_v32 = vpop.f32.mrf.mxu1  ;;  %v1955_v35 = vadd.f32 %v4359_v26, %v1745_v18  ;;  %v1957_v49 = vadd.f32 %v4365_v34, %v1747_v1  ;;  %v2168_v34 = vpop.permute.xlu1 %2167 }
 0x17c   : > { %v4367_v25 = vpop.f32.mrf.mxu0 }
 0x17d   : > { %v4369_v40 = vpop.f32.mrf.mxu1 }
 0x17e   : > { %v3392_v41 = vpop.f32.mrf.mxu0 }
 0x17f   : > { %v3428_v43 = vpop.f32.mrf.mxu1 }
 0x180   : > { %v4371_v37 = vpop.f32.mrf.mxu0 }
 0x181   : > { %v4373_v33 = vpop.f32.mrf.mxu1 }
 0x182   : > { %v3393_v46 = vpop.f32.mrf.mxu0 }
 0x183   : > { %v3429_v48 = vpop.f32.mrf.mxu1 }
 0x184   : > { %v4375_v36 = vpop.f32.mrf.mxu0 }
 0x185   : > { %v4377_v42 = vpop.f32.mrf.mxu1 }
 0x186   : > { %v3396_v39 = vpop.f32.mrf.mxu0 }
 0x187   : > { %v3432_v54 = vpop.f32.mrf.mxu1  ;;  %v1956_v39 = vadd.f32 %v4361_v29, %v1746_v31  ;;  %v1748_v29 = vadd.f32 %v4367_v25, %v4351_v56  ;;  %v1749_v25 = vadd.f32 %v4371_v37, %v4353_v63 }
 0x188   : > { %v4380_v55 = vpop.f32.mrf.mxu0 }
 0x189   : > { %v4382_v47 = vpop.f32.mrf.mxu1  ;;  %v1958_v56 = vadd.f32 %v4369_v40, %v1748_v29 }
 0x18a   : > { %v3397_v44 = vpop.f32.mrf.mxu0 }
 0x18b   : > { %v3433_v61 = vpop.f32.mrf.mxu1 }
 0x18c   : > { %v2081_v50 = vpop.f32.mrf.mxu0 }
 0x18d   : > { %v2120_v2 = vadd.f32 %v2081_v50, %v1952_v59  ;;  %v4385_v3 = vpop.f32.mrf.mxu1 }
 0x18e   : > { %v3452_v5 = vpop.f32.mrf.mxu0 }
 0x18f   : > { %v3488_v58 = vpop.f32.mrf.mxu1  ;;  %v2190_v12 = vmul.f32 %v2143_v51, %v2120_v2 }
 0x190   : > { %v2084_v9 = vpop.f32.mrf.mxu0  ;;  %v2469_v58 = vmul.f32 %v4385_v3, %v2143_v51 }
 0x191   : > { %v2121_v10 = vadd.f32 %v2084_v9, %v1953_v57  ;;  %v2433_v23 = vpop.f32.mrf.mxu1  ;;  %v2266_v21 = vmul.f32 %v2190_v12, %v2120_v2  ;;  %v2163_v9 = vpop.permute.xlu0 %2162 }
 0x192   : > { %v2986_v30 = vpack.c.bf16 %v2433_v23, %v4385_v3  ;;  %v3453_v0 = vpop.f32.mrf.mxu0  ;;  %v2470_v61 = vmul.f32 %v2433_v23, %v2148_v62  ;;  %v2545_v51 = vmul.f32 %v2469_v58, %v4385_v3 }
 0x193   : > { %v2191_v45 = vmul.f32 %v2148_v62, %v2121_v10  ;;  %v2961_v19 = vpack.c.bf16 %v2121_v10, %v2120_v2  ;;  %v3489_v4 = vpop.f32.mrf.mxu1 }
 0x194   : > { %2987 = vst [vmem:[%s4392_s25] sm:$0xff] %v2986_v30   ;;  %v2089_v7 = vpop.f32.mrf.mxu0  ;;  %v2546_v0 = vmul.f32 %v2470_v61, %v2433_v23 }
 0x195   : > { %2962 = vst [vmem:[%s4398_s29] sm:$0xff] %v2961_v19   ;;  %v2250_v11 = vadd.f32 %v2191_v45, %v2190_v12  ;;  %v2267_v22 = vmul.f32 %v2191_v45, %v2121_v10  ;;  %v2122_v14 = vadd.f32 %v2089_v7, %v1954_v17  ;;  %v2438_v16 = vpop.f32.mrf.mxu1 }
 0x196   : > { %v3456_v15 = vpop.f32.mrf.mxu0  ;;  %v2471_v28 = vmul.f32 %v2438_v16, %v2153_v53 }
 0x197   : > { %v2276_v8 = vadd.f32 %v2267_v22, %v2266_v21  ;;  %v2192_v32 = vmul.f32 %v2153_v53, %v2122_v14  ;;  %v3492_v38 = vpop.f32.mrf.mxu1  ;;  %v1750_v15 = vadd.f32 %v4375_v36, %v4355_v6 }
 0x198   : > { %v2092_v24 = vpop.f32.mrf.mxu0 }
 0x199   : > { %v2251_v41 = vadd.f32 %v2250_v11, %v2192_v32  ;;  %v2268_v43 = vmul.f32 %v2192_v32, %v2122_v14  ;;  %v2123_v46 = vadd.f32 %v2092_v24, %v1955_v35  ;;  %v2441_v48 = vpop.f32.mrf.mxu1  ;;  %v2547_v11 = vmul.f32 %v2471_v28, %v2438_v16 }
 0x19a   : > { %v2991_v54 = vpack.c.bf16 %v2441_v48, %v2438_v16  ;;  %v3457_v44 = vpop.f32.mrf.mxu0  ;;  %v2472_v18 = vmul.f32 %v2441_v48, %v2158_v52  ;;  %v2529_v35 = vadd.f32 %v2470_v61, %v2469_v58  ;;  %v2173_v16 = vpop.permute.xlu0 %2172 }
 0x19b   : > { %v2277_v27 = vadd.f32 %v2276_v8, %v2268_v43  ;;  %v2193_v26 = vmul.f32 %v2158_v52, %v2123_v46  ;;  %v2966_v59 = vpack.c.bf16 %v2123_v46, %v2122_v14  ;;  %v3493_v60 = vpop.f32.mrf.mxu1  ;;  %v2555_v8 = vadd.f32 %v2546_v0, %v2545_v51 }
 0x19c   : > { %3012 = vst [vmem:[%s4392_s25 + $0x8] sm:$0xff] %v2991_v54   ;;  %v2097_v50 = vpop.f32.mrf.mxu0  ;;  %v2548_v63 = vmul.f32 %v2472_v18, %v2441_v48  ;;  %v1960_v44 = vadd.f32 %v4377_v42, %v1750_v15  ;;  %v2178_v60 = vpop.permute.xlu1 %2177  ;;  %v1751_v42 = vadd.f32 %v4380_v55, %v4357_v13 }
 0x19d   : > { %3008 = vst [vmem:[%s4398_s29 + $0x8] sm:$0xff] %v2966_v59   ;;  %v2252_v2 = vadd.f32 %v2251_v41, %v2193_v26  ;;  %v2269_v5 = vmul.f32 %v2193_v26, %v2123_v46  ;;  %v2124_v57 = vadd.f32 %v2097_v50, %v1956_v39  ;;  %v2446_v20 = vpop.f32.mrf.mxu1  ;;  %v2530_v41 = vadd.f32 %v2529_v35, %v2471_v28 }
 0x19e   : > { %v3460_v12 = vpop.f32.mrf.mxu0  ;;  %v2473_v40 = vmul.f32 %v2446_v20, %v2163_v9  ;;  %v1959_v39 = vadd.f32 %v4373_v33, %v1749_v25  ;;  %v2556_v52 = vadd.f32 %v2555_v8, %v2547_v11  ;;  %v1961_v55 = vadd.f32 %v4382_v47, %v1751_v42 }
 0x19f   : > { %v2278_v10 = vadd.f32 %v2277_v27, %v2269_v5  ;;  %v2194_v30 = vmul.f32 %v2163_v9, %v2124_v57  ;;  %v3496_v62 = vpop.f32.mrf.mxu1  ;;  %v2531_v1 = vadd.f32 %v2530_v41, %v2472_v18 }
 0x1a0   : > { %v2100_v17 = vpop.f32.mrf.mxu0  ;;  %v2549_v27 = vmul.f32 %v2473_v40, %v2446_v20  ;;  %v2557_v59 = vadd.f32 %v2556_v52, %v2548_v63 }
 0x1a1   : > { %v2253_v45 = vadd.f32 %v2252_v2, %v2194_v30  ;;  %v2270_v19 = vmul.f32 %v2194_v30, %v2124_v57  ;;  %v2125_v4 = vadd.f32 %v2100_v17, %v1957_v49  ;;  %v2449_v7 = vpop.f32.mrf.mxu1  ;;  %v2183_v17 = vpop.permute.xlu0 %2182 }
 0x1a2   : > { %v2996_v53 = vpack.c.bf16 %v2449_v7, %v2446_v20  ;;  %v3461_v21 = vpop.f32.mrf.mxu0  ;;  %v2474_v43 = vmul.f32 %v2449_v7, %v2168_v34 }
 0x1a3   : > { %v2279_v23 = vadd.f32 %v2278_v10, %v2270_v19  ;;  %v2195_v22 = vmul.f32 %v2168_v34, %v2125_v4  ;;  %v2971_v14 = vpack.c.bf16 %v2125_v4, %v2124_v57  ;;  %v3497_v31 = vpop.f32.mrf.mxu1  ;;  %v2532_v57 = vadd.f32 %v2531_v1, %v2473_v40 }
 0x1a4   : > { %3013 = vst [vmem:[%s4392_s25 + $0x10] sm:$0xff] %v2996_v53   ;;  %v2105_v32 = vpop.f32.mrf.mxu0  ;;  %v2550_v33 = vmul.f32 %v2474_v43, %v2449_v7  ;;  %v2558_v10 = vadd.f32 %v2557_v59, %v2549_v27  ;;  %v2188_v31 = vpop.permute.xlu1 %2187 }
 0x1a5   : > { %3009 = vst [vmem:[%s4398_s29 + $0x10] sm:$0xff] %v2971_v14   ;;  %v2254_v37 = vadd.f32 %v2253_v45, %v2195_v22  ;;  %v2271_v3 = vmul.f32 %v2195_v22, %v2125_v4  ;;  %v2126_v38 = vadd.f32 %v2105_v32, %v1958_v56  ;;  %v2454_v24 = vpop.f32.mrf.mxu1  ;;  %v2533_v30 = vadd.f32 %v2532_v57, %v2474_v43 }
 0x1a6   : > { %v3464_v46 = vpop.f32.mrf.mxu0  ;;  %v2475_v48 = vmul.f32 %v2454_v24, %v2173_v16  ;;  %v2559_v7 = vadd.f32 %v2558_v10, %v2550_v33 }
 0x1a7   : > { %v2280_v54 = vadd.f32 %v2279_v23, %v2271_v3  ;;  %v2196_v6 = vmul.f32 %v2173_v16, %v2126_v38  ;;  %v3500_v36 = vpop.f32.mrf.mxu1 }
 0x1a8   : > { %v2108_v26 = vpop.f32.mrf.mxu0  ;;  %v2551_v62 = vmul.f32 %v2475_v48, %v2454_v24  ;;  %v2534_v56 = vadd.f32 %v2533_v30, %v2475_v48 }
 0x1a9   : > { %v2255_v61 = vadd.f32 %v2254_v37, %v2196_v6  ;;  %v2272_v50 = vmul.f32 %v2196_v6, %v2126_v38  ;;  %v2127_v2 = vadd.f32 %v2108_v26, %v1959_v39  ;;  %v2457_v5 = vpop.f32.mrf.mxu1 }
 0x1aa   : > { %v2476_v29 = vmul.f32 %v2457_v5, %v2178_v60  ;;  %v3001_v58 = vpack.c.bf16 %v2457_v5, %v2454_v24  ;;  %v3465_v9 = vpop.f32.mrf.mxu0  ;;  %v2560_v11 = vadd.f32 %v2559_v7, %v2551_v62 }
 0x1ab   : > { %v2281_v12 = vadd.f32 %v2280_v54, %v2272_v50  ;;  %v2197_v20 = vmul.f32 %v2178_v60, %v2127_v2  ;;  %v2976_v49 = vpack.c.bf16 %v2127_v2, %v2126_v38  ;;  %v3501_v28 = vpop.f32.mrf.mxu1 }
 0x1ac   : > { %3014 = vst [vmem:[%s4392_s25 + $0x18] sm:$0xff] %v3001_v58   ;;  %v2113_v0 = vpop.f32.mrf.mxu0  ;;  %v2552_v25 = vmul.f32 %v2476_v29, %v2457_v5  ;;  %v2535_v23 = vadd.f32 %v2534_v56, %v2476_v29 }
 0x1ad   : > { %3010 = vst [vmem:[%s4398_s29 + $0x18] sm:$0xff] %v2976_v49   ;;  %v2256_v18 = vadd.f32 %v2255_v61, %v2197_v20  ;;  %v2273_v45 = vmul.f32 %v2197_v20, %v2127_v2  ;;  %v2128_v19 = vadd.f32 %v2113_v0, %v1960_v44  ;;  %v2462_v4 = vpop.f32.mrf.mxu1 }
 0x1ae   : > { %v2477_v51 = vmul.f32 %v2462_v4, %v2183_v17  ;;  %v3468_v13 = vpop.f32.mrf.mxu0  ;;  %v2561_v32 = vadd.f32 %v2560_v11, %v2552_v25 }
 0x1af   : > { %v2282_v34 = vadd.f32 %v2281_v12, %v2273_v45  ;;  %v2198_v53 = vmul.f32 %v2183_v17, %v2128_v19  ;;  %v3504_v21 = vpop.f32.mrf.mxu1 }
 0x1b0   : > { %v2553_v22 = vmul.f32 %v2477_v51, %v2462_v4  ;;  %v2116_v14 = vpop.f32.mrf.mxu0  ;;  %v2536_v63 = vadd.f32 %v2535_v23, %v2477_v51 }
 0x1b1   : > { %v2257_v15 = vadd.f32 %v2256_v18, %v2198_v53  ;;  %v2274_v35 = vmul.f32 %v2198_v53, %v2128_v19  ;;  %v2129_v8 = vadd.f32 %v2116_v14, %v1961_v55  ;;  %v2465_v40 = vpop.f32.mrf.mxu1 }
 0x1b2   : > { %v2478_v37 = vmul.f32 %v2465_v40, %v2188_v31  ;;  %v3006_v3 = vpack.c.bf16 %v2465_v40, %v2462_v4  ;;  %v3469_v38 = vpop.f32.mrf.mxu0  ;;  %v2562_v43 = vadd.f32 %v2561_v32, %v2553_v22 }
 0x1b3   : > { %v2283_v47 = vadd.f32 %v2282_v34, %v2274_v35  ;;  %v2199_v24 = vmul.f32 %v2188_v31, %v2129_v8  ;;  %v2981_v41 = vpack.c.bf16 %v2129_v8, %v2128_v19  ;;  %v3505_v16 = vpop.f32.mrf.mxu1 }
 0x1b4   : > { %3015 = vst [vmem:[%s4392_s25 + $0x20] sm:$0xff] %v3006_v3   ;;  %v2537_v46 = vadd.f32 %v2536_v63, %v2478_v37  ;;  %v2554_v39 = vmul.f32 %v2478_v37, %v2465_v40 }
 0x1b5   : > { %3011 = vst [vmem:[%s4398_s29 + $0x20] sm:$0xff] %v2981_v41   ;;  %v2258_v52 = vadd.f32 %v2257_v15, %v2199_v24  ;;  %v2275_v54 = vmul.f32 %v2199_v24, %v2129_v8 }
 0x1b6   : > { %v2538_v6 = vrot.slane %v2537_v46, 4  ;;  %v2563_v36 = vadd.f32 %v2562_v43, %v2554_v39 }
 0x1b7   : > { %v2259_v44 = vrot.slane %v2258_v52, 4  ;;  %v2284_v1 = vadd.f32 %v2283_v47, %v2275_v54 }
 0x1b8   : > { %v2539_v27 = vadd.f32 %v2538_v6, %v2537_v46  ;;  %v2564_v48 = vrot.slane %v2563_v36, 4 }
 0x1b9   : > { %v2260_v26 = vadd.f32 %v2259_v44, %v2258_v52  ;;  %v2285_v59 = vrot.slane %v2284_v1, 4 }
 0x1ba   : > { %v2540_v60 = vrot.slane %v2539_v27, 2  ;;  %v2565_v61 = vadd.f32 %v2564_v48, %v2563_v36 }
 0x1bb   : > { %v2261_v50 = vrot.slane %v2260_v26, 2  ;;  %v2286_v2 = vadd.f32 %v2285_v59, %v2284_v1 }
 0x1bc   : > { %v2541_v5 = vadd.f32 %v2540_v60, %v2539_v27  ;;  %v2566_v57 = vrot.slane %v2565_v61, 2 }
 0x1bd   : > { %v2262_v33 = vadd.f32 %v2261_v50, %v2260_v26  ;;  %v2287_v29 = vrot.slane %v2286_v2, 2 }
 0x1be   : > { %v2542_v58 = vrot.slane %v2541_v5, 1  ;;  %v2567_v9 = vadd.f32 %v2566_v57, %v2565_v61 }
 0x1bf   : > { %v2263_v42 = vrot.slane %v2262_v33, 1  ;;  %v2288_v12 = vadd.f32 %v2287_v29, %v2286_v2 }
 0x1c0   : > { %v2543_v20 = vadd.f32 %v2542_v58, %v2541_v5  ;;  %v2568_v49 = vrot.slane %v2567_v9, 1 }
 0x1c1   : > { %v2264_v28 = vadd.f32 %v2263_v42, %v2262_v33  ;;  %v2289_v10 = vrot.slane %v2288_v12, 1 }
 0x1c2   : > { %2544 = vst [vmem:[%s428_s15] sm:$0xff] %v2543_v20  ;;  %v2569_v30 = vadd.f32 %v2568_v49, %v2567_v9 }
 0x1c3   : > { %2265 = vst [vmem:[%s415_s19] sm:$0xff] %v2264_v28  ;;  %v2290_v62 = vadd.f32 %v2289_v10, %v2288_v12 }
 0x1c4   : > { %2570 = vst [vmem:[%s432_s21] sm:$0xff] %v2569_v30 }
 0x1c5   : > { %2291 = vst [vmem:[%s419_s24] sm:$0xff] %v2290_v62 }
 0x1c6 PF: > { %s21_s13 = sadd.s32 1, %s3635_s13  }
 0x1c7   : > { %p18_p4 = scmp.ge.s32.totalorder %s21_s13, 4  }
 0x1c9   :  { %20 = sbr.rel (!%p18_p4) target bundleno = 1 (0x1), region = 133 }

</bundles_post_ra>
